<compile_context>
chip_gen: v5e
topology: v5e:2x2
jax: 0.10.0
libtpu: 0.0.40
codegen_flags: <defaults>
</compile_context>

<pallas_src>
import numpy as np
import jax
import jax.numpy as jnp
from jax import lax
from jax.experimental import pallas as pl
from jax.experimental.pallas import tpu as pltpu


# ----------------------------------------------------------------------------
# Pallas kernel: one grid step processes TB batch elements end-to-end.
# ----------------------------------------------------------------------------
def _loss_kernel(dmap_ref, gt_ref, valid_ref,
                 W1P_ref, b1P_ref, W2P_ref, b2P_ref,
                 Wfc1_ref, bfc1_ref, Wfc2_ref, bfc2_ref, Q_ref,
                 out_ref):
    f32 = jnp.float32
    x = dmap_ref[...]                       # (TB, 64)   predicted density (flattened 8x8)
    gt = gt_ref[...]                        # (TB, 4096) ground-truth density (flattened 64x64)

    # ---- AvgPool2d(size) * size^2 == per-block SUM, as one big-K matmul ----
    pooled = jnp.dot(gt, Q_ref[...], preferred_element_type=f32)       # (TB, 64)
    diff = x - pooled
    mse11 = jnp.sum(diff * diff, axis=(0, 1), keepdims=True)           # (1, 1)  (sum reduction)

    # ---- discriminator (forward of the torch.no_grad() adversarial branch) ----
    # conv1 folded + ReLU: columns are ordered (quadrant, 4x4-pos, channel)
    y1 = jnp.dot(x, W1P_ref[...], preferred_element_type=f32) + b1P_ref[...]   # (TB, 2048)
    y1 = jnp.maximum(y1, 0.0)
    # MaxPool2d(2,2) 8x8 -> 4x4: max over the 4 contiguous quadrant slabs
    n1 = y1.shape[1] // 4
    q1 = jnp.maximum(jnp.maximum(y1[:, 0:n1], y1[:, n1:2 * n1]),
                     jnp.maximum(y1[:, 2 * n1:3 * n1], y1[:, 3 * n1:4 * n1]))  # (TB, 512)

    # conv2 folded + ReLU: columns ordered (quadrant, 2x2-pos, channel)
    y2 = jnp.dot(q1, W2P_ref[...], preferred_element_type=f32) + b2P_ref[...]  # (TB, 1024)
    y2 = jnp.maximum(y2, 0.0)
    # MaxPool2d(2,2) 4x4 -> 2x2
    n2 = y2.shape[1] // 4
    q2 = jnp.maximum(jnp.maximum(y2[:, 0:n2], y2[:, n2:2 * n2]),
                     jnp.maximum(y2[:, 2 * n2:3 * n2], y2[:, 3 * n2:4 * n2]))  # (TB, 256)

    # fc1 (256 -> 128) + ReLU, fc2 (128 -> 1), sigmoid
    h1 = jnp.dot(q2, Wfc1_ref[...], preferred_element_type=f32) + bfc1_ref[...]  # (TB, 128)
    h1 = jnp.maximum(h1, 0.0)
    z = jnp.dot(h1, Wfc2_ref[...], preferred_element_type=f32) + bfc2_ref[...]   # (TB, 1)
    prob = 1.0 / (1.0 + jnp.exp(-z))
    # BCE against target == 1: -log(p), log clamped at -100 like nn.BCELoss
    bce = -jnp.maximum(jnp.log(prob), -100.0)                                    # (TB, 1)
    adv11 = jnp.sum(bce * valid_ref[...], axis=(0, 1), keepdims=True)            # (1, 1)

    # ---- lane-dense per-block partials: mse at [0,0], bce-sum at [0,1] ----
    rows = lax.broadcasted_iota(jnp.int32, (8, 128), 0)
    lanes = lax.broadcasted_iota(jnp.int32, (8, 128), 1)
    mse_slot = jnp.logical_and(rows == 0, lanes == 0).astype(f32)
    adv_slot = jnp.logical_and(rows == 0, lanes == 1).astype(f32)
    out_ref[0] = mse11 * mse_slot + adv11 * adv_slot


# ----------------------------------------------------------------------------
# Host-side constant construction (shift matrices, pooling permutations, folds).
# ----------------------------------------------------------------------------
def _shift_mats(H, W):
    """G[k][h*W+w, s_in] = 1 iff s_in == (h+ky-1)*W + (w+kx-1) (zero padding)."""
    G = np.zeros((9, H * W, H * W), np.float32)
    k = 0
    for ky in range(3):
        for kx in range(3):
            for h in range(H):
                for w in range(W):
                    sh, sw = h + ky - 1, w + kx - 1
                    if 0 <= sh < H and 0 <= sw < W:
                        G[k, h * W + w, sh * W + sw] = 1.0
            k += 1
    return G


def _pool_perm(H):
    """Permutation so the 4 MaxPool2d(2,2) candidates become contiguous quadrant slabs."""
    Ho = H // 2
    p = np.empty((H * H,), np.int32)
    idx = 0
    for eh in range(2):
        for ew in range(2):
            for hp in range(Ho):
                for wp in range(Ho):
                    p[idx] = (2 * hp + eh) * H + (2 * wp + ew)
                    idx += 1
    return p


def init_params(key, size=8):
    ks = jax.random.split(key, 4)
    s3 = size // 4
    return dict(
        W1=(0.05 * jax.random.normal(ks[0], (9, 32))).astype(jnp.float32),
        b1=jnp.full((1, 32), 0.01, jnp.float32),
        W2=(0.05 * jax.random.normal(ks[1], (9, 32, 64))).astype(jnp.float32),
        b2=jnp.full((1, 64), 0.01, jnp.float32),
        Wfc1=(0.05 * jax.random.normal(ks[2], (s3 * s3, 64, 128))).astype(jnp.float32),
        bfc1=jnp.full((1, 128), 0.01, jnp.float32),
        Wfc2=(0.05 * jax.random.normal(ks[3], (128, 1))).astype(jnp.float32),
        bfc2=jnp.zeros((1, 1), jnp.float32),
    )


def down_mse_adv_loss(dmap, gt_density, params, *, size=8, alpha=0.01, block_b=128):
    b, c, h, w = dmap.shape
    assert c == 1 and h == size and w == size, "discriminator requires (B,1,size,size)"
    assert gt_density.shape == (b, 1, h * size, w * size)
    f32 = jnp.float32
    S = size * size                    # 64
    GS = S * S                         # 4096
    C1, C2 = params['W1'].shape[1], params['W2'].shape[2]   # 32, 64
    S2 = (size // 2) ** 2              # 16

    # ---- flatten inputs (contiguous reshapes only) ----
    dmap2 = dmap[:, 0].reshape(b, S).astype(f32)          # (B, 64)
    gt2 = gt_density[:, 0].reshape(b, GS).astype(f32)     # (B, 4096)

    # ---- batch tiling ----
    if b <= block_b:
        tb, b_pad = b, b
    else:
        tb = block_b                                       # multiple of 8
        b_pad = pl.cdiv(b, tb) * tb
    if b_pad != b:
        dmap2 = jnp.pad(dmap2, ((0, b_pad - b), (0, 0)))
        gt2 = jnp.pad(gt2, ((0, b_pad - b), (0, 0)))
    valid = (jnp.arange(b_pad) < b).astype(f32).reshape(b_pad, 1)
    num_blocks = b_pad // tb

    # ---- fold conv weights into single matmul operators with pool-friendly column order ----
    G1 = _shift_mats(size, size)              # (9, 64, 64)
    G2 = _shift_mats(size // 2, size // 2)    # (9, 16, 16)
    p1 = _pool_perm(size)                     # (64,)
    p2 = _pool_perm(size // 2)                # (16,)

    # conv1: W1P[s_in, pos*C1 + c] = sum_k G1[k, perm1[pos], s_in] * W1[k, c]
    Wf1 = jnp.einsum('kos,kc->soc', jnp.asarray(G1), params['W1'])      # (64, 64, 32)
    W1P = Wf1[:, p1, :].reshape(S, S * C1)                               # (64, 2048)
    b1P = jnp.tile(params['b1'], (1, S))                                 # (1, 2048)

    # conv2: W2P[s_in*C1 + c_in, pos*C2 + c_out] = sum_k G2[k, perm2[pos], s_in] * W2[k, c_in, c_out]
    Wf2 = jnp.einsum('kos,kiu->siou', jnp.asarray(G2), params['W2'])     # (16, 32, 16, 64)
    W2P = Wf2.reshape(S2 * C1, S2, C2)[:, p2, :].reshape(S2 * C1, S2 * C2)  # (512, 1024)
    b2P = jnp.tile(params['b2'], (1, S2))                                # (1, 1024)

    Wfc1f = params['Wfc1'].reshape((size // 4) ** 2 * C2, -1)            # (256, 128)

    # block-sum pooling matrix: pooled = gt_flat @ Q, Q (4096, 64) is 0/1
    A = np.kron(np.eye(size, dtype=np.float32), np.ones((size, 1), np.float32))  # (64, 8)
    Q = jnp.asarray(np.kron(A, A))                                        # (4096, 64)

    inputs = (dmap2, gt2, valid,
              W1P, b1P, W2P, b2P, Wfc1f,
              params['bfc1'], params['Wfc2'], params['bfc2'], Q)

    def batch_spec(a):
        return pl.BlockSpec((tb,) + a.shape[1:], lambda i: (i, 0))

    def const_spec(a):
        nd = a.ndim
        return pl.BlockSpec(a.shape, lambda i, _nd=nd: (0,) * _nd)

    in_specs = [batch_spec(dmap2), batch_spec(gt2), batch_spec(valid)]
    in_specs += [const_spec(a) for a in inputs[3:]]

    out_shape = jax.ShapeDtypeStruct((num_blocks, 8, 128), f32)
    out_spec = pl.BlockSpec((1, 8, 128), lambda i: (i, 0, 0))

    partials = pl.pallas_call(
        _loss_kernel,
        out_shape=out_shape,
        grid_spec=pltpu.PrefetchScalarGridSpec(
            num_scalar_prefetch=0,
            grid=(num_blocks,),
            in_specs=in_specs,
            out_specs=out_spec),
        compiler_params=pltpu.CompilerParams(
            dimension_semantics=("parallel",),
            vmem_limit_bytes=32 * 1024 * 1024),
    )(*inputs)

    mse = jnp.sum(partials[:, 0, 0])          # nn.MSELoss(reduction='sum')
    adv = jnp.sum(partials[:, 0, 1]) / b      # nn.BCELoss() mean over batch
    total = mse + alpha * adv
    return total, mse, adv


# ----------------------------------------------------------------------------
# Pure-JAX reference (verification only).
# ----------------------------------------------------------------------------
def reference_loss(dmap, gt_density, params, size=8, alpha=0.01):
    b = dmap.shape[0]
    tot = size * size
    gh, gw = gt_density.shape[2] // size, gt_density.shape[3] // size
    pooled = gt_density.reshape(b, 1, gh, size, gw, size).mean(axis=(3, 5)) * tot
    mse = jnp.sum((dmap - pooled) ** 2)

    W1 = params['W1'].T.reshape(32, 3, 3)[:, None, :, :]                 # OIHW
    W2 = jnp.transpose(params['W2'], (2, 1, 0)).reshape(64, 32, 3, 3)    # OIHW
    dn = ('NCHW', 'OIHW', 'NCHW')
    x = lax.conv_general_dilated(dmap, W1, (1, 1), 'SAME', dimension_numbers=dn)
    x = jnp.maximum(x + params['b1'].reshape(1, 32, 1, 1), 0.0)
    x = x.reshape(b, 32, size // 2, 2, size // 2, 2).max(axis=(3, 5))
    x = lax.conv_general_dilated(x, W2, (1, 1), 'SAME', dimension_numbers=dn)
    x = jnp.maximum(x + params['b2'].reshape(1, 64, 1, 1), 0.0)
    x = x.reshape(b, 64, size // 4, 2, size // 4, 2).max(axis=(3, 5))    # (b,64,2,2)
    feat = jnp.transpose(x, (0, 2, 3, 1)).reshape(b, (size // 4) ** 2, 64)
    h1 = jnp.maximum(jnp.einsum('bsc,sco->bo', feat, params['Wfc1']) + params['bfc1'], 0.0)
    z = h1 @ params['Wfc2'] + params['bfc2']
    p = jax.nn.sigmoid(z)
    bce = jnp.mean(-jnp.maximum(jnp.log(p), -100.0))
    return mse + alpha * bce, mse, bce


if __name__ == "__main__":
    # TODO(synk): torch.no_grad()/detach/requires_grad autograd bookkeeping has no
    # forward-pass effect, so it is not represented in the kernel.
    size, b = 8, 2
    k1, k2, k3 = jax.random.split(jax.random.PRNGKey(0), 3)
    dmap = jax.random.normal(k1, (b, 1, size, size), jnp.float32)
    gt_density = jax.random.uniform(k2, (b, 1, size * size, size * size), jnp.float32)
    params = init_params(k3, size=size)

    total, mse, adv = down_mse_adv_loss(dmap, gt_density, params, size=size, alpha=0.01)
    total = jax.block_until_ready(total)

    ref_total, ref_mse, ref_adv = reference_loss(dmap, gt_density, params, size=size, alpha=0.01)
    np.testing.assert_allclose(np.asarray(mse), np.asarray(ref_mse), rtol=3e-2, atol=1e-3)
    np.testing.assert_allclose(np.asarray(adv), np.asarray(ref_adv), rtol=3e-2, atol=1e-3)
    np.testing.assert_allclose(np.asarray(total), np.asarray(ref_total), rtol=3e-2, atol=1e-3)
    print("KERNEL_OK")
</pallas_src>

<mosaic_0001>
module attributes {stable_mosaic.version = 11 : i64} {
  func.func @_loss_kernel(%arg0: i32, %arg1: memref<2x64xf32, #tpu.memory_space<vmem>>, %arg2: memref<2x4096xf32, #tpu.memory_space<vmem>>, %arg3: memref<2x1xf32, #tpu.memory_space<vmem>>, %arg4: memref<64x2048xf32, #tpu.memory_space<vmem>>, %arg5: memref<1x2048xf32, #tpu.memory_space<vmem>>, %arg6: memref<512x1024xf32, #tpu.memory_space<vmem>>, %arg7: memref<1x1024xf32, #tpu.memory_space<vmem>>, %arg8: memref<256x128xf32, #tpu.memory_space<vmem>>, %arg9: memref<1x128xf32, #tpu.memory_space<vmem>>, %arg10: memref<128x1xf32, #tpu.memory_space<vmem>>, %arg11: memref<1x1xf32, #tpu.memory_space<vmem>>, %arg12: memref<4096x64xf32, #tpu.memory_space<vmem>>, %arg13: memref<1x8x128xf32, #tpu.memory_space<vmem>>) attributes {dimension_semantics = [#tpu.dimension_semantics<parallel>], iteration_bounds = array<i64: 1>, scalar_prefetch = 0 : i64, scratch_operands = 0 : i64, tpu.core_type = #tpu.core_type<tc>, window_params = [{transform_indices = @transform_0, window_bounds = array<i64: 2, 64>}, {transform_indices = @transform_1, window_bounds = array<i64: 2, 4096>}, {transform_indices = @transform_2, window_bounds = array<i64: 2, 1>}, {pipeline_mode = #tpu.pipeline_mode<synchronous>, transform_indices = @transform_3, window_bounds = array<i64: 64, 2048>}, {pipeline_mode = #tpu.pipeline_mode<synchronous>, transform_indices = @transform_4, window_bounds = array<i64: 1, 2048>}, {pipeline_mode = #tpu.pipeline_mode<synchronous>, transform_indices = @transform_5, window_bounds = array<i64: 512, 1024>}, {pipeline_mode = #tpu.pipeline_mode<synchronous>, transform_indices = @transform_6, window_bounds = array<i64: 1, 1024>}, {pipeline_mode = #tpu.pipeline_mode<synchronous>, transform_indices = @transform_7, window_bounds = array<i64: 256, 128>}, {pipeline_mode = #tpu.pipeline_mode<synchronous>, transform_indices = @transform_8, window_bounds = array<i64: 1, 128>}, {pipeline_mode = #tpu.pipeline_mode<synchronous>, transform_indices = @transform_9, window_bounds = array<i64: 128, 1>}, {pipeline_mode = #tpu.pipeline_mode<synchronous>, transform_indices = @transform_10, window_bounds = array<i64: 1, 1>}, {pipeline_mode = #tpu.pipeline_mode<synchronous>, transform_indices = @transform_11, window_bounds = array<i64: 4096, 64>}, {transform_indices = @transform_12, window_bounds = array<i64: 1, 8, 128>}]} {
    %c0 = arith.constant 0 : index
    %c0_0 = arith.constant 0 : index
    %0 = vector.load %arg1[%c0, %c0_0] : memref<2x64xf32, #tpu.memory_space<vmem>>, vector<2x64xf32>
    %c0_1 = arith.constant 0 : index
    %c0_2 = arith.constant 0 : index
    %1 = vector.load %arg2[%c0_1, %c0_2] : memref<2x4096xf32, #tpu.memory_space<vmem>>, vector<2x4096xf32>
    %c0_3 = arith.constant 0 : index
    %c0_4 = arith.constant 0 : index
    %2 = vector.load %arg12[%c0_3, %c0_4] : memref<4096x64xf32, #tpu.memory_space<vmem>>, vector<4096x64xf32>
    %cst = arith.constant dense<0.000000e+00> : vector<2x64xf32>
    %3 = tpu.matmul %1, %2, %cst {dimension_numbers = #tpu.dot_dimension_numbers<[1], [0], [0], [1], [0, 0, 1, 1], [], []>} : vector<2x4096xf32>, vector<4096x64xf32>, vector<2x64xf32> -> vector<2x64xf32>
    %4 = arith.subf %0, %3 : vector<2x64xf32>
    %5 = arith.mulf %4, %4 : vector<2x64xf32>
    %6 = vector.shape_cast %5 : vector<2x64xf32> to vector<1x2x64xf32>
    %cst_5 = arith.constant dense<0.000000e+00> : vector<1xf32>
    %7 = vector.multi_reduction <add>, %6, %cst_5 [1, 2] : vector<1x2x64xf32> to vector<1xf32>
    %8 = vector.shape_cast %7 : vector<1xf32> to vector<1x1x1xf32>
    %9 = vector.extract %8[0, 0, 0] : f32 from vector<1x1x1xf32>
    %10 = vector.broadcast %9 : f32 to vector<1x1xf32>
    %c0_6 = arith.constant 0 : index
    %c0_7 = arith.constant 0 : index
    %11 = vector.load %arg4[%c0_6, %c0_7] : memref<64x2048xf32, #tpu.memory_space<vmem>>, vector<64x2048xf32>
    %cst_8 = arith.constant dense<0.000000e+00> : vector<2x2048xf32>
    %12 = tpu.matmul %0, %11, %cst_8 {dimension_numbers = #tpu.dot_dimension_numbers<[1], [0], [0], [1], [0, 0, 1, 1], [], []>} : vector<2x64xf32>, vector<64x2048xf32>, vector<2x2048xf32> -> vector<2x2048xf32>
    %c0_9 = arith.constant 0 : index
    %c0_10 = arith.constant 0 : index
    %13 = vector.load %arg5[%c0_9, %c0_10] : memref<1x2048xf32, #tpu.memory_space<vmem>>, vector<1x2048xf32>
    %14 = vector.broadcast %13 : vector<1x2048xf32> to vector<2x2048xf32>
    %15 = arith.addf %12, %14 : vector<2x2048xf32>
    %cst_11 = arith.constant 0.000000e+00 : f32
    %16 = vector.broadcast %cst_11 : f32 to vector<2x2048xf32>
    %17 = arith.maximumf %15, %16 : vector<2x2048xf32>
    %18 = vector.extract_strided_slice %17 {offsets = [0, 0], sizes = [2, 512], strides = [1, 1]} : vector<2x2048xf32> to vector<2x512xf32>
    %19 = vector.extract_strided_slice %17 {offsets = [0, 512], sizes = [2, 512], strides = [1, 1]} : vector<2x2048xf32> to vector<2x512xf32>
    %20 = arith.maximumf %18, %19 : vector<2x512xf32>
    %21 = vector.extract_strided_slice %17 {offsets = [0, 1024], sizes = [2, 512], strides = [1, 1]} : vector<2x2048xf32> to vector<2x512xf32>
    %22 = vector.extract_strided_slice %17 {offsets = [0, 1536], sizes = [2, 512], strides = [1, 1]} : vector<2x2048xf32> to vector<2x512xf32>
    %23 = arith.maximumf %21, %22 : vector<2x512xf32>
    %24 = arith.maximumf %20, %23 : vector<2x512xf32>
    %c0_12 = arith.constant 0 : index
    %c0_13 = arith.constant 0 : index
    %25 = vector.load %arg6[%c0_12, %c0_13] : memref<512x1024xf32, #tpu.memory_space<vmem>>, vector<512x1024xf32>
    %cst_14 = arith.constant dense<0.000000e+00> : vector<2x1024xf32>
    %26 = tpu.matmul %24, %25, %cst_14 {dimension_numbers = #tpu.dot_dimension_numbers<[1], [0], [0], [1], [0, 0, 1, 1], [], []>} : vector<2x512xf32>, vector<512x1024xf32>, vector<2x1024xf32> -> vector<2x1024xf32>
    %c0_15 = arith.constant 0 : index
    %c0_16 = arith.constant 0 : index
    %27 = vector.load %arg7[%c0_15, %c0_16] : memref<1x1024xf32, #tpu.memory_space<vmem>>, vector<1x1024xf32>
    %28 = vector.broadcast %27 : vector<1x1024xf32> to vector<2x1024xf32>
    %29 = arith.addf %26, %28 : vector<2x1024xf32>
    %cst_17 = arith.constant 0.000000e+00 : f32
    %30 = vector.broadcast %cst_17 : f32 to vector<2x1024xf32>
    %31 = arith.maximumf %29, %30 : vector<2x1024xf32>
    %32 = vector.extract_strided_slice %31 {offsets = [0, 0], sizes = [2, 256], strides = [1, 1]} : vector<2x1024xf32> to vector<2x256xf32>
    %33 = vector.extract_strided_slice %31 {offsets = [0, 256], sizes = [2, 256], strides = [1, 1]} : vector<2x1024xf32> to vector<2x256xf32>
    %34 = arith.maximumf %32, %33 : vector<2x256xf32>
    %35 = vector.extract_strided_slice %31 {offsets = [0, 512], sizes = [2, 256], strides = [1, 1]} : vector<2x1024xf32> to vector<2x256xf32>
    %36 = vector.extract_strided_slice %31 {offsets = [0, 768], sizes = [2, 256], strides = [1, 1]} : vector<2x1024xf32> to vector<2x256xf32>
    %37 = arith.maximumf %35, %36 : vector<2x256xf32>
    %38 = arith.maximumf %34, %37 : vector<2x256xf32>
    %c0_18 = arith.constant 0 : index
    %c0_19 = arith.constant 0 : index
    %39 = vector.load %arg8[%c0_18, %c0_19] : memref<256x128xf32, #tpu.memory_space<vmem>>, vector<256x128xf32>
    %cst_20 = arith.constant dense<0.000000e+00> : vector<2x128xf32>
    %40 = tpu.matmul %38, %39, %cst_20 {dimension_numbers = #tpu.dot_dimension_numbers<[1], [0], [0], [1], [0, 0, 1, 1], [], []>} : vector<2x256xf32>, vector<256x128xf32>, vector<2x128xf32> -> vector<2x128xf32>
    %c0_21 = arith.constant 0 : index
    %c0_22 = arith.constant 0 : index
    %41 = vector.load %arg9[%c0_21, %c0_22] : memref<1x128xf32, #tpu.memory_space<vmem>>, vector<1x128xf32>
    %42 = vector.broadcast %41 : vector<1x128xf32> to vector<2x128xf32>
    %43 = arith.addf %40, %42 : vector<2x128xf32>
    %cst_23 = arith.constant 0.000000e+00 : f32
    %44 = vector.broadcast %cst_23 : f32 to vector<2x128xf32>
    %45 = arith.maximumf %43, %44 : vector<2x128xf32>
    %c0_24 = arith.constant 0 : index
    %c0_25 = arith.constant 0 : index
    %46 = vector.load %arg10[%c0_24, %c0_25] : memref<128x1xf32, #tpu.memory_space<vmem>>, vector<128x1xf32>
    %cst_26 = arith.constant dense<0.000000e+00> : vector<2x1xf32>
    %47 = tpu.matmul %45, %46, %cst_26 {dimension_numbers = #tpu.dot_dimension_numbers<[1], [0], [0], [1], [0, 0, 1, 1], [], []>} : vector<2x128xf32>, vector<128x1xf32>, vector<2x1xf32> -> vector<2x1xf32>
    %c0_27 = arith.constant 0 : index
    %c0_28 = arith.constant 0 : index
    %48 = vector.load %arg11[%c0_27, %c0_28] : memref<1x1xf32, #tpu.memory_space<vmem>>, vector<1x1xf32>
    %49 = vector.broadcast %48 : vector<1x1xf32> to vector<2x1xf32>
    %50 = arith.addf %47, %49 : vector<2x1xf32>
    %cst_29 = arith.constant 0.000000e+00 : f32
    %51 = vector.broadcast %cst_29 : f32 to vector<2x1xf32>
    %52 = arith.subf %51, %50 : vector<2x1xf32>
    %53 = math.exp %52 : vector<2x1xf32>
    %cst_30 = arith.constant 1.000000e+00 : f32
    %54 = vector.broadcast %cst_30 : f32 to vector<2x1xf32>
    %55 = arith.addf %54, %53 : vector<2x1xf32>
    %cst_31 = arith.constant 1.000000e+00 : f32
    %56 = vector.broadcast %cst_31 : f32 to vector<2x1xf32>
    %57 = arith.divf %56, %55 : vector<2x1xf32>
    %58 = math.log %57 : vector<2x1xf32>
    %cst_32 = arith.constant -1.000000e+02 : f32
    %59 = vector.broadcast %cst_32 : f32 to vector<2x1xf32>
    %60 = arith.maximumf %58, %59 : vector<2x1xf32>
    %cst_33 = arith.constant 0.000000e+00 : f32
    %61 = vector.broadcast %cst_33 : f32 to vector<2x1xf32>
    %62 = arith.subf %61, %60 : vector<2x1xf32>
    %c0_34 = arith.constant 0 : index
    %c0_35 = arith.constant 0 : index
    %63 = vector.load %arg3[%c0_34, %c0_35] : memref<2x1xf32, #tpu.memory_space<vmem>>, vector<2x1xf32>
    %64 = arith.mulf %62, %63 : vector<2x1xf32>
    %65 = vector.shape_cast %64 : vector<2x1xf32> to vector<1x2x1xf32>
    %cst_36 = arith.constant dense<0.000000e+00> : vector<1xf32>
    %66 = vector.multi_reduction <add>, %65, %cst_36 [1, 2] : vector<1x2x1xf32> to vector<1xf32>
    %67 = vector.shape_cast %66 : vector<1xf32> to vector<1x1x1xf32>
    %68 = vector.extract %67[0, 0, 0] : f32 from vector<1x1x1xf32>
    %69 = vector.broadcast %68 : f32 to vector<1x1xf32>
    %70 = tpu.iota {dimensions = array<i32: 0>} : vector<8x128xi32>
    %71 = tpu.iota {dimensions = array<i32: 1>} : vector<8x128xi32>
    %c0_i32 = arith.constant 0 : i32
    %72 = vector.broadcast %c0_i32 : i32 to vector<8x128xi32>
    %73 = arith.cmpi eq, %70, %72 : vector<8x128xi32>
    %c0_i32_37 = arith.constant 0 : i32
    %74 = vector.broadcast %c0_i32_37 : i32 to vector<8x128xi32>
    %75 = arith.cmpi eq, %71, %74 : vector<8x128xi32>
    %76 = arith.andi %73, %75 : vector<8x128xi1>
    %77 = arith.extui %76 : vector<8x128xi1> to vector<8x128xi32>
    %78 = arith.sitofp %77 : vector<8x128xi32> to vector<8x128xf32>
    %c0_i32_38 = arith.constant 0 : i32
    %79 = vector.broadcast %c0_i32_38 : i32 to vector<8x128xi32>
    %80 = arith.cmpi eq, %70, %79 : vector<8x128xi32>
    %c1_i32 = arith.constant 1 : i32
    %81 = vector.broadcast %c1_i32 : i32 to vector<8x128xi32>
    %82 = arith.cmpi eq, %71, %81 : vector<8x128xi32>
    %83 = arith.andi %80, %82 : vector<8x128xi1>
    %84 = arith.extui %83 : vector<8x128xi1> to vector<8x128xi32>
    %85 = arith.sitofp %84 : vector<8x128xi32> to vector<8x128xf32>
    %86 = vector.broadcast %10 : vector<1x1xf32> to vector<8x128xf32>
    %87 = arith.mulf %86, %78 : vector<8x128xf32>
    %88 = vector.broadcast %69 : vector<1x1xf32> to vector<8x128xf32>
    %89 = arith.mulf %88, %85 : vector<8x128xf32>
    %90 = arith.addf %87, %89 : vector<8x128xf32>
    %c0_39 = arith.constant 0 : index
    %c0_40 = arith.constant 0 : index
    %c0_41 = arith.constant 0 : index
    %91 = vector.load %arg13[%c0_39, %c0_40, %c0_41] : memref<1x8x128xf32, #tpu.memory_space<vmem>>, vector<1x8x128xf32>
    %92 = vector.shape_cast %91 : vector<1x8x128xf32> to vector<8x128xf32>
    %93 = vector.shape_cast %90 : vector<8x128xf32> to vector<1x8x128xf32>
    tpu.vector_store %arg13[%c0_39, %c0_40, %c0_41], %93 {strides = array<i32>} : memref<1x8x128xf32, #tpu.memory_space<vmem>>, vector<1x8x128xf32>,
    return
  }
  func.func @transform_0(%arg0: i32) -> (i32, i32) {
    %c0_i32 = arith.constant 0 : i32
    %c0_i32_0 = arith.constant 0 : i32
    return %arg0, %c0_i32 : i32, i32
  }
  func.func @transform_1(%arg0: i32) -> (i32, i32) {
    %c0_i32 = arith.constant 0 : i32
    %c0_i32_0 = arith.constant 0 : i32
    return %arg0, %c0_i32 : i32, i32
  }
  func.func @transform_2(%arg0: i32) -> (i32, i32) {
    %c0_i32 = arith.constant 0 : i32
    %c0_i32_0 = arith.constant 0 : i32
    return %arg0, %c0_i32 : i32, i32
  }
  func.func @transform_3(%arg0: i32) -> (i32, i32) {
    %c0_i32 = arith.constant 0 : i32
    %c0_i32_0 = arith.constant 0 : i32
    %c0_i32_1 = arith.constant 0 : i32
    return %c0_i32, %c0_i32_0 : i32, i32
  }
  func.func @transform_4(%arg0: i32) -> (i32, i32) {
    %c0_i32 = arith.constant 0 : i32
    %c0_i32_0 = arith.constant 0 : i32
    %c0_i32_1 = arith.constant 0 : i32
    return %c0_i32, %c0_i32_0 : i32, i32
  }
  func.func @transform_5(%arg0: i32) -> (i32, i32) {
    %c0_i32 = arith.constant 0 : i32
    %c0_i32_0 = arith.constant 0 : i32
    %c0_i32_1 = arith.constant 0 : i32
    return %c0_i32, %c0_i32_0 : i32, i32
  }
  func.func @transform_6(%arg0: i32) -> (i32, i32) {
    %c0_i32 = arith.constant 0 : i32
    %c0_i32_0 = arith.constant 0 : i32
    %c0_i32_1 = arith.constant 0 : i32
    return %c0_i32, %c0_i32_0 : i32, i32
  }
  func.func @transform_7(%arg0: i32) -> (i32, i32) {
    %c0_i32 = arith.constant 0 : i32
    %c0_i32_0 = arith.constant 0 : i32
    %c0_i32_1 = arith.constant 0 : i32
    return %c0_i32, %c0_i32_0 : i32, i32
  }
  func.func @transform_8(%arg0: i32) -> (i32, i32) {
    %c0_i32 = arith.constant 0 : i32
    %c0_i32_0 = arith.constant 0 : i32
    %c0_i32_1 = arith.constant 0 : i32
    return %c0_i32, %c0_i32_0 : i32, i32
  }
  func.func @transform_9(%arg0: i32) -> (i32, i32) {
    %c0_i32 = arith.constant 0 : i32
    %c0_i32_0 = arith.constant 0 : i32
    %c0_i32_1 = arith.constant 0 : i32
    return %c0_i32, %c0_i32_0 : i32, i32
  }
  func.func @transform_10(%arg0: i32) -> (i32, i32) {
    %c0_i32 = arith.constant 0 : i32
    %c0_i32_0 = arith.constant 0 : i32
    %c0_i32_1 = arith.constant 0 : i32
    return %c0_i32, %c0_i32_0 : i32, i32
  }
  func.func @transform_11(%arg0: i32) -> (i32, i32) {
    %c0_i32 = arith.constant 0 : i32
    %c0_i32_0 = arith.constant 0 : i32
    %c0_i32_1 = arith.constant 0 : i32
    return %c0_i32, %c0_i32_0 : i32, i32
  }
  func.func @transform_12(%arg0: i32) -> (i32, i32, i32) {
    %c0_i32 = arith.constant 0 : i32
    %c0_i32_0 = arith.constant 0 : i32
    %c0_i32_1 = arith.constant 0 : i32
    return %arg0, %c0_i32, %c0_i32_0 : i32, i32, i32
  }
}

</mosaic_0001>

<bundles_post_ra>
// kernel: tpu_custom_call.1
= control target key start
LH: loop header
LB: loop body
LE: loop exit
PB: predicated region body
PF: predicated region fallthrough
CT: control target
= control target key end

     0   :  { %s7158_s0 = inlined_call_operand.vmem [shape: f32[2,64], index: 0, kind: input, shape index: {}]   ;;  %s7159_s1 = inlined_call_operand.vmem [shape: f32[2,4096], index: 1, kind: input, shape index: {}]   ;;  %s7160_s2 = inlined_call_operand.vmem [shape: f32[2,1], index: 2, kind: input, shape index: {}]   ;;  %s7161_s3 = inlined_call_operand.vmem [shape: f32[64,2048], index: 3, kind: input, shape index: {}]   ;;  %s7162_s4 = inlined_call_operand.vmem [shape: f32[1,2048], index: 4, kind: input, shape index: {}]   ;;  %s7163_s5 = inlined_call_operand.vmem [shape: f32[512,1024], index: 5, kind: input, shape index: {}]   ;;  %s7164_s6 = inlined_call_operand.vmem [shape: f32[1,1024], index: 6, kind: input, shape index: {}]   ;;  %s7165_s7 = inlined_call_operand.vmem [shape: f32[256,128], index: 7, kind: input, shape index: {}]   ;;  %s7166_s8 = inlined_call_operand.vmem [shape: f32[1,128], index: 8, kind: input, shape index: {}]   ;;  %s7167_s9 = inlined_call_operand.vmem [shape: f32[128,1], index: 9, kind: input, shape index: {}]   ;;  %s7168_s10 = inlined_call_operand.<no memory space> [shape: f32[1,1], index: 10, kind: input, shape index: {}]   ;;  %s7169_s11 = inlined_call_operand.vmem [shape: f32[4096,64], index: 11, kind: input, shape index: {}]   ;;  %s7170_s12 = inlined_call_operand.hbm [shape: f32[1,8,128], index: 12, kind: output, shape index: {}]  }
   0x1   :  { %v17_v0 = vstv %s7168_s10 }
   0x2   :  { %18 = vst [vmem:[#allocation2] sm:$0x1] %v17_v0 }
   0x3   :  { %v68_v1 = vld [vmem:[%s7169_s11 + $0x78] sm:$0xff]  ;;  %v67_v5 = vld [vmem:[%s7169_s11 + $0x70] sm:$0xff]  ;;  %v66_v9 = vld [vmem:[%s7169_s11 + $0x68] sm:$0xff] }
   0x4   :  { %v84_v2 = vld [vmem:[%s7169_s11 + $0xf8] sm:$0xff]  ;;  %646 = vmatpush.msra.mxu0 %v68_v1  ;;  %v83_v6 = vld [vmem:[%s7169_s11 + $0xf0] sm:$0xff]  ;;  %v82_v10 = vld [vmem:[%s7169_s11 + $0xe8] sm:$0xff] }
   0x5   :  { %v100_v3 = vld [vmem:[%s7169_s11 + $0x178] sm:$0xff]  ;;  %666 = vmatpush.msra.mxu1 %v84_v2  ;;  %v99_v7 = vld [vmem:[%s7169_s11 + $0x170] sm:$0xff]  ;;  %v98_v11 = vld [vmem:[%s7169_s11 + $0x168] sm:$0xff] }
   0x6   :  { %v116_v4 = vld [vmem:[%s7169_s11 + $0x1f8] sm:$0xff]  ;;  %686 = vmatpush.msra.mxu2 %v100_v3  ;;  %v115_v8 = vld [vmem:[%s7169_s11 + $0x1f0] sm:$0xff]  ;;  %647 = vmatpush.msra.mxu0 %v67_v5  ;;  %v114_v12 = vld [vmem:[%s7169_s11 + $0x1e8] sm:$0xff] }
   0x7   :  { %706 = vmatpush.msra.mxu3 %v116_v4  ;;  %667 = vmatpush.msra.mxu1 %v83_v6  ;;  %v65_v13 = vld [vmem:[%s7169_s11 + $0x60] sm:$0xff]  ;;  %v64_v17 = vld [vmem:[%s7169_s11 + $0x58] sm:$0xff]  ;;  %v63_v21 = vld [vmem:[%s7169_s11 + $0x50] sm:$0xff] }
   0x8   :  { %687 = vmatpush.msra.mxu2 %v99_v7  ;;  %v81_v14 = vld [vmem:[%s7169_s11 + $0xe0] sm:$0xff]  ;;  %648 = vmatpush.msra.mxu0 %v66_v9  ;;  %v80_v18 = vld [vmem:[%s7169_s11 + $0xd8] sm:$0xff]  ;;  %v79_v22 = vld [vmem:[%s7169_s11 + $0xd0] sm:$0xff] }
   0x9   :  { %707 = vmatpush.msra.mxu3 %v115_v8  ;;  %668 = vmatpush.msra.mxu1 %v82_v10  ;;  %v97_v15 = vld [vmem:[%s7169_s11 + $0x160] sm:$0xff]  ;;  %v96_v19 = vld [vmem:[%s7169_s11 + $0x158] sm:$0xff]  ;;  %v95_v23 = vld [vmem:[%s7169_s11 + $0x150] sm:$0xff] }
   0xa   :  { %v113_v16 = vld [vmem:[%s7169_s11 + $0x1e0] sm:$0xff]  ;;  %688 = vmatpush.msra.mxu2 %v98_v11  ;;  %649 = vmatpush.msra.mxu0 %v65_v13  ;;  %v112_v20 = vld [vmem:[%s7169_s11 + $0x1d8] sm:$0xff]  ;;  %v111_v24 = vld [vmem:[%s7169_s11 + $0x1d0] sm:$0xff] }
   0xb   :  { %708 = vmatpush.msra.mxu3 %v114_v12  ;;  %669 = vmatpush.msra.mxu1 %v81_v14  ;;  %v62_v25 = vld [vmem:[%s7169_s11 + $0x48] sm:$0xff]  ;;  %v61_v29 = vld [vmem:[%s7169_s11 + $0x40] sm:$0xff]  ;;  %v60_v33 = vld [vmem:[%s7169_s11 + $0x38] sm:$0xff] }
   0xc   :  { %689 = vmatpush.msra.mxu2 %v97_v15  ;;  %650 = vmatpush.msra.mxu0 %v64_v17  ;;  %v78_v26 = vld [vmem:[%s7169_s11 + $0xc8] sm:$0xff]  ;;  %v77_v30 = vld [vmem:[%s7169_s11 + $0xc0] sm:$0xff]  ;;  %v76_v34 = vld [vmem:[%s7169_s11 + $0xb8] sm:$0xff] }
   0xd   :  { %709 = vmatpush.msra.mxu3 %v113_v16  ;;  %670 = vmatpush.msra.mxu1 %v80_v18  ;;  %v94_v27 = vld [vmem:[%s7169_s11 + $0x148] sm:$0xff]  ;;  %v93_v31 = vld [vmem:[%s7169_s11 + $0x140] sm:$0xff]  ;;  %v92_v35 = vld [vmem:[%s7169_s11 + $0x138] sm:$0xff] }
   0xe   :  { %690 = vmatpush.msra.mxu2 %v96_v19  ;;  %651 = vmatpush.msra.mxu0 %v63_v21  ;;  %v110_v28 = vld [vmem:[%s7169_s11 + $0x1c8] sm:$0xff]  ;;  %v109_v32 = vld [vmem:[%s7169_s11 + $0x1c0] sm:$0xff]  ;;  %v108_v36 = vld [vmem:[%s7169_s11 + $0x1b8] sm:$0xff] }
   0xf   :  { %710 = vmatpush.msra.mxu3 %v112_v20  ;;  %671 = vmatpush.msra.mxu1 %v79_v22  ;;  %v59_v37 = vld [vmem:[%s7169_s11 + $0x30] sm:$0xff]  ;;  %v58_v41 = vld [vmem:[%s7169_s11 + $0x28] sm:$0xff]  ;;  %v57_v45 = vld [vmem:[%s7169_s11 + $0x20] sm:$0xff] }
  0x10   :  { %691 = vmatpush.msra.mxu2 %v95_v23  ;;  %652 = vmatpush.msra.mxu0 %v62_v25  ;;  %v75_v38 = vld [vmem:[%s7169_s11 + $0xb0] sm:$0xff]  ;;  %v74_v42 = vld [vmem:[%s7169_s11 + $0xa8] sm:$0xff]  ;;  %v73_v46 = vld [vmem:[%s7169_s11 + $0xa0] sm:$0xff] }
  0x11   :  { %711 = vmatpush.msra.mxu3 %v111_v24  ;;  %672 = vmatpush.msra.mxu1 %v78_v26  ;;  %v91_v39 = vld [vmem:[%s7169_s11 + $0x130] sm:$0xff]  ;;  %v90_v43 = vld [vmem:[%s7169_s11 + $0x128] sm:$0xff]  ;;  %v89_v47 = vld [vmem:[%s7169_s11 + $0x120] sm:$0xff] }
  0x12   :  { %692 = vmatpush.msra.mxu2 %v94_v27  ;;  %653 = vmatpush.msra.mxu0 %v61_v29  ;;  %v107_v40 = vld [vmem:[%s7169_s11 + $0x1b0] sm:$0xff]  ;;  %v106_v44 = vld [vmem:[%s7169_s11 + $0x1a8] sm:$0xff]  ;;  %v105_v48 = vld [vmem:[%s7169_s11 + $0x1a0] sm:$0xff] }
  0x13   :  { %712 = vmatpush.msra.mxu3 %v110_v28  ;;  %673 = vmatpush.msra.mxu1 %v77_v30  ;;  %v56_v49 = vld [vmem:[%s7169_s11 + $0x18] sm:$0xff]  ;;  %v55_v53 = vld [vmem:[%s7169_s11 + $0x10] sm:$0xff]  ;;  %v54_v57 = vld [vmem:[%s7169_s11 + $0x8] sm:$0xff] }
  0x14   :  { %693 = vmatpush.msra.mxu2 %v93_v31  ;;  %654 = vmatpush.msra.mxu0 %v60_v33  ;;  %v72_v50 = vld [vmem:[%s7169_s11 + $0x98] sm:$0xff]  ;;  %v71_v54 = vld [vmem:[%s7169_s11 + $0x90] sm:$0xff]  ;;  %v70_v58 = vld [vmem:[%s7169_s11 + $0x88] sm:$0xff] }
  0x15   :  { %713 = vmatpush.msra.mxu3 %v109_v32  ;;  %674 = vmatpush.msra.mxu1 %v76_v34  ;;  %v88_v51 = vld [vmem:[%s7169_s11 + $0x118] sm:$0xff]  ;;  %v87_v55 = vld [vmem:[%s7169_s11 + $0x110] sm:$0xff]  ;;  %v86_v59 = vld [vmem:[%s7169_s11 + $0x108] sm:$0xff] }
  0x16   :  { %694 = vmatpush.msra.mxu2 %v92_v35  ;;  %655 = vmatpush.msra.mxu0 %v59_v37  ;;  %v104_v52 = vld [vmem:[%s7169_s11 + $0x198] sm:$0xff]  ;;  %v103_v56 = vld [vmem:[%s7169_s11 + $0x190] sm:$0xff]  ;;  %v102_v60 = vld [vmem:[%s7169_s11 + $0x188] sm:$0xff] }
  0x17   :  { %714 = vmatpush.msra.mxu3 %v108_v36  ;;  %675 = vmatpush.msra.mxu1 %v75_v38  ;;  %v53_v61 = vld [vmem:[%s7169_s11] sm:$0xff]  ;;  %v132_v1 = vld [vmem:[%s7169_s11 + $0x278] sm:$0xff]  ;;  %v131_v5 = vld [vmem:[%s7169_s11 + $0x270] sm:$0xff] }
  0x18   :  { %695 = vmatpush.msra.mxu2 %v91_v39  ;;  %656 = vmatpush.msra.mxu0 %v58_v41  ;;  %v69_v62 = vld [vmem:[%s7169_s11 + $0x80] sm:$0xff]  ;;  %v148_v2 = vld [vmem:[%s7169_s11 + $0x2f8] sm:$0xff]  ;;  %v147_v6 = vld [vmem:[%s7169_s11 + $0x2f0] sm:$0xff] }
  0x19   :  { %715 = vmatpush.msra.mxu3 %v107_v40  ;;  %676 = vmatpush.msra.mxu1 %v74_v42  ;;  %v85_v63 = vld [vmem:[%s7169_s11 + $0x100] sm:$0xff]  ;;  %v164_v3 = vld [vmem:[%s7169_s11 + $0x378] sm:$0xff]  ;;  %v163_v7 = vld [vmem:[%s7169_s11 + $0x370] sm:$0xff] }
  0x1a   :  { %696 = vmatpush.msra.mxu2 %v90_v43  ;;  %657 = vmatpush.msra.mxu0 %v57_v45  ;;  %v101_v0 = vld [vmem:[%s7169_s11 + $0x180] sm:$0xff]  ;;  %v180_v4 = vld [vmem:[%s7169_s11 + $0x3f8] sm:$0xff]  ;;  %v179_v8 = vld [vmem:[%s7169_s11 + $0x3f0] sm:$0xff] }
  0x1b   :  { %716 = vmatpush.msra.mxu3 %v106_v44  ;;  %677 = vmatpush.msra.mxu1 %v73_v46  ;;  %v130_v9 = vld [vmem:[%s7169_s11 + $0x268] sm:$0xff]  ;;  %v129_v13 = vld [vmem:[%s7169_s11 + $0x260] sm:$0xff]  ;;  %v128_v17 = vld [vmem:[%s7169_s11 + $0x258] sm:$0xff] }
  0x1c   :  { %697 = vmatpush.msra.mxu2 %v89_v47  ;;  %658 = vmatpush.msra.mxu0 %v56_v49  ;;  %v146_v10 = vld [vmem:[%s7169_s11 + $0x2e8] sm:$0xff]  ;;  %v145_v14 = vld [vmem:[%s7169_s11 + $0x2e0] sm:$0xff]  ;;  %v144_v18 = vld [vmem:[%s7169_s11 + $0x2d8] sm:$0xff] }
  0x1d   :  { %717 = vmatpush.msra.mxu3 %v105_v48  ;;  %678 = vmatpush.msra.mxu1 %v72_v50  ;;  %v162_v11 = vld [vmem:[%s7169_s11 + $0x368] sm:$0xff]  ;;  %v161_v15 = vld [vmem:[%s7169_s11 + $0x360] sm:$0xff]  ;;  %v160_v19 = vld [vmem:[%s7169_s11 + $0x358] sm:$0xff] }
  0x1e   :  { %698 = vmatpush.msra.mxu2 %v88_v51  ;;  %659 = vmatpush.msra.mxu0 %v55_v53  ;;  %v178_v12 = vld [vmem:[%s7169_s11 + $0x3e8] sm:$0xff]  ;;  %v177_v16 = vld [vmem:[%s7169_s11 + $0x3e0] sm:$0xff]  ;;  %v176_v20 = vld [vmem:[%s7169_s11 + $0x3d8] sm:$0xff] }
  0x1f   :  { %718 = vmatpush.msra.mxu3 %v104_v52  ;;  %679 = vmatpush.msra.mxu1 %v71_v54  ;;  %v127_v21 = vld [vmem:[%s7169_s11 + $0x250] sm:$0xff]  ;;  %v45_v25 = vld [vmem:[%s7159_s1] sm:$0xff]  ;;  %v126_v26 = vld [vmem:[%s7169_s11 + $0x248] sm:$0xff] }
  0x20   :  { %699 = vmatpush.msra.mxu2 %v87_v55  ;;  %660 = vmatpush.msra.mxu0 %v54_v57  ;;  %v143_v22 = vld [vmem:[%s7169_s11 + $0x2d0] sm:$0xff]  ;;  %v142_v27 = vld [vmem:[%s7169_s11 + $0x2c8] sm:$0xff]  ;;  %573 = vst [vmem:[#allocation1] ss:$4 sm:$0xff] %v45_v25  ;;  %v125_v30 = vld [vmem:[%s7169_s11 + $0x240] sm:$0xff] }
  0x21   :  { %719 = vmatpush.msra.mxu3 %v103_v56  ;;  %680 = vmatpush.msra.mxu1 %v70_v58  ;;  %v159_v23 = vld [vmem:[%s7169_s11 + $0x350] sm:$0xff]  ;;  %v158_v28 = vld [vmem:[%s7169_s11 + $0x348] sm:$0xff]  ;;  %v141_v31 = vld [vmem:[%s7169_s11 + $0x2c0] sm:$0xff] }
  0x22   :  { %700 = vmatpush.msra.mxu2 %v86_v59  ;;  %661 = vmatpush.msra.mxu0 %v53_v61  ;;  %v175_v24 = vld [vmem:[%s7169_s11 + $0x3d0] sm:$0xff]  ;;  %v174_v29 = vld [vmem:[%s7169_s11 + $0x3c8] sm:$0xff]  ;;  %v157_v32 = vld [vmem:[%s7169_s11 + $0x340] sm:$0xff] }
  0x23   :  { %720 = vmatpush.msra.mxu3 %v102_v60  ;;  %681 = vmatpush.msra.mxu1 %v69_v62  ;;  %v173_v33 = vld [vmem:[%s7169_s11 + $0x3c0] sm:$0xff]  ;;  %v124_v34 = vld [vmem:[%s7169_s11 + $0x238] sm:$0xff]  ;;  %v123_v38 = vld [vmem:[%s7169_s11 + $0x230] sm:$0xff] }
  0x24   :  { %701 = vmatpush.msra.mxu2 %v85_v63  ;;  %726 = vmatpush.msrb.mxu0 %v132_v1  ;;  %v140_v35 = vld [vmem:[%s7169_s11 + $0x2b8] sm:$0xff]  ;;  %v139_v39 = vld [vmem:[%s7169_s11 + $0x2b0] sm:$0xff]  ;;  %v46_v42 = vld [vmem:[%s7159_s1 + $0x8] sm:$0xff] }
  0x25   :  { %721 = vmatpush.msra.mxu3 %v101_v0  ;;  %746 = vmatpush.msrb.mxu1 %v148_v2  ;;  %v156_v36 = vld [vmem:[%s7169_s11 + $0x338] sm:$0xff]  ;;  %v155_v40 = vld [vmem:[%s7169_s11 + $0x330] sm:$0xff]  ;;  %v122_v43 = vld [vmem:[%s7169_s11 + $0x228] sm:$0xff]  ;;  %575 = vst [vmem:[#allocation1 + $0x20] ss:$4 sm:$0xff] %v46_v42 }
  0x26   :  { %766 = vmatpush.msrb.mxu2 %v164_v3  ;;  %727 = vmatpush.msrb.mxu0 %v131_v5  ;;  %v172_v37 = vld [vmem:[%s7169_s11 + $0x3b8] sm:$0xff]  ;;  %v171_v41 = vld [vmem:[%s7169_s11 + $0x3b0] sm:$0xff]  ;;  %v138_v44 = vld [vmem:[%s7169_s11 + $0x2a8] sm:$0xff] }
  0x27   :  { %786 = vmatpush.msrb.mxu3 %v180_v4  ;;  %747 = vmatpush.msrb.mxu1 %v147_v6  ;;  %v47_v45 = vld [vmem:[%s7159_s1 + $0x10] sm:$0xff]  ;;  %v154_v46 = vld [vmem:[%s7169_s11 + $0x328] sm:$0xff]  ;;  %v3645_v48 = vld.sshfl [vmem:[#allocation1] sm:$0xff pattern:$0x73625140] }
  0x28   :  { %767 = vmatpush.msrb.mxu2 %v163_v7  ;;  %728 = vmatpush.msrb.mxu0 %v130_v9  ;;  %v578_v47 = vld.sshfl [vmem:[#allocation1 + $0x10] sm:$0xff pattern:$0x73625140]  ;;  %v3647_v49 = vld.sshfl [vmem:[#allocation1 + $0x8] sm:$0xff pattern:$0x73625140] }
  0x29   :  { %787 = vmatpush.msrb.mxu3 %v179_v8  ;;  %748 = vmatpush.msrb.mxu1 %v146_v10  ;;  %v3649_v50 = vld.sshfl [vmem:[#allocation1 + $0x18] sm:$0xff pattern:$0x73625140]  ;;  %v170_v51 = vld [vmem:[%s7169_s11 + $0x3a8] sm:$0xff]  ;;  %v121_v52 = vld [vmem:[%s7169_s11 + $0x220] sm:$0xff] }
  0x2a   :  { %768 = vmatpush.msrb.mxu2 %v162_v11  ;;  %729 = vmatpush.msrb.mxu0 %v129_v13  ;;  %v137_v53 = vld [vmem:[%s7169_s11 + $0x2a0] sm:$0xff]  ;;  %584 = vst [vmem:[#allocation1] ss:$4 sm:$0xff] %v47_v45  ;;  %v120_v56 = vld [vmem:[%s7169_s11 + $0x218] sm:$0xff]  ;;  %v119_v60 = vld [vmem:[%s7169_s11 + $0x210] sm:$0xff] }
  0x2b   :  { %788 = vmatpush.msrb.mxu3 %v178_v12  ;;  %749 = vmatpush.msrb.mxu1 %v145_v14  ;;  %v153_v54 = vld [vmem:[%s7169_s11 + $0x320] sm:$0xff]  ;;  %v136_v57 = vld [vmem:[%s7169_s11 + $0x298] sm:$0xff]  ;;  %v135_v61 = vld [vmem:[%s7169_s11 + $0x290] sm:$0xff] }
  0x2c   :  { %769 = vmatpush.msrb.mxu2 %v161_v15  ;;  %730 = vmatpush.msrb.mxu0 %v128_v17  ;;  %v169_v55 = vld [vmem:[%s7169_s11 + $0x3a0] sm:$0xff]  ;;  %v152_v58 = vld [vmem:[%s7169_s11 + $0x318] sm:$0xff]  ;;  %v3687_v63 = vld.sshfl [vmem:[#allocation1 + $0x30] sm:$0xff pattern:$0x73625140] }
  0x2d   :  { %789 = vmatpush.msrb.mxu3 %v177_v16  ;;  %750 = vmatpush.msrb.mxu1 %v144_v18  ;;  %v168_v59 = vld [vmem:[%s7169_s11 + $0x398] sm:$0xff]  ;;  %v3689_v0 = vld.sshfl [vmem:[#allocation1 + $0x20] sm:$0xff pattern:$0x73625140]  ;;  %v151_v3 = vld [vmem:[%s7169_s11 + $0x310] sm:$0xff] }
  0x2e   :  { %770 = vmatpush.msrb.mxu2 %v160_v19  ;;  %731 = vmatpush.msrb.mxu0 %v127_v21  ;;  %v48_v62 = vld [vmem:[%s7159_s1 + $0x18] sm:$0xff]  ;;  %v3693_v2 = vld.sshfl [vmem:[#allocation1 + $0x28] sm:$0xff pattern:$0x73625140]  ;;  %v167_v4 = vld [vmem:[%s7169_s11 + $0x390] sm:$0xff] }
  0x2f   :  { %790 = vmatpush.msrb.mxu3 %v176_v20  ;;  %751 = vmatpush.msrb.mxu1 %v143_v22  ;;  %v3691_v1 = vld.sshfl [vmem:[#allocation1 + $0x38] sm:$0xff pattern:$0x73625140]  ;;  %v118_v5 = vld [vmem:[%s7169_s11 + $0x208] sm:$0xff]  ;;  %v117_v9 = vld [vmem:[%s7169_s11 + $0x200] sm:$0xff] }
  0x30   :  { %771 = vmatpush.msrb.mxu2 %v159_v23  ;;  %732 = vmatpush.msrb.mxu0 %v126_v26  ;;  %585 = vst [vmem:[#allocation1 + $0x20] ss:$4 sm:$0xff] %v48_v62  ;;  %v134_v6 = vld [vmem:[%s7169_s11 + $0x288] sm:$0xff]  ;;  %v133_v10 = vld [vmem:[%s7169_s11 + $0x280] sm:$0xff]  ;;  %v196_v13 = vld [vmem:[%s7169_s11 + $0x478] sm:$0xff] }
  0x31   :  { %791 = vmatpush.msrb.mxu3 %v175_v24  ;;  %752 = vmatpush.msrb.mxu1 %v142_v27  ;;  %v150_v7 = vld [vmem:[%s7169_s11 + $0x308] sm:$0xff]  ;;  %v149_v11 = vld [vmem:[%s7169_s11 + $0x300] sm:$0xff]  ;;  %v212_v14 = vld [vmem:[%s7169_s11 + $0x4f8] sm:$0xff] }
  0x32   :  { %772 = vmatpush.msrb.mxu2 %v158_v28  ;;  %733 = vmatpush.msrb.mxu0 %v125_v30  ;;  %v166_v8 = vld [vmem:[%s7169_s11 + $0x388] sm:$0xff]  ;;  %v165_v12 = vld [vmem:[%s7169_s11 + $0x380] sm:$0xff]  ;;  %v228_v15 = vld [vmem:[%s7169_s11 + $0x578] sm:$0xff] }
  0x33   :  { %792 = vmatpush.msrb.mxu3 %v174_v29  ;;  %753 = vmatpush.msrb.mxu1 %v141_v31  ;;  %v244_v16 = vld [vmem:[%s7169_s11 + $0x5f8] sm:$0xff]  ;;  %v195_v17 = vld [vmem:[%s7169_s11 + $0x470] sm:$0xff]  ;;  %v194_v21 = vld [vmem:[%s7169_s11 + $0x468] sm:$0xff] }
  0x34   :  { %773 = vmatpush.msrb.mxu2 %v157_v32  ;;  %734 = vmatpush.msrb.mxu0 %v124_v34  ;;  %v211_v18 = vld [vmem:[%s7169_s11 + $0x4f0] sm:$0xff]  ;;  %v210_v22 = vld [vmem:[%s7169_s11 + $0x4e8] sm:$0xff]  ;;  %v193_v25 = vld [vmem:[%s7169_s11 + $0x460] sm:$0xff] }
  0x35   :  { %793 = vmatpush.msrb.mxu3 %v173_v33  ;;  %754 = vmatpush.msrb.mxu1 %v140_v35  ;;  %v227_v19 = vld [vmem:[%s7169_s11 + $0x570] sm:$0xff]  ;;  %v226_v23 = vld [vmem:[%s7169_s11 + $0x568] sm:$0xff]  ;;  %v209_v26 = vld [vmem:[%s7169_s11 + $0x4e0] sm:$0xff] }
  0x36   :  { %774 = vmatpush.msrb.mxu2 %v156_v36  ;;  %735 = vmatpush.msrb.mxu0 %v123_v38  ;;  %v243_v20 = vld [vmem:[%s7169_s11 + $0x5f0] sm:$0xff]  ;;  %v242_v24 = vld [vmem:[%s7169_s11 + $0x5e8] sm:$0xff]  ;;  %v3770_v27 = vld.sshfl [vmem:[#allocation1] sm:$0xff pattern:$0x73625140] }
  0x37   :  { %794 = vmatpush.msrb.mxu3 %v172_v37  ;;  %755 = vmatpush.msrb.mxu1 %v139_v39  ;;  %v3772_v28 = vld.sshfl [vmem:[#allocation1 + $0x10] sm:$0xff pattern:$0x73625140]  ;;  %v225_v29 = vld [vmem:[%s7169_s11 + $0x560] sm:$0xff]  ;;  %v192_v34 = vld [vmem:[%s7169_s11 + $0x458] sm:$0xff] }
  0x38   :  { %775 = vmatpush.msrb.mxu2 %v155_v40  ;;  %736 = vmatpush.msrb.mxu0 %v122_v43  ;;  %v3777_v30 = vld.sshfl [vmem:[#allocation1 + $0x8] sm:$0xff pattern:$0x73625140]  ;;  %v241_v31 = vld [vmem:[%s7169_s11 + $0x5e0] sm:$0xff]  ;;  %v208_v35 = vld [vmem:[%s7169_s11 + $0x4d8] sm:$0xff] }
  0x39   :  { %795 = vmatpush.msrb.mxu3 %v171_v41  ;;  %756 = vmatpush.msrb.mxu1 %v138_v44  ;;  %v49_v32 = vld [vmem:[%s7159_s1 + $0x20] sm:$0xff]  ;;  %v3785_v33 = vld.sshfl [vmem:[#allocation1 + $0x18] sm:$0xff pattern:$0x73625140] }
  0x3a   :  { %776 = vmatpush.msrb.mxu2 %v154_v46  ;;  %737 = vmatpush.msrb.mxu0 %v121_v52  ;;  %594 = vst [vmem:[#allocation1] ss:$4 sm:$0xff] %v49_v32  ;;  %v224_v36 = vld [vmem:[%s7169_s11 + $0x558] sm:$0xff] }
  0x3b   :  { %796 = vmatpush.msrb.mxu3 %v170_v51  ;;  %757 = vmatpush.msrb.mxu1 %v137_v53 }
  0x3c   :  { %777 = vmatpush.msrb.mxu2 %v153_v54  ;;  %738 = vmatpush.msrb.mxu0 %v120_v56 }
  0x3d   :  { %797 = vmatpush.msrb.mxu3 %v169_v55  ;;  %758 = vmatpush.msrb.mxu1 %v136_v57 }
  0x3e   :  { %778 = vmatpush.msrb.mxu2 %v152_v58  ;;  %739 = vmatpush.msrb.mxu0 %v119_v60 }
  0x3f   :  { %798 = vmatpush.msrb.mxu3 %v168_v59  ;;  %759 = vmatpush.msrb.mxu1 %v135_v61 }
  0x40   :  { %779 = vmatpush.msrb.mxu2 %v151_v3  ;;  %740 = vmatpush.msrb.mxu0 %v118_v5 }
  0x41   :  { %799 = vmatpush.msrb.mxu3 %v167_v4  ;;  %760 = vmatpush.msrb.mxu1 %v134_v6 }
  0x42   :  { %780 = vmatpush.msrb.mxu2 %v150_v7  ;;  %741 = vmatpush.msrb.mxu0 %v117_v9 }
  0x43   :  { %800 = vmatpush.msrb.mxu3 %v166_v8  ;;  %702 = vmatmul.f32.vlgmr.msra.gmra.mxu2 %v578_v47 }
  0x44   :  { %761 = vmatpush.msrb.mxu1 %v133_v10  ;;  %781 = vmatpush.msrb.mxu2 %v149_v11 }
  0x45   :  { %801 = vmatpush.msrb.mxu3 %v165_v12  ;;  %662 = vmatmul.f32.vlgmr.msra.gmra.mxu0 %v3645_v48 }
  0x46   :  { %682 = vmatmul.f32.vlgmr.msra.gmra.mxu1 %v3647_v49  ;;  %722 = vmatmul.f32.vlgmr.msra.gmra.mxu3 %v3649_v50 }
  0x47   :  { %806 = vmatpush.msra.mxu0 %v196_v13  ;;  %826 = vmatpush.msra.mxu1 %v212_v14 }
  0x48   :  { %846 = vmatpush.msra.mxu2 %v228_v15  ;;  %866 = vmatpush.msra.mxu3 %v244_v16 }
  0x49   :  { %807 = vmatpush.msra.mxu0 %v195_v17  ;;  %827 = vmatpush.msra.mxu1 %v211_v18 }
  0x4a   :  { %847 = vmatpush.msra.mxu2 %v227_v19  ;;  %867 = vmatpush.msra.mxu3 %v243_v20 }
  0x4b   :  { %808 = vmatpush.msra.mxu0 %v194_v21  ;;  %828 = vmatpush.msra.mxu1 %v210_v22 }
  0x4c   :  { %848 = vmatpush.msra.mxu2 %v226_v23  ;;  %868 = vmatpush.msra.mxu3 %v242_v24 }
  0x4d   :  { %782 = vmatmul.f32.vlgmr.msrb.gmra.mxu2 %v3687_v63  ;;  %809 = vmatpush.msra.mxu0 %v193_v25 }
  0x4e   :  { %829 = vmatpush.msra.mxu1 %v209_v26  ;;  %849 = vmatpush.msra.mxu2 %v225_v29 }
  0x4f   :  { %19 = vsyncpa [#allocation4], 0  ;;  %869 = vmatpush.msra.mxu3 %v241_v31  ;;  %742 = vmatmul.f32.vlgmr.msrb.gmra.mxu0 %v3689_v0  ;;  %v240_v37 = vld [vmem:[%s7169_s11 + $0x5d8] sm:$0xff]  ;;  %v191_v38 = vld [vmem:[%s7169_s11 + $0x450] sm:$0xff]  ;;  %vm1463_vm0 = vcmask 523264   ;;  %vm1288_vm1 = vcmask 517120  }
  0x50   :  { %802 = vmatmul.f32.vlgmr.msrb.gmra.mxu3 %v3691_v1  ;;  %810 = vmatpush.msra.mxu0 %v192_v34  ;;  %v207_v39 = vld [vmem:[%s7169_s11 + $0x4d0] sm:$0xff]  ;;  %v190_v42 = vld [vmem:[%s7169_s11 + $0x448] sm:$0xff]  ;;  %v189_v46 = vld [vmem:[%s7169_s11 + $0x440] sm:$0xff]  ;;  %vm3141_vm6 = vcmask 1024   ;;  %s3246_s19 = smov [#allocation3]   ;;  %s3178_s23 = sshll.u32 %s7170_s12, 4  ;;  %s3179_s23 = int_to_ptr.hbm [resolvable:$true] %s3178_s23 }
  0x51   :  { %830 = vmatpush.msra.mxu1 %v208_v35  ;;  %850 = vmatpush.msra.mxu2 %v224_v36  ;;  %v223_v40 = vld [vmem:[%s7169_s11 + $0x550] sm:$0xff]  ;;  %v206_v43 = vld [vmem:[%s7169_s11 + $0x4c8] sm:$0xff]  ;;  %v205_v47 = vld [vmem:[%s7169_s11 + $0x4c0] sm:$0xff]  ;;  %s3176_s20 = sshll.u32 %s3246_s19, 4  ;;  %s3177_s20 = int_to_ptr.vmem [resolvable:$true] %s3176_s20 }
  0x52   :  { %v239_v41 = vld [vmem:[%s7169_s11 + $0x5d0] sm:$0xff]  ;;  %870 = vmatpush.msra.mxu3 %v240_v37  ;;  %762 = vmatmul.f32.vlgmr.msrb.gmra.mxu1 %v3693_v2  ;;  %v222_v44 = vld [vmem:[%s7169_s11 + $0x548] sm:$0xff]  ;;  %v221_v48 = vld [vmem:[%s7169_s11 + $0x540] sm:$0xff] }
  0x53   :  { %811 = vmatpush.msra.mxu0 %v191_v38  ;;  %831 = vmatpush.msra.mxu1 %v207_v39  ;;  %v238_v45 = vld [vmem:[%s7169_s11 + $0x5c8] sm:$0xff]  ;;  %v237_v49 = vld [vmem:[%s7169_s11 + $0x5c0] sm:$0xff]  ;;  %v188_v50 = vld [vmem:[%s7169_s11 + $0x438] sm:$0xff] }
  0x54   :  { %851 = vmatpush.msra.mxu2 %v223_v40  ;;  %871 = vmatpush.msra.mxu3 %v239_v41  ;;  %v204_v51 = vld [vmem:[%s7169_s11 + $0x4b8] sm:$0xff]  ;;  %v187_v54 = vld [vmem:[%s7169_s11 + $0x430] sm:$0xff]  ;;  %v186_v58 = vld [vmem:[%s7169_s11 + $0x428] sm:$0xff] }
  0x55   :  { %812 = vmatpush.msra.mxu0 %v190_v42  ;;  %832 = vmatpush.msra.mxu1 %v206_v43  ;;  %v220_v52 = vld [vmem:[%s7169_s11 + $0x538] sm:$0xff]  ;;  %v203_v55 = vld [vmem:[%s7169_s11 + $0x4b0] sm:$0xff]  ;;  %v202_v59 = vld [vmem:[%s7169_s11 + $0x4a8] sm:$0xff] }
  0x56   :  { %852 = vmatpush.msra.mxu2 %v222_v44  ;;  %872 = vmatpush.msra.mxu3 %v238_v45  ;;  %v236_v53 = vld [vmem:[%s7169_s11 + $0x5b8] sm:$0xff]  ;;  %v219_v56 = vld [vmem:[%s7169_s11 + $0x530] sm:$0xff]  ;;  %v218_v60 = vld [vmem:[%s7169_s11 + $0x528] sm:$0xff] }
  0x57   :  { %813 = vmatpush.msra.mxu0 %v189_v46  ;;  %833 = vmatpush.msra.mxu1 %v205_v47  ;;  %v235_v57 = vld [vmem:[%s7169_s11 + $0x5b0] sm:$0xff]  ;;  %v234_v61 = vld [vmem:[%s7169_s11 + $0x5a8] sm:$0xff]  ;;  %v185_v62 = vld [vmem:[%s7169_s11 + $0x420] sm:$0xff] }
  0x58   :  { %853 = vmatpush.msra.mxu2 %v221_v48  ;;  %873 = vmatpush.msra.mxu3 %v237_v49  ;;  %v201_v63 = vld [vmem:[%s7169_s11 + $0x4a0] sm:$0xff]  ;;  %v184_v2 = vld [vmem:[%s7169_s11 + $0x418] sm:$0xff]  ;;  %v183_v6 = vld [vmem:[%s7169_s11 + $0x410] sm:$0xff] }
  0x59   :  { %814 = vmatpush.msra.mxu0 %v188_v50  ;;  %834 = vmatpush.msra.mxu1 %v204_v51  ;;  %v217_v0 = vld [vmem:[%s7169_s11 + $0x520] sm:$0xff]  ;;  %v200_v3 = vld [vmem:[%s7169_s11 + $0x498] sm:$0xff]  ;;  %v199_v7 = vld [vmem:[%s7169_s11 + $0x490] sm:$0xff] }
  0x5a   :  { %854 = vmatpush.msra.mxu2 %v220_v52  ;;  %874 = vmatpush.msra.mxu3 %v236_v53  ;;  %v233_v1 = vld [vmem:[%s7169_s11 + $0x5a0] sm:$0xff]  ;;  %v216_v4 = vld [vmem:[%s7169_s11 + $0x518] sm:$0xff]  ;;  %v215_v8 = vld [vmem:[%s7169_s11 + $0x510] sm:$0xff] }
  0x5b   :  { %815 = vmatpush.msra.mxu0 %v187_v54  ;;  %835 = vmatpush.msra.mxu1 %v203_v55  ;;  %v232_v5 = vld [vmem:[%s7169_s11 + $0x598] sm:$0xff]  ;;  %v231_v9 = vld [vmem:[%s7169_s11 + $0x590] sm:$0xff]  ;;  %v182_v10 = vld [vmem:[%s7169_s11 + $0x408] sm:$0xff] }
  0x5c   :  { %855 = vmatpush.msra.mxu2 %v219_v56  ;;  %875 = vmatpush.msra.mxu3 %v235_v57  ;;  %v198_v11 = vld [vmem:[%s7169_s11 + $0x488] sm:$0xff]  ;;  %v181_v14 = vld [vmem:[%s7169_s11 + $0x400] sm:$0xff]  ;;  %v260_v18 = vld [vmem:[%s7169_s11 + $0x678] sm:$0xff] }
  0x5d   :  { %816 = vmatpush.msra.mxu0 %v186_v58  ;;  %836 = vmatpush.msra.mxu1 %v202_v59  ;;  %v214_v12 = vld [vmem:[%s7169_s11 + $0x508] sm:$0xff]  ;;  %v197_v15 = vld [vmem:[%s7169_s11 + $0x480] sm:$0xff]  ;;  %v276_v19 = vld [vmem:[%s7169_s11 + $0x6f8] sm:$0xff] }
  0x5e   :  { %856 = vmatpush.msra.mxu2 %v218_v60  ;;  %876 = vmatpush.msra.mxu3 %v234_v61  ;;  %v230_v13 = vld [vmem:[%s7169_s11 + $0x588] sm:$0xff]  ;;  %v213_v16 = vld [vmem:[%s7169_s11 + $0x500] sm:$0xff]  ;;  %v292_v20 = vld [vmem:[%s7169_s11 + $0x778] sm:$0xff] }
  0x5f   :  { %817 = vmatpush.msra.mxu0 %v185_v62  ;;  %837 = vmatpush.msra.mxu1 %v201_v63  ;;  %v229_v17 = vld [vmem:[%s7169_s11 + $0x580] sm:$0xff]  ;;  %v308_v21 = vld [vmem:[%s7169_s11 + $0x7f8] sm:$0xff]  ;;  %v259_v22 = vld [vmem:[%s7169_s11 + $0x670] sm:$0xff] }
  0x60   :  { %857 = vmatpush.msra.mxu2 %v217_v0  ;;  %877 = vmatpush.msra.mxu3 %v233_v1  ;;  %v275_v23 = vld [vmem:[%s7169_s11 + $0x6f0] sm:$0xff]  ;;  %v258_v26 = vld [vmem:[%s7169_s11 + $0x668] sm:$0xff]  ;;  %v257_v31 = vld [vmem:[%s7169_s11 + $0x660] sm:$0xff] }
  0x61   :  { %818 = vmatpush.msra.mxu0 %v184_v2  ;;  %838 = vmatpush.msra.mxu1 %v200_v3  ;;  %v291_v24 = vld [vmem:[%s7169_s11 + $0x770] sm:$0xff]  ;;  %v306_v29 = vld [vmem:[%s7169_s11 + $0x7e8] sm:$0xff]  ;;  %v3978_v32 = vld.sshfl [vmem:[#allocation1 + $0x20] sm:$0xff pattern:$0x73625140] }
  0x62   :  { %858 = vmatpush.msra.mxu2 %v216_v4  ;;  %878 = vmatpush.msra.mxu3 %v232_v5  ;;  %v307_v25 = vld [vmem:[%s7169_s11 + $0x7f0] sm:$0xff]  ;;  %v3982_v35 = vld.sshfl [vmem:[#allocation1 + $0x28] sm:$0xff pattern:$0x73625140]  ;;  %v289_v37 = vld [vmem:[%s7169_s11 + $0x760] sm:$0xff] }
  0x63   :  { %819 = vmatpush.msra.mxu0 %v183_v6  ;;  %839 = vmatpush.msra.mxu1 %v199_v7  ;;  %v3980_v34 = vld.sshfl [vmem:[#allocation1 + $0x30] sm:$0xff pattern:$0x73625140]  ;;  %v3990_v36 = vld.sshfl [vmem:[#allocation1 + $0x38] sm:$0xff pattern:$0x73625140] }
  0x64   :  { %859 = vmatpush.msra.mxu2 %v215_v8  ;;  %879 = vmatpush.msra.mxu3 %v231_v9  ;;  %v305_v38 = vld [vmem:[%s7169_s11 + $0x7e0] sm:$0xff]  ;;  %v256_v39 = vld [vmem:[%s7169_s11 + $0x658] sm:$0xff]  ;;  %v255_v43 = vld [vmem:[%s7169_s11 + $0x650] sm:$0xff] }
  0x65   :  { %820 = vmatpush.msra.mxu0 %v182_v10  ;;  %840 = vmatpush.msra.mxu1 %v198_v11  ;;  %v272_v40 = vld [vmem:[%s7169_s11 + $0x6d8] sm:$0xff]  ;;  %v271_v44 = vld [vmem:[%s7169_s11 + $0x6d0] sm:$0xff]  ;;  %v254_v47 = vld [vmem:[%s7169_s11 + $0x648] sm:$0xff] }
  0x66   :  { %860 = vmatpush.msra.mxu2 %v214_v12  ;;  %880 = vmatpush.msra.mxu3 %v230_v13  ;;  %v288_v41 = vld [vmem:[%s7169_s11 + $0x758] sm:$0xff]  ;;  %v287_v45 = vld [vmem:[%s7169_s11 + $0x750] sm:$0xff]  ;;  %v270_v48 = vld [vmem:[%s7169_s11 + $0x6c8] sm:$0xff] }
  0x67   :  { %821 = vmatpush.msra.mxu0 %v181_v14  ;;  %841 = vmatpush.msra.mxu1 %v197_v15  ;;  %v304_v42 = vld [vmem:[%s7169_s11 + $0x7d8] sm:$0xff]  ;;  %v303_v46 = vld [vmem:[%s7169_s11 + $0x7d0] sm:$0xff]  ;;  %v286_v49 = vld [vmem:[%s7169_s11 + $0x748] sm:$0xff] }
  0x68   :  { %861 = vmatpush.msra.mxu2 %v213_v16  ;;  %881 = vmatpush.msra.mxu3 %v229_v17  ;;  %v302_v50 = vld [vmem:[%s7169_s11 + $0x7c8] sm:$0xff]  ;;  %v253_v51 = vld [vmem:[%s7169_s11 + $0x640] sm:$0xff]  ;;  %v252_v55 = vld [vmem:[%s7169_s11 + $0x638] sm:$0xff] }
  0x69   :  { %822 = vmatmul.f32.vlgmr.msra.gmra.mxu0 %v3770_v27  ;;  %862 = vmatmul.f32.vlgmr.msra.gmra.mxu2 %v3772_v28  ;;  %v274_v27 = vld [vmem:[%s7169_s11 + $0x6e8] sm:$0xff]  ;;  %v269_v52 = vld [vmem:[%s7169_s11 + $0x6c0] sm:$0xff]  ;;  %v268_v56 = vld [vmem:[%s7169_s11 + $0x6b8] sm:$0xff] }
  0x6a   :  { %886 = vmatpush.msrb.mxu0 %v260_v18  ;;  %906 = vmatpush.msrb.mxu1 %v276_v19  ;;  %v290_v28 = vld [vmem:[%s7169_s11 + $0x768] sm:$0xff]  ;;  %v285_v53 = vld [vmem:[%s7169_s11 + $0x740] sm:$0xff]  ;;  %v284_v57 = vld [vmem:[%s7169_s11 + $0x738] sm:$0xff] }
  0x6b   :  { %926 = vmatpush.msrb.mxu2 %v292_v20  ;;  %946 = vmatpush.msrb.mxu3 %v308_v21  ;;  %v301_v54 = vld [vmem:[%s7169_s11 + $0x7c0] sm:$0xff]  ;;  %v300_v58 = vld [vmem:[%s7169_s11 + $0x7b8] sm:$0xff]  ;;  %v251_v59 = vld [vmem:[%s7169_s11 + $0x630] sm:$0xff] }
  0x6c   :  { %842 = vmatmul.f32.vlgmr.msra.gmra.mxu1 %v3777_v30  ;;  %882 = vmatmul.f32.vlgmr.msra.gmra.mxu3 %v3785_v33  ;;  %v273_v30 = vld [vmem:[%s7169_s11 + $0x6e0] sm:$0xff]  ;;  %v50_v33 = vld [vmem:[%s7159_s1 + $0x28] sm:$0xff]  ;;  %v267_v60 = vld [vmem:[%s7169_s11 + $0x6b0] sm:$0xff] }
  0x6d   :  { %887 = vmatpush.msrb.mxu0 %v259_v22  ;;  %907 = vmatpush.msrb.mxu1 %v275_v23  ;;  %595 = vst [vmem:[#allocation1 + $0x20] ss:$4 sm:$0xff] %v50_v33  ;;  %v283_v61 = vld [vmem:[%s7169_s11 + $0x730] sm:$0xff]  ;;  %v250_v63 = vld [vmem:[%s7169_s11 + $0x628] sm:$0xff]  ;;  %v249_v3 = vld [vmem:[%s7169_s11 + $0x620] sm:$0xff] }
  0x6e   :  { %927 = vmatpush.msrb.mxu2 %v291_v24  ;;  %947 = vmatpush.msrb.mxu3 %v307_v25  ;;  %v299_v62 = vld [vmem:[%s7169_s11 + $0x7b0] sm:$0xff]  ;;  %v266_v0 = vld [vmem:[%s7169_s11 + $0x6a8] sm:$0xff]  ;;  %v265_v4 = vld [vmem:[%s7169_s11 + $0x6a0] sm:$0xff] }
  0x6f   :  { %888 = vmatpush.msrb.mxu0 %v258_v26  ;;  %908 = vmatpush.msrb.mxu1 %v274_v27  ;;  %v282_v1 = vld [vmem:[%s7169_s11 + $0x728] sm:$0xff]  ;;  %v281_v5 = vld [vmem:[%s7169_s11 + $0x720] sm:$0xff]  ;;  %v248_v7 = vld [vmem:[%s7169_s11 + $0x618] sm:$0xff] }
  0x70   :  { %928 = vmatpush.msrb.mxu2 %v290_v28  ;;  %948 = vmatpush.msrb.mxu3 %v306_v29  ;;  %v298_v2 = vld [vmem:[%s7169_s11 + $0x7a8] sm:$0xff]  ;;  %v297_v6 = vld [vmem:[%s7169_s11 + $0x7a0] sm:$0xff]  ;;  %v264_v8 = vld [vmem:[%s7169_s11 + $0x698] sm:$0xff] }
  0x71   :  { %889 = vmatpush.msrb.mxu0 %v257_v31  ;;  %909 = vmatpush.msrb.mxu1 %v273_v30  ;;  %v280_v9 = vld [vmem:[%s7169_s11 + $0x718] sm:$0xff]  ;;  %v247_v11 = vld [vmem:[%s7169_s11 + $0x610] sm:$0xff]  ;;  %v246_v15 = vld [vmem:[%s7169_s11 + $0x608] sm:$0xff] }
  0x72   :  { %929 = vmatpush.msrb.mxu2 %v289_v37  ;;  %949 = vmatpush.msrb.mxu3 %v305_v38  ;;  %v296_v10 = vld [vmem:[%s7169_s11 + $0x798] sm:$0xff]  ;;  %v263_v12 = vld [vmem:[%s7169_s11 + $0x690] sm:$0xff]  ;;  %v262_v16 = vld [vmem:[%s7169_s11 + $0x688] sm:$0xff] }
  0x73   :  { %890 = vmatpush.msrb.mxu0 %v256_v39  ;;  %910 = vmatpush.msrb.mxu1 %v272_v40  ;;  %v279_v13 = vld [vmem:[%s7169_s11 + $0x710] sm:$0xff]  ;;  %v278_v17 = vld [vmem:[%s7169_s11 + $0x708] sm:$0xff]  ;;  %v245_v19 = vld [vmem:[%s7169_s11 + $0x600] sm:$0xff] }
  0x74   :  { %930 = vmatpush.msrb.mxu2 %v288_v41  ;;  %950 = vmatpush.msrb.mxu3 %v304_v42  ;;  %v295_v14 = vld [vmem:[%s7169_s11 + $0x790] sm:$0xff]  ;;  %v294_v18 = vld [vmem:[%s7169_s11 + $0x788] sm:$0xff]  ;;  %v261_v20 = vld [vmem:[%s7169_s11 + $0x680] sm:$0xff] }
  0x75   :  { %891 = vmatpush.msrb.mxu0 %v255_v43  ;;  %911 = vmatpush.msrb.mxu1 %v271_v44  ;;  %v277_v21 = vld [vmem:[%s7169_s11 + $0x700] sm:$0xff]  ;;  %v324_v23 = vld [vmem:[%s7169_s11 + $0x878] sm:$0xff]  ;;  %v323_v27 = vld [vmem:[%s7169_s11 + $0x870] sm:$0xff] }
  0x76   :  { %931 = vmatpush.msrb.mxu2 %v287_v45  ;;  %951 = vmatpush.msrb.mxu3 %v303_v46  ;;  %v293_v22 = vld [vmem:[%s7169_s11 + $0x780] sm:$0xff]  ;;  %v340_v24 = vld [vmem:[%s7169_s11 + $0x8f8] sm:$0xff]  ;;  %v339_v28 = vld [vmem:[%s7169_s11 + $0x8f0] sm:$0xff] }
  0x77   :  { %892 = vmatpush.msrb.mxu0 %v254_v47  ;;  %912 = vmatpush.msrb.mxu1 %v270_v48  ;;  %v356_v25 = vld [vmem:[%s7169_s11 + $0x978] sm:$0xff]  ;;  %v355_v29 = vld [vmem:[%s7169_s11 + $0x970] sm:$0xff]  ;;  %v354_v30 = vld [vmem:[%s7169_s11 + $0x968] sm:$0xff] }
  0x78   :  { %932 = vmatpush.msrb.mxu2 %v286_v49  ;;  %952 = vmatpush.msrb.mxu3 %v302_v50  ;;  %v372_v26 = vld [vmem:[%s7169_s11 + $0x9f8] sm:$0xff]  ;;  %v371_v31 = vld [vmem:[%s7169_s11 + $0x9f0] sm:$0xff]  ;;  %v321_v33 = vld [vmem:[%s7169_s11 + $0x860] sm:$0xff] }
  0x79   :  { %893 = vmatpush.msrb.mxu0 %v253_v51  ;;  %913 = vmatpush.msrb.mxu1 %v269_v52  ;;  %v353_v37 = vld [vmem:[%s7169_s11 + $0x960] sm:$0xff]  ;;  %v320_v39 = vld [vmem:[%s7169_s11 + $0x858] sm:$0xff]  ;;  %v319_v43 = vld [vmem:[%s7169_s11 + $0x850] sm:$0xff] }
  0x7a   :  { %933 = vmatpush.msrb.mxu2 %v285_v53  ;;  %953 = vmatpush.msrb.mxu3 %v301_v54  ;;  %v369_v38 = vld [vmem:[%s7169_s11 + $0x9e0] sm:$0xff]  ;;  %v336_v40 = vld [vmem:[%s7169_s11 + $0x8d8] sm:$0xff]  ;;  %v335_v44 = vld [vmem:[%s7169_s11 + $0x8d0] sm:$0xff] }
  0x7b   :  { %894 = vmatpush.msrb.mxu0 %v252_v55  ;;  %914 = vmatpush.msrb.mxu1 %v268_v56  ;;  %v352_v41 = vld [vmem:[%s7169_s11 + $0x958] sm:$0xff]  ;;  %v351_v45 = vld [vmem:[%s7169_s11 + $0x950] sm:$0xff]  ;;  %v318_v47 = vld [vmem:[%s7169_s11 + $0x848] sm:$0xff] }
  0x7c   :  { %934 = vmatpush.msrb.mxu2 %v284_v57  ;;  %954 = vmatpush.msrb.mxu3 %v300_v58  ;;  %v368_v42 = vld [vmem:[%s7169_s11 + $0x9d8] sm:$0xff]  ;;  %v367_v46 = vld [vmem:[%s7169_s11 + $0x9d0] sm:$0xff]  ;;  %v334_v48 = vld [vmem:[%s7169_s11 + $0x8c8] sm:$0xff] }
  0x7d   :  { %895 = vmatpush.msrb.mxu0 %v251_v59  ;;  %915 = vmatpush.msrb.mxu1 %v267_v60  ;;  %v350_v49 = vld [vmem:[%s7169_s11 + $0x948] sm:$0xff]  ;;  %v317_v51 = vld [vmem:[%s7169_s11 + $0x840] sm:$0xff]  ;;  %v316_v55 = vld [vmem:[%s7169_s11 + $0x838] sm:$0xff] }
  0x7e   :  { %935 = vmatpush.msrb.mxu2 %v283_v61  ;;  %955 = vmatpush.msrb.mxu3 %v299_v62  ;;  %v366_v50 = vld [vmem:[%s7169_s11 + $0x9c8] sm:$0xff]  ;;  %v333_v52 = vld [vmem:[%s7169_s11 + $0x8c0] sm:$0xff]  ;;  %v332_v56 = vld [vmem:[%s7169_s11 + $0x8b8] sm:$0xff] }
  0x7f   :  { %896 = vmatpush.msrb.mxu0 %v250_v63  ;;  %916 = vmatpush.msrb.mxu1 %v266_v0  ;;  %v349_v53 = vld [vmem:[%s7169_s11 + $0x940] sm:$0xff]  ;;  %v348_v57 = vld [vmem:[%s7169_s11 + $0x938] sm:$0xff]  ;;  %v315_v59 = vld [vmem:[%s7169_s11 + $0x830] sm:$0xff] }
  0x80   :  { %936 = vmatpush.msrb.mxu2 %v282_v1  ;;  %956 = vmatpush.msrb.mxu3 %v298_v2  ;;  %v365_v54 = vld [vmem:[%s7169_s11 + $0x9c0] sm:$0xff]  ;;  %v364_v58 = vld [vmem:[%s7169_s11 + $0x9b8] sm:$0xff]  ;;  %v331_v60 = vld [vmem:[%s7169_s11 + $0x8b0] sm:$0xff] }
  0x81   :  { %897 = vmatpush.msrb.mxu0 %v249_v3  ;;  %917 = vmatpush.msrb.mxu1 %v265_v4  ;;  %v347_v61 = vld [vmem:[%s7169_s11 + $0x930] sm:$0xff]  ;;  %v314_v63 = vld [vmem:[%s7169_s11 + $0x828] sm:$0xff]  ;;  %v313_v3 = vld [vmem:[%s7169_s11 + $0x820] sm:$0xff] }
  0x82   :  { %937 = vmatpush.msrb.mxu2 %v281_v5  ;;  %957 = vmatpush.msrb.mxu3 %v297_v6  ;;  %v363_v62 = vld [vmem:[%s7169_s11 + $0x9b0] sm:$0xff]  ;;  %v330_v0 = vld [vmem:[%s7169_s11 + $0x8a8] sm:$0xff]  ;;  %v329_v4 = vld [vmem:[%s7169_s11 + $0x8a0] sm:$0xff] }
  0x83   :  { %898 = vmatpush.msrb.mxu0 %v248_v7  ;;  %918 = vmatpush.msrb.mxu1 %v264_v8  ;;  %v346_v1 = vld [vmem:[%s7169_s11 + $0x928] sm:$0xff]  ;;  %v345_v5 = vld [vmem:[%s7169_s11 + $0x920] sm:$0xff]  ;;  %v312_v7 = vld [vmem:[%s7169_s11 + $0x818] sm:$0xff] }
  0x84   :  { %938 = vmatpush.msrb.mxu2 %v280_v9  ;;  %958 = vmatpush.msrb.mxu3 %v296_v10  ;;  %v362_v2 = vld [vmem:[%s7169_s11 + $0x9a8] sm:$0xff]  ;;  %v361_v6 = vld [vmem:[%s7169_s11 + $0x9a0] sm:$0xff]  ;;  %v328_v8 = vld [vmem:[%s7169_s11 + $0x898] sm:$0xff] }
  0x85   :  { %899 = vmatpush.msrb.mxu0 %v247_v11  ;;  %919 = vmatpush.msrb.mxu1 %v263_v12  ;;  %v344_v9 = vld [vmem:[%s7169_s11 + $0x918] sm:$0xff]  ;;  %v311_v11 = vld [vmem:[%s7169_s11 + $0x810] sm:$0xff] }
  0x86   :  { %939 = vmatpush.msrb.mxu2 %v279_v13  ;;  %959 = vmatpush.msrb.mxu3 %v295_v14  ;;  %v360_v10 = vld [vmem:[%s7169_s11 + $0x998] sm:$0xff]  ;;  %v327_v12 = vld [vmem:[%s7169_s11 + $0x890] sm:$0xff] }
  0x87   :  { %900 = vmatpush.msrb.mxu0 %v246_v15  ;;  %920 = vmatpush.msrb.mxu1 %v262_v16  ;;  %v343_v13 = vld [vmem:[%s7169_s11 + $0x910] sm:$0xff]  ;;  %v310_v15 = vld [vmem:[%s7169_s11 + $0x808] sm:$0xff] }
  0x88   :  { %940 = vmatpush.msrb.mxu2 %v278_v17  ;;  %960 = vmatpush.msrb.mxu3 %v294_v18  ;;  %v359_v14 = vld [vmem:[%s7169_s11 + $0x990] sm:$0xff]  ;;  %v326_v16 = vld [vmem:[%s7169_s11 + $0x888] sm:$0xff] }
  0x89   :  { %901 = vmatpush.msrb.mxu0 %v245_v19  ;;  %921 = vmatpush.msrb.mxu1 %v261_v20  ;;  %v342_v17 = vld [vmem:[%s7169_s11 + $0x908] sm:$0xff]  ;;  %v309_v19 = vld [vmem:[%s7169_s11 + $0x800] sm:$0xff] }
  0x8a   :  { %941 = vmatpush.msrb.mxu2 %v277_v21  ;;  %961 = vmatpush.msrb.mxu3 %v293_v22  ;;  %v358_v18 = vld [vmem:[%s7169_s11 + $0x988] sm:$0xff]  ;;  %v325_v20 = vld [vmem:[%s7169_s11 + $0x880] sm:$0xff] }
  0x8b   :  { %902 = vmatmul.f32.vlgmr.msrb.gmra.mxu0 %v3978_v32  ;;  %942 = vmatmul.f32.vlgmr.msrb.gmra.mxu2 %v3980_v34  ;;  %v322_v32 = vld [vmem:[%s7169_s11 + $0x868] sm:$0xff]  ;;  %v341_v21 = vld [vmem:[%s7169_s11 + $0x900] sm:$0xff] }
  0x8c   :  { %966 = vmatpush.msra.mxu0 %v324_v23  ;;  %986 = vmatpush.msra.mxu1 %v340_v24  ;;  %v338_v34 = vld [vmem:[%s7169_s11 + $0x8e8] sm:$0xff]  ;;  %v357_v22 = vld [vmem:[%s7169_s11 + $0x980] sm:$0xff]  ;;  %v598_v24 = vld.sshfl [vmem:[#allocation1 + $0x10] sm:$0xff pattern:$0x73625140] }
  0x8d   :  { %1006 = vmatpush.msra.mxu2 %v356_v25  ;;  %1026 = vmatpush.msra.mxu3 %v372_v26  ;;  %v596_v23 = vld.sshfl [vmem:[#allocation1] sm:$0xff pattern:$0x73625140]  ;;  %v388_v25 = vld [vmem:[%s7169_s11 + $0xa78] sm:$0xff] }
  0x8e   :  { %922 = vmatmul.f32.vlgmr.msrb.gmra.mxu1 %v3982_v35  ;;  %962 = vmatmul.f32.vlgmr.msrb.gmra.mxu3 %v3990_v36  ;;  %v370_v35 = vld [vmem:[%s7169_s11 + $0x9e8] sm:$0xff]  ;;  %v337_v36 = vld [vmem:[%s7169_s11 + $0x8e0] sm:$0xff]  ;;  %v404_v26 = vld [vmem:[%s7169_s11 + $0xaf8] sm:$0xff] }
  0x8f   :  { %967 = vmatpush.msra.mxu0 %v323_v27  ;;  %987 = vmatpush.msra.mxu1 %v339_v28  ;;  %v420_v27 = vld [vmem:[%s7169_s11 + $0xb78] sm:$0xff] }
  0x90   :  { %1007 = vmatpush.msra.mxu2 %v355_v29  ;;  %1027 = vmatpush.msra.mxu3 %v371_v31  ;;  %v436_v28 = vld [vmem:[%s7169_s11 + $0xbf8] sm:$0xff]  ;;  %v597_v29 = vld.sshfl [vmem:[#allocation1 + $0x8] sm:$0xff pattern:$0x73625140] }
  0x91   :  { %968 = vmatpush.msra.mxu0 %v322_v32  ;;  %988 = vmatpush.msra.mxu1 %v338_v34  ;;  %v599_v31 = vld.sshfl [vmem:[#allocation1 + $0x18] sm:$0xff pattern:$0x73625140]  ;;  %v387_v32 = vld [vmem:[%s7169_s11 + $0xa70] sm:$0xff] }
  0x92   :  { %1008 = vmatpush.msra.mxu2 %v354_v30  ;;  %1028 = vmatpush.msra.mxu3 %v370_v35  ;;  %v403_v34 = vld [vmem:[%s7169_s11 + $0xaf0] sm:$0xff] }
  0x93   :  { %969 = vmatpush.msra.mxu0 %v321_v33  ;;  %989 = vmatpush.msra.mxu1 %v337_v36  ;;  %v419_v30 = vld [vmem:[%s7169_s11 + $0xb70] sm:$0xff]  ;;  %v386_v33 = vld [vmem:[%s7169_s11 + $0xa68] sm:$0xff] }
  0x94   :  { %1009 = vmatpush.msra.mxu2 %v353_v37  ;;  %1029 = vmatpush.msra.mxu3 %v369_v38  ;;  %v435_v35 = vld [vmem:[%s7169_s11 + $0xbf0] sm:$0xff]  ;;  %v402_v36 = vld [vmem:[%s7169_s11 + $0xae8] sm:$0xff] }
  0x95   :  { %970 = vmatpush.msra.mxu0 %v320_v39  ;;  %990 = vmatpush.msra.mxu1 %v336_v40  ;;  %v418_v37 = vld [vmem:[%s7169_s11 + $0xb68] sm:$0xff]  ;;  %v385_v39 = vld [vmem:[%s7169_s11 + $0xa60] sm:$0xff] }
  0x96   :  { %1010 = vmatpush.msra.mxu2 %v352_v41  ;;  %1030 = vmatpush.msra.mxu3 %v368_v42  ;;  %v434_v38 = vld [vmem:[%s7169_s11 + $0xbe8] sm:$0xff]  ;;  %v401_v40 = vld [vmem:[%s7169_s11 + $0xae0] sm:$0xff] }
  0x97   :  { %971 = vmatpush.msra.mxu0 %v319_v43  ;;  %991 = vmatpush.msra.mxu1 %v335_v44  ;;  %v417_v41 = vld [vmem:[%s7169_s11 + $0xb60] sm:$0xff]  ;;  %v384_v43 = vld [vmem:[%s7169_s11 + $0xa58] sm:$0xff] }
  0x98   :  { %1011 = vmatpush.msra.mxu2 %v351_v45  ;;  %1031 = vmatpush.msra.mxu3 %v367_v46  ;;  %v433_v42 = vld [vmem:[%s7169_s11 + $0xbe0] sm:$0xff]  ;;  %v400_v44 = vld [vmem:[%s7169_s11 + $0xad8] sm:$0xff] }
  0x99   :  { %972 = vmatpush.msra.mxu0 %v318_v47  ;;  %992 = vmatpush.msra.mxu1 %v334_v48  ;;  %v416_v45 = vld [vmem:[%s7169_s11 + $0xb58] sm:$0xff]  ;;  %v383_v47 = vld [vmem:[%s7169_s11 + $0xa50] sm:$0xff] }
  0x9a   :  { %1012 = vmatpush.msra.mxu2 %v350_v49  ;;  %1032 = vmatpush.msra.mxu3 %v366_v50  ;;  %v432_v46 = vld [vmem:[%s7169_s11 + $0xbd8] sm:$0xff]  ;;  %v399_v48 = vld [vmem:[%s7169_s11 + $0xad0] sm:$0xff] }
  0x9b   :  { %973 = vmatpush.msra.mxu0 %v317_v51  ;;  %993 = vmatpush.msra.mxu1 %v333_v52  ;;  %v415_v49 = vld [vmem:[%s7169_s11 + $0xb50] sm:$0xff]  ;;  %v382_v51 = vld [vmem:[%s7169_s11 + $0xa48] sm:$0xff] }
  0x9c   :  { %1013 = vmatpush.msra.mxu2 %v349_v53  ;;  %1033 = vmatpush.msra.mxu3 %v365_v54  ;;  %v431_v50 = vld [vmem:[%s7169_s11 + $0xbd0] sm:$0xff]  ;;  %v398_v52 = vld [vmem:[%s7169_s11 + $0xac8] sm:$0xff] }
  0x9d   :  { %974 = vmatpush.msra.mxu0 %v316_v55  ;;  %994 = vmatpush.msra.mxu1 %v332_v56  ;;  %v414_v53 = vld [vmem:[%s7169_s11 + $0xb48] sm:$0xff]  ;;  %v381_v55 = vld [vmem:[%s7169_s11 + $0xa40] sm:$0xff] }
  0x9e   :  { %1014 = vmatpush.msra.mxu2 %v348_v57  ;;  %1034 = vmatpush.msra.mxu3 %v364_v58  ;;  %v430_v54 = vld [vmem:[%s7169_s11 + $0xbc8] sm:$0xff]  ;;  %v397_v56 = vld [vmem:[%s7169_s11 + $0xac0] sm:$0xff] }
  0x9f   :  { %975 = vmatpush.msra.mxu0 %v315_v59  ;;  %995 = vmatpush.msra.mxu1 %v331_v60  ;;  %v413_v57 = vld [vmem:[%s7169_s11 + $0xb40] sm:$0xff]  ;;  %v380_v59 = vld [vmem:[%s7169_s11 + $0xa38] sm:$0xff] }
  0xa0   :  { %1015 = vmatpush.msra.mxu2 %v347_v61  ;;  %1035 = vmatpush.msra.mxu3 %v363_v62  ;;  %v429_v58 = vld [vmem:[%s7169_s11 + $0xbc0] sm:$0xff]  ;;  %v396_v60 = vld [vmem:[%s7169_s11 + $0xab8] sm:$0xff] }
  0xa1   :  { %976 = vmatpush.msra.mxu0 %v314_v63  ;;  %996 = vmatpush.msra.mxu1 %v330_v0  ;;  %v412_v61 = vld [vmem:[%s7169_s11 + $0xb38] sm:$0xff]  ;;  %v379_v63 = vld [vmem:[%s7169_s11 + $0xa30] sm:$0xff] }
  0xa2   :  { %1016 = vmatpush.msra.mxu2 %v346_v1  ;;  %1036 = vmatpush.msra.mxu3 %v362_v2  ;;  %v428_v62 = vld [vmem:[%s7169_s11 + $0xbb8] sm:$0xff]  ;;  %v395_v0 = vld [vmem:[%s7169_s11 + $0xab0] sm:$0xff] }
  0xa3   :  { %977 = vmatpush.msra.mxu0 %v313_v3  ;;  %997 = vmatpush.msra.mxu1 %v329_v4  ;;  %v411_v1 = vld [vmem:[%s7169_s11 + $0xb30] sm:$0xff]  ;;  %v378_v3 = vld [vmem:[%s7169_s11 + $0xa28] sm:$0xff] }
  0xa4   :  { %1017 = vmatpush.msra.mxu2 %v345_v5  ;;  %1037 = vmatpush.msra.mxu3 %v361_v6  ;;  %v427_v2 = vld [vmem:[%s7169_s11 + $0xbb0] sm:$0xff]  ;;  %v394_v4 = vld [vmem:[%s7169_s11 + $0xaa8] sm:$0xff] }
  0xa5   :  { %978 = vmatpush.msra.mxu0 %v312_v7  ;;  %998 = vmatpush.msra.mxu1 %v328_v8  ;;  %v410_v5 = vld [vmem:[%s7169_s11 + $0xb28] sm:$0xff]  ;;  %v377_v7 = vld [vmem:[%s7169_s11 + $0xa20] sm:$0xff] }
  0xa6   :  { %1018 = vmatpush.msra.mxu2 %v344_v9  ;;  %1038 = vmatpush.msra.mxu3 %v360_v10  ;;  %v426_v6 = vld [vmem:[%s7169_s11 + $0xba8] sm:$0xff]  ;;  %v393_v8 = vld [vmem:[%s7169_s11 + $0xaa0] sm:$0xff] }
  0xa7   :  { %979 = vmatpush.msra.mxu0 %v311_v11  ;;  %999 = vmatpush.msra.mxu1 %v327_v12  ;;  %v409_v9 = vld [vmem:[%s7169_s11 + $0xb20] sm:$0xff]  ;;  %v376_v11 = vld [vmem:[%s7169_s11 + $0xa18] sm:$0xff] }
  0xa8   :  { %1019 = vmatpush.msra.mxu2 %v343_v13  ;;  %1039 = vmatpush.msra.mxu3 %v359_v14  ;;  %v425_v10 = vld [vmem:[%s7169_s11 + $0xba0] sm:$0xff]  ;;  %v392_v12 = vld [vmem:[%s7169_s11 + $0xa98] sm:$0xff] }
  0xa9   :  { %980 = vmatpush.msra.mxu0 %v310_v15  ;;  %1000 = vmatpush.msra.mxu1 %v326_v16  ;;  %v408_v13 = vld [vmem:[%s7169_s11 + $0xb18] sm:$0xff]  ;;  %v375_v15 = vld [vmem:[%s7169_s11 + $0xa10] sm:$0xff] }
  0xaa   :  { %1020 = vmatpush.msra.mxu2 %v342_v17  ;;  %1040 = vmatpush.msra.mxu3 %v358_v18  ;;  %v424_v14 = vld [vmem:[%s7169_s11 + $0xb98] sm:$0xff]  ;;  %v391_v16 = vld [vmem:[%s7169_s11 + $0xa90] sm:$0xff] }
  0xab   :  { %981 = vmatpush.msra.mxu0 %v309_v19  ;;  %1001 = vmatpush.msra.mxu1 %v325_v20  ;;  %v407_v17 = vld [vmem:[%s7169_s11 + $0xb10] sm:$0xff]  ;;  %v374_v19 = vld [vmem:[%s7169_s11 + $0xa08] sm:$0xff] }
  0xac   :  { %1021 = vmatpush.msra.mxu2 %v341_v21  ;;  %1041 = vmatpush.msra.mxu3 %v357_v22  ;;  %v423_v18 = vld [vmem:[%s7169_s11 + $0xb90] sm:$0xff]  ;;  %v390_v20 = vld [vmem:[%s7169_s11 + $0xa88] sm:$0xff] }
  0xad   :  { %982 = vmatmul.f32.vlgmr.msra.gmra.mxu0 %v596_v23  ;;  %1022 = vmatmul.f32.vlgmr.msra.gmra.mxu2 %v598_v24  ;;  %v51_v21 = vld [vmem:[%s7159_s1 + $0x30] sm:$0xff]  ;;  %v406_v22 = vld [vmem:[%s7169_s11 + $0xb08] sm:$0xff]  ;;  %v373_v24 = vld [vmem:[%s7169_s11 + $0xa00] sm:$0xff] }
  0xae   :  { %1046 = vmatpush.msrb.mxu0 %v388_v25  ;;  %1066 = vmatpush.msrb.mxu1 %v404_v26  ;;  %v422_v23 = vld [vmem:[%s7169_s11 + $0xb88] sm:$0xff]  ;;  %604 = vst [vmem:[#allocation1] ss:$4 sm:$0xff] %v51_v21  ;;  %v389_v25 = vld [vmem:[%s7169_s11 + $0xa80] sm:$0xff]  ;;  %v455_v21 = vld [vmem:[%s7169_s11 + $0xc90] sm:$0xff] }
  0xaf   :  { %1086 = vmatpush.msrb.mxu2 %v420_v27  ;;  %1106 = vmatpush.msrb.mxu3 %v436_v28  ;;  %v405_v26 = vld [vmem:[%s7169_s11 + $0xb00] sm:$0xff] }
  0xb0   :  { %1002 = vmatmul.f32.vlgmr.msra.gmra.mxu1 %v597_v29  ;;  %1042 = vmatmul.f32.vlgmr.msra.gmra.mxu3 %v599_v31  ;;  %v421_v27 = vld [vmem:[%s7169_s11 + $0xb80] sm:$0xff]  ;;  %v602_v29 = vld.sshfl [vmem:[#allocation1 + $0x30] sm:$0xff pattern:$0x73625140]  ;;  %v452_v31 = vld [vmem:[%s7169_s11 + $0xc78] sm:$0xff] }
  0xb1   :  { %1047 = vmatpush.msrb.mxu0 %v387_v32  ;;  %1067 = vmatpush.msrb.mxu1 %v403_v34  ;;  %v600_v28 = vld.sshfl [vmem:[#allocation1 + $0x20] sm:$0xff pattern:$0x73625140]  ;;  %v468_v32 = vld [vmem:[%s7169_s11 + $0xcf8] sm:$0xff] }
  0xb2   :  { %1087 = vmatpush.msrb.mxu2 %v419_v30  ;;  %1107 = vmatpush.msrb.mxu3 %v435_v35  ;;  %v484_v34 = vld [vmem:[%s7169_s11 + $0xd78] sm:$0xff]  ;;  %v601_v35 = vld.sshfl [vmem:[#allocation1 + $0x28] sm:$0xff pattern:$0x73625140] }
  0xb3   :  { %1048 = vmatpush.msrb.mxu0 %v386_v33  ;;  %1068 = vmatpush.msrb.mxu1 %v402_v36  ;;  %v500_v30 = vld [vmem:[%s7169_s11 + $0xdf8] sm:$0xff]  ;;  %v451_v36 = vld [vmem:[%s7169_s11 + $0xc70] sm:$0xff] }
  0xb4   :  { %1088 = vmatpush.msrb.mxu2 %v418_v37  ;;  %1108 = vmatpush.msrb.mxu3 %v434_v38  ;;  %v603_v33 = vld.sshfl [vmem:[#allocation1 + $0x38] sm:$0xff pattern:$0x73625140]  ;;  %v467_v37 = vld [vmem:[%s7169_s11 + $0xcf0] sm:$0xff] }
  0xb5   :  { %1049 = vmatpush.msrb.mxu0 %v385_v39  ;;  %1069 = vmatpush.msrb.mxu1 %v401_v40  ;;  %v483_v38 = vld [vmem:[%s7169_s11 + $0xd70] sm:$0xff]  ;;  %v450_v40 = vld [vmem:[%s7169_s11 + $0xc68] sm:$0xff] }
  0xb6   :  { %1089 = vmatpush.msrb.mxu2 %v417_v41  ;;  %1109 = vmatpush.msrb.mxu3 %v433_v42  ;;  %v499_v39 = vld [vmem:[%s7169_s11 + $0xdf0] sm:$0xff]  ;;  %v466_v41 = vld [vmem:[%s7169_s11 + $0xce8] sm:$0xff] }
  0xb7   :  { %1050 = vmatpush.msrb.mxu0 %v384_v43  ;;  %1070 = vmatpush.msrb.mxu1 %v400_v44  ;;  %v482_v42 = vld [vmem:[%s7169_s11 + $0xd68] sm:$0xff]  ;;  %v449_v44 = vld [vmem:[%s7169_s11 + $0xc60] sm:$0xff] }
  0xb8   :  { %1090 = vmatpush.msrb.mxu2 %v416_v45  ;;  %1110 = vmatpush.msrb.mxu3 %v432_v46  ;;  %v498_v43 = vld [vmem:[%s7169_s11 + $0xde8] sm:$0xff]  ;;  %v465_v45 = vld [vmem:[%s7169_s11 + $0xce0] sm:$0xff] }
  0xb9   :  { %1051 = vmatpush.msrb.mxu0 %v383_v47  ;;  %1071 = vmatpush.msrb.mxu1 %v399_v48  ;;  %v481_v46 = vld [vmem:[%s7169_s11 + $0xd60] sm:$0xff]  ;;  %v448_v48 = vld [vmem:[%s7169_s11 + $0xc58] sm:$0xff] }
  0xba   :  { %1091 = vmatpush.msrb.mxu2 %v415_v49  ;;  %1111 = vmatpush.msrb.mxu3 %v431_v50  ;;  %v497_v47 = vld [vmem:[%s7169_s11 + $0xde0] sm:$0xff]  ;;  %v464_v49 = vld [vmem:[%s7169_s11 + $0xcd8] sm:$0xff] }
  0xbb   :  { %1052 = vmatpush.msrb.mxu0 %v382_v51  ;;  %1072 = vmatpush.msrb.mxu1 %v398_v52  ;;  %v480_v50 = vld [vmem:[%s7169_s11 + $0xd58] sm:$0xff]  ;;  %v447_v52 = vld [vmem:[%s7169_s11 + $0xc50] sm:$0xff] }
  0xbc   :  { %1092 = vmatpush.msrb.mxu2 %v414_v53  ;;  %1112 = vmatpush.msrb.mxu3 %v430_v54  ;;  %v496_v51 = vld [vmem:[%s7169_s11 + $0xdd8] sm:$0xff]  ;;  %v463_v53 = vld [vmem:[%s7169_s11 + $0xcd0] sm:$0xff] }
  0xbd   :  { %1053 = vmatpush.msrb.mxu0 %v381_v55  ;;  %1073 = vmatpush.msrb.mxu1 %v397_v56  ;;  %v479_v54 = vld [vmem:[%s7169_s11 + $0xd50] sm:$0xff]  ;;  %v446_v56 = vld [vmem:[%s7169_s11 + $0xc48] sm:$0xff] }
  0xbe   :  { %1093 = vmatpush.msrb.mxu2 %v413_v57  ;;  %1113 = vmatpush.msrb.mxu3 %v429_v58  ;;  %v495_v55 = vld [vmem:[%s7169_s11 + $0xdd0] sm:$0xff]  ;;  %v462_v57 = vld [vmem:[%s7169_s11 + $0xcc8] sm:$0xff] }
  0xbf   :  { %1054 = vmatpush.msrb.mxu0 %v380_v59  ;;  %1074 = vmatpush.msrb.mxu1 %v396_v60  ;;  %v478_v58 = vld [vmem:[%s7169_s11 + $0xd48] sm:$0xff]  ;;  %v445_v60 = vld [vmem:[%s7169_s11 + $0xc40] sm:$0xff] }
  0xc0   :  { %1094 = vmatpush.msrb.mxu2 %v412_v61  ;;  %1114 = vmatpush.msrb.mxu3 %v428_v62  ;;  %v494_v59 = vld [vmem:[%s7169_s11 + $0xdc8] sm:$0xff]  ;;  %v461_v61 = vld [vmem:[%s7169_s11 + $0xcc0] sm:$0xff] }
  0xc1   :  { %1055 = vmatpush.msrb.mxu0 %v379_v63  ;;  %1075 = vmatpush.msrb.mxu1 %v395_v0  ;;  %v477_v62 = vld [vmem:[%s7169_s11 + $0xd40] sm:$0xff]  ;;  %v444_v0 = vld [vmem:[%s7169_s11 + $0xc38] sm:$0xff] }
  0xc2   :  { %1095 = vmatpush.msrb.mxu2 %v411_v1  ;;  %1115 = vmatpush.msrb.mxu3 %v427_v2  ;;  %v493_v63 = vld [vmem:[%s7169_s11 + $0xdc0] sm:$0xff]  ;;  %v460_v1 = vld [vmem:[%s7169_s11 + $0xcb8] sm:$0xff] }
  0xc3   :  { %1056 = vmatpush.msrb.mxu0 %v378_v3  ;;  %1076 = vmatpush.msrb.mxu1 %v394_v4  ;;  %v476_v2 = vld [vmem:[%s7169_s11 + $0xd38] sm:$0xff]  ;;  %v443_v4 = vld [vmem:[%s7169_s11 + $0xc30] sm:$0xff] }
  0xc4   :  { %1096 = vmatpush.msrb.mxu2 %v410_v5  ;;  %1116 = vmatpush.msrb.mxu3 %v426_v6  ;;  %v492_v3 = vld [vmem:[%s7169_s11 + $0xdb8] sm:$0xff]  ;;  %v459_v5 = vld [vmem:[%s7169_s11 + $0xcb0] sm:$0xff] }
  0xc5   :  { %1057 = vmatpush.msrb.mxu0 %v377_v7  ;;  %1077 = vmatpush.msrb.mxu1 %v393_v8  ;;  %v475_v6 = vld [vmem:[%s7169_s11 + $0xd30] sm:$0xff]  ;;  %v442_v8 = vld [vmem:[%s7169_s11 + $0xc28] sm:$0xff] }
  0xc6   :  { %1097 = vmatpush.msrb.mxu2 %v409_v9  ;;  %1117 = vmatpush.msrb.mxu3 %v425_v10  ;;  %v491_v7 = vld [vmem:[%s7169_s11 + $0xdb0] sm:$0xff]  ;;  %v458_v9 = vld [vmem:[%s7169_s11 + $0xca8] sm:$0xff] }
  0xc7   :  { %1058 = vmatpush.msrb.mxu0 %v376_v11  ;;  %1078 = vmatpush.msrb.mxu1 %v392_v12  ;;  %v474_v10 = vld [vmem:[%s7169_s11 + $0xd28] sm:$0xff]  ;;  %v441_v12 = vld [vmem:[%s7169_s11 + $0xc20] sm:$0xff] }
  0xc8   :  { %1098 = vmatpush.msrb.mxu2 %v408_v13  ;;  %1118 = vmatpush.msrb.mxu3 %v424_v14  ;;  %v490_v11 = vld [vmem:[%s7169_s11 + $0xda8] sm:$0xff]  ;;  %v457_v13 = vld [vmem:[%s7169_s11 + $0xca0] sm:$0xff] }
  0xc9   :  { %1059 = vmatpush.msrb.mxu0 %v375_v15  ;;  %1079 = vmatpush.msrb.mxu1 %v391_v16  ;;  %v473_v14 = vld [vmem:[%s7169_s11 + $0xd20] sm:$0xff]  ;;  %v440_v16 = vld [vmem:[%s7169_s11 + $0xc18] sm:$0xff] }
  0xca   :  { %1099 = vmatpush.msrb.mxu2 %v407_v17  ;;  %1119 = vmatpush.msrb.mxu3 %v423_v18  ;;  %v489_v15 = vld [vmem:[%s7169_s11 + $0xda0] sm:$0xff]  ;;  %v456_v17 = vld [vmem:[%s7169_s11 + $0xc98] sm:$0xff] }
  0xcb   :  { %1060 = vmatpush.msrb.mxu0 %v374_v19  ;;  %1080 = vmatpush.msrb.mxu1 %v390_v20  ;;  %v472_v18 = vld [vmem:[%s7169_s11 + $0xd18] sm:$0xff]  ;;  %v439_v20 = vld [vmem:[%s7169_s11 + $0xc10] sm:$0xff] }
  0xcc   :  { %1100 = vmatpush.msrb.mxu2 %v406_v22  ;;  %1120 = vmatpush.msrb.mxu3 %v422_v23  ;;  %v488_v19 = vld [vmem:[%s7169_s11 + $0xd98] sm:$0xff]  ;;  %v471_v22 = vld [vmem:[%s7169_s11 + $0xd10] sm:$0xff] }
  0xcd   :  { %1061 = vmatpush.msrb.mxu0 %v373_v24  ;;  %1081 = vmatpush.msrb.mxu1 %v389_v25  ;;  %v487_v23 = vld [vmem:[%s7169_s11 + $0xd90] sm:$0xff]  ;;  %v438_v24 = vld [vmem:[%s7169_s11 + $0xc08] sm:$0xff] }
  0xce   :  { %1101 = vmatpush.msrb.mxu2 %v405_v26  ;;  %1121 = vmatpush.msrb.mxu3 %v421_v27  ;;  %v454_v25 = vld [vmem:[%s7169_s11 + $0xc88] sm:$0xff]  ;;  %v52_v26 = vld [vmem:[%s7159_s1 + $0x38] sm:$0xff] }
  0xcf   :  { %1062 = vmatmul.f32.vlgmr.msrb.gmra.mxu0 %v600_v28  ;;  %1102 = vmatmul.f32.vlgmr.msrb.gmra.mxu2 %v602_v29  ;;  %v470_v27 = vld [vmem:[%s7169_s11 + $0xd08] sm:$0xff]  ;;  %605 = vst [vmem:[#allocation1 + $0x20] ss:$4 sm:$0xff] %v52_v26  ;;  %v437_v29 = vld [vmem:[%s7169_s11 + $0xc00] sm:$0xff]  ;;  %v519_v26 = vld [vmem:[%s7169_s11 + $0xe90] sm:$0xff] }
  0xd0   :  { %1126 = vmatpush.msra.mxu0 %v452_v31  ;;  %1146 = vmatpush.msra.mxu1 %v468_v32  ;;  %v486_v28 = vld [vmem:[%s7169_s11 + $0xd88] sm:$0xff]  ;;  %v453_v31 = vld [vmem:[%s7169_s11 + $0xc80] sm:$0xff] }
  0xd1   :  { %1166 = vmatpush.msra.mxu2 %v484_v34  ;;  %1186 = vmatpush.msra.mxu3 %v500_v30  ;;  %v469_v32 = vld [vmem:[%s7169_s11 + $0xd00] sm:$0xff] }
  0xd2   :  { %1082 = vmatmul.f32.vlgmr.msrb.gmra.mxu1 %v601_v35  ;;  %1122 = vmatmul.f32.vlgmr.msrb.gmra.mxu3 %v603_v33  ;;  %v485_v34 = vld [vmem:[%s7169_s11 + $0xd80] sm:$0xff]  ;;  %v608_v35 = vld.sshfl [vmem:[#allocation1 + $0x10] sm:$0xff pattern:$0x73625140]  ;;  %v516_v33 = vld [vmem:[%s7169_s11 + $0xe78] sm:$0xff] }
  0xd3   :  { %1127 = vmatpush.msra.mxu0 %v451_v36  ;;  %1147 = vmatpush.msra.mxu1 %v467_v37  ;;  %v606_v30 = vld.sshfl [vmem:[#allocation1] sm:$0xff pattern:$0x73625140]  ;;  %v532_v36 = vld [vmem:[%s7169_s11 + $0xef8] sm:$0xff] }
  0xd4   :  { %1167 = vmatpush.msra.mxu2 %v483_v38  ;;  %1187 = vmatpush.msra.mxu3 %v499_v39  ;;  %v548_v37 = vld [vmem:[%s7169_s11 + $0xf78] sm:$0xff]  ;;  %v607_v39 = vld.sshfl [vmem:[#allocation1 + $0x8] sm:$0xff pattern:$0x73625140] }
  0xd5   :  { %1128 = vmatpush.msra.mxu0 %v450_v40  ;;  %1148 = vmatpush.msra.mxu1 %v466_v41  ;;  %v564_v38 = vld [vmem:[%s7169_s11 + $0xff8] sm:$0xff]  ;;  %v515_v41 = vld [vmem:[%s7169_s11 + $0xe70] sm:$0xff] }
  0xd6   :  { %1168 = vmatpush.msra.mxu2 %v482_v42  ;;  %1188 = vmatpush.msra.mxu3 %v498_v43  ;;  %v609_v40 = vld.sshfl [vmem:[#allocation1 + $0x18] sm:$0xff pattern:$0x73625140]  ;;  %v531_v42 = vld [vmem:[%s7169_s11 + $0xef0] sm:$0xff] }
  0xd7   :  { %1129 = vmatpush.msra.mxu0 %v449_v44  ;;  %1149 = vmatpush.msra.mxu1 %v465_v45  ;;  %v547_v43 = vld [vmem:[%s7169_s11 + $0xf70] sm:$0xff]  ;;  %v514_v45 = vld [vmem:[%s7169_s11 + $0xe68] sm:$0xff] }
  0xd8   :  { %1169 = vmatpush.msra.mxu2 %v481_v46  ;;  %1189 = vmatpush.msra.mxu3 %v497_v47  ;;  %v563_v44 = vld [vmem:[%s7169_s11 + $0xff0] sm:$0xff]  ;;  %v530_v46 = vld [vmem:[%s7169_s11 + $0xee8] sm:$0xff] }
  0xd9   :  { %1130 = vmatpush.msra.mxu0 %v448_v48  ;;  %1150 = vmatpush.msra.mxu1 %v464_v49  ;;  %v546_v47 = vld [vmem:[%s7169_s11 + $0xf68] sm:$0xff]  ;;  %v513_v49 = vld [vmem:[%s7169_s11 + $0xe60] sm:$0xff] }
  0xda   :  { %1170 = vmatpush.msra.mxu2 %v480_v50  ;;  %1190 = vmatpush.msra.mxu3 %v496_v51  ;;  %v562_v48 = vld [vmem:[%s7169_s11 + $0xfe8] sm:$0xff]  ;;  %v529_v50 = vld [vmem:[%s7169_s11 + $0xee0] sm:$0xff] }
  0xdb   :  { %1131 = vmatpush.msra.mxu0 %v447_v52  ;;  %1151 = vmatpush.msra.mxu1 %v463_v53  ;;  %v545_v51 = vld [vmem:[%s7169_s11 + $0xf60] sm:$0xff]  ;;  %v512_v53 = vld [vmem:[%s7169_s11 + $0xe58] sm:$0xff] }
  0xdc   :  { %1171 = vmatpush.msra.mxu2 %v479_v54  ;;  %1191 = vmatpush.msra.mxu3 %v495_v55  ;;  %v561_v52 = vld [vmem:[%s7169_s11 + $0xfe0] sm:$0xff]  ;;  %v528_v54 = vld [vmem:[%s7169_s11 + $0xed8] sm:$0xff] }
  0xdd   :  { %1132 = vmatpush.msra.mxu0 %v446_v56  ;;  %1152 = vmatpush.msra.mxu1 %v462_v57  ;;  %v544_v55 = vld [vmem:[%s7169_s11 + $0xf58] sm:$0xff]  ;;  %v511_v57 = vld [vmem:[%s7169_s11 + $0xe50] sm:$0xff] }
  0xde   :  { %1172 = vmatpush.msra.mxu2 %v478_v58  ;;  %1192 = vmatpush.msra.mxu3 %v494_v59  ;;  %v560_v56 = vld [vmem:[%s7169_s11 + $0xfd8] sm:$0xff]  ;;  %v527_v58 = vld [vmem:[%s7169_s11 + $0xed0] sm:$0xff] }
  0xdf   :  { %1133 = vmatpush.msra.mxu0 %v445_v60  ;;  %1153 = vmatpush.msra.mxu1 %v461_v61  ;;  %v543_v59 = vld [vmem:[%s7169_s11 + $0xf50] sm:$0xff]  ;;  %v510_v61 = vld [vmem:[%s7169_s11 + $0xe48] sm:$0xff] }
  0xe0   :  { %1173 = vmatpush.msra.mxu2 %v477_v62  ;;  %1193 = vmatpush.msra.mxu3 %v493_v63  ;;  %v559_v60 = vld [vmem:[%s7169_s11 + $0xfd0] sm:$0xff]  ;;  %v526_v62 = vld [vmem:[%s7169_s11 + $0xec8] sm:$0xff] }
  0xe1   :  { %1134 = vmatpush.msra.mxu0 %v444_v0  ;;  %1154 = vmatpush.msra.mxu1 %v460_v1  ;;  %v542_v63 = vld [vmem:[%s7169_s11 + $0xf48] sm:$0xff]  ;;  %v509_v1 = vld [vmem:[%s7169_s11 + $0xe40] sm:$0xff] }
  0xe2   :  { %1174 = vmatpush.msra.mxu2 %v476_v2  ;;  %1194 = vmatpush.msra.mxu3 %v492_v3  ;;  %v558_v0 = vld [vmem:[%s7169_s11 + $0xfc8] sm:$0xff]  ;;  %v525_v2 = vld [vmem:[%s7169_s11 + $0xec0] sm:$0xff] }
  0xe3   :  { %1135 = vmatpush.msra.mxu0 %v443_v4  ;;  %1155 = vmatpush.msra.mxu1 %v459_v5  ;;  %v541_v3 = vld [vmem:[%s7169_s11 + $0xf40] sm:$0xff]  ;;  %v508_v5 = vld [vmem:[%s7169_s11 + $0xe38] sm:$0xff] }
  0xe4   :  { %1175 = vmatpush.msra.mxu2 %v475_v6  ;;  %1195 = vmatpush.msra.mxu3 %v491_v7  ;;  %v557_v4 = vld [vmem:[%s7169_s11 + $0xfc0] sm:$0xff]  ;;  %v524_v6 = vld [vmem:[%s7169_s11 + $0xeb8] sm:$0xff] }
  0xe5   :  { %1136 = vmatpush.msra.mxu0 %v442_v8  ;;  %1156 = vmatpush.msra.mxu1 %v458_v9  ;;  %v540_v7 = vld [vmem:[%s7169_s11 + $0xf38] sm:$0xff]  ;;  %v507_v9 = vld [vmem:[%s7169_s11 + $0xe30] sm:$0xff] }
  0xe6   :  { %1176 = vmatpush.msra.mxu2 %v474_v10  ;;  %1196 = vmatpush.msra.mxu3 %v490_v11  ;;  %v556_v8 = vld [vmem:[%s7169_s11 + $0xfb8] sm:$0xff]  ;;  %v523_v10 = vld [vmem:[%s7169_s11 + $0xeb0] sm:$0xff] }
  0xe7   :  { %1137 = vmatpush.msra.mxu0 %v441_v12  ;;  %1157 = vmatpush.msra.mxu1 %v457_v13  ;;  %v539_v11 = vld [vmem:[%s7169_s11 + $0xf30] sm:$0xff]  ;;  %v506_v13 = vld [vmem:[%s7169_s11 + $0xe28] sm:$0xff] }
  0xe8   :  { %1177 = vmatpush.msra.mxu2 %v473_v14  ;;  %1197 = vmatpush.msra.mxu3 %v489_v15  ;;  %v555_v12 = vld [vmem:[%s7169_s11 + $0xfb0] sm:$0xff]  ;;  %v522_v14 = vld [vmem:[%s7169_s11 + $0xea8] sm:$0xff] }
  0xe9   :  { %1138 = vmatpush.msra.mxu0 %v440_v16  ;;  %1158 = vmatpush.msra.mxu1 %v456_v17  ;;  %v538_v15 = vld [vmem:[%s7169_s11 + $0xf28] sm:$0xff]  ;;  %v505_v17 = vld [vmem:[%s7169_s11 + $0xe20] sm:$0xff] }
  0xea   :  { %1178 = vmatpush.msra.mxu2 %v472_v18  ;;  %1198 = vmatpush.msra.mxu3 %v488_v19  ;;  %v554_v16 = vld [vmem:[%s7169_s11 + $0xfa8] sm:$0xff]  ;;  %v521_v18 = vld [vmem:[%s7169_s11 + $0xea0] sm:$0xff] }
  0xeb   :  { %1139 = vmatpush.msra.mxu0 %v439_v20  ;;  %1159 = vmatpush.msra.mxu1 %v455_v21  ;;  %v537_v19 = vld [vmem:[%s7169_s11 + $0xf20] sm:$0xff]  ;;  %v504_v21 = vld [vmem:[%s7169_s11 + $0xe18] sm:$0xff] }
  0xec   :  { %1179 = vmatpush.msra.mxu2 %v471_v22  ;;  %1199 = vmatpush.msra.mxu3 %v487_v23  ;;  %v553_v20 = vld [vmem:[%s7169_s11 + $0xfa0] sm:$0xff]  ;;  %v520_v22 = vld [vmem:[%s7169_s11 + $0xe98] sm:$0xff] }
  0xed   :  { %1140 = vmatpush.msra.mxu0 %v438_v24  ;;  %1160 = vmatpush.msra.mxu1 %v454_v25  ;;  %v536_v23 = vld [vmem:[%s7169_s11 + $0xf18] sm:$0xff]  ;;  %v503_v25 = vld [vmem:[%s7169_s11 + $0xe10] sm:$0xff] }
  0xee   :  { %1180 = vmatpush.msra.mxu2 %v470_v27  ;;  %1200 = vmatpush.msra.mxu3 %v486_v28  ;;  %v552_v24 = vld [vmem:[%s7169_s11 + $0xf98] sm:$0xff]  ;;  %v535_v27 = vld [vmem:[%s7169_s11 + $0xf10] sm:$0xff] }
  0xef   :  { %1141 = vmatpush.msra.mxu0 %v437_v29  ;;  %1161 = vmatpush.msra.mxu1 %v453_v31  ;;  %v551_v28 = vld [vmem:[%s7169_s11 + $0xf90] sm:$0xff]  ;;  %v502_v29 = vld [vmem:[%s7169_s11 + $0xe08] sm:$0xff] }
  0xf0   :  { %1181 = vmatpush.msra.mxu2 %v469_v32  ;;  %1201 = vmatpush.msra.mxu3 %v485_v34  ;;  %v518_v31 = vld [vmem:[%s7169_s11 + $0xe88] sm:$0xff] }
  0xf1   :  { %1142 = vmatmul.f32.vlgmr.msra.gmra.mxu0 %v606_v30  ;;  %1182 = vmatmul.f32.vlgmr.msra.gmra.mxu2 %v608_v35  ;;  %v534_v32 = vld [vmem:[%s7169_s11 + $0xf08] sm:$0xff]  ;;  %v501_v30 = vld [vmem:[%s7169_s11 + $0xe00] sm:$0xff] }
  0xf2   :  { %1206 = vmatpush.msrb.mxu0 %v516_v33  ;;  %1226 = vmatpush.msrb.mxu1 %v532_v36  ;;  %v550_v34 = vld [vmem:[%s7169_s11 + $0xf88] sm:$0xff]  ;;  %v517_v35 = vld [vmem:[%s7169_s11 + $0xe80] sm:$0xff] }
  0xf3   :  { %1246 = vmatpush.msrb.mxu2 %v548_v37  ;;  %1266 = vmatpush.msrb.mxu3 %v564_v38  ;;  %v533_v33 = vld [vmem:[%s7169_s11 + $0xf00] sm:$0xff]  ;;  %v612_v38 = vld.sshfl [vmem:[#allocation1 + $0x30] sm:$0xff pattern:$0x73625140] }
  0xf4   :  { %1162 = vmatmul.f32.vlgmr.msra.gmra.mxu1 %v607_v39  ;;  %1202 = vmatmul.f32.vlgmr.msra.gmra.mxu3 %v609_v40  ;;  %v549_v36 = vld [vmem:[%s7169_s11 + $0xf80] sm:$0xff]  ;;  %v1412_v40 = vld [vmem:[%s7161_s3 + $0x388] sm:$0xff] }
  0xf5   :  { %1207 = vmatpush.msrb.mxu0 %v515_v41  ;;  %1227 = vmatpush.msrb.mxu1 %v531_v42  ;;  %v610_v37 = vld.sshfl [vmem:[#allocation1 + $0x20] sm:$0xff pattern:$0x73625140]  ;;  %v1413_v41 = vld [vmem:[%s7161_s3 + $0x390] sm:$0xff] }
  0xf6   :  { %1247 = vmatpush.msrb.mxu2 %v547_v43  ;;  %1267 = vmatpush.msrb.mxu3 %v563_v44  ;;  %v1411_v39 = vld [vmem:[%s7161_s3 + $0x380] sm:$0xff]  ;;  %v611_v43 = vld.sshfl [vmem:[#allocation1 + $0x28] sm:$0xff pattern:$0x73625140] }
  0xf7   :  { %1208 = vmatpush.msrb.mxu0 %v514_v45  ;;  %1228 = vmatpush.msrb.mxu1 %v530_v46  ;;  %v1415_v42 = vld [vmem:[%s7161_s3 + $0x3a0] sm:$0xff]  ;;  %v613_v44 = vld.sshfl [vmem:[#allocation1 + $0x38] sm:$0xff pattern:$0x73625140]  ;;  %v1396_v46 = vld [vmem:[%s7161_s3 + $0x308] sm:$0xff] }
  0xf8   :  { %1248 = vmatpush.msrb.mxu2 %v546_v47  ;;  %1268 = vmatpush.msrb.mxu3 %v562_v48  ;;  %v1395_v45 = vld [vmem:[%s7161_s3 + $0x300] sm:$0xff]  ;;  %v1397_v47 = vld [vmem:[%s7161_s3 + $0x310] sm:$0xff] }
  0xf9   :  { %1209 = vmatpush.msrb.mxu0 %v513_v49  ;;  %1229 = vmatpush.msrb.mxu1 %v529_v50  ;;  %v1399_v48 = vld [vmem:[%s7161_s3 + $0x320] sm:$0xff]  ;;  %v1380_v50 = vld [vmem:[%s7161_s3 + $0x288] sm:$0xff] }
  0xfa   :  { %1249 = vmatpush.msrb.mxu2 %v545_v51  ;;  %1269 = vmatpush.msrb.mxu3 %v561_v52  ;;  %v1379_v49 = vld [vmem:[%s7161_s3 + $0x280] sm:$0xff]  ;;  %v1381_v51 = vld [vmem:[%s7161_s3 + $0x290] sm:$0xff] }
  0xfb   :  { %1210 = vmatpush.msrb.mxu0 %v512_v53  ;;  %1230 = vmatpush.msrb.mxu1 %v528_v54  ;;  %v1383_v52 = vld [vmem:[%s7161_s3 + $0x2a0] sm:$0xff]  ;;  %v1364_v54 = vld [vmem:[%s7161_s3 + $0x208] sm:$0xff] }
  0xfc   :  { %1250 = vmatpush.msrb.mxu2 %v544_v55  ;;  %1270 = vmatpush.msrb.mxu3 %v560_v56  ;;  %v1363_v53 = vld [vmem:[%s7161_s3 + $0x200] sm:$0xff]  ;;  %v1365_v55 = vld [vmem:[%s7161_s3 + $0x210] sm:$0xff] }
  0xfd   :  { %1211 = vmatpush.msrb.mxu0 %v511_v57  ;;  %1231 = vmatpush.msrb.mxu1 %v527_v58  ;;  %v1367_v56 = vld [vmem:[%s7161_s3 + $0x220] sm:$0xff]  ;;  %v1348_v58 = vld [vmem:[%s7161_s3 + $0x188] sm:$0xff] }
  0xfe   :  { %1251 = vmatpush.msrb.mxu2 %v543_v59  ;;  %1271 = vmatpush.msrb.mxu3 %v559_v60  ;;  %v1347_v57 = vld [vmem:[%s7161_s3 + $0x180] sm:$0xff]  ;;  %v1349_v59 = vld [vmem:[%s7161_s3 + $0x190] sm:$0xff] }
  0xff   :  { %1212 = vmatpush.msrb.mxu0 %v510_v61  ;;  %1232 = vmatpush.msrb.mxu1 %v526_v62  ;;  %v1351_v60 = vld [vmem:[%s7161_s3 + $0x1a0] sm:$0xff]  ;;  %v1332_v62 = vld [vmem:[%s7161_s3 + $0x108] sm:$0xff] }
 0x100   :  { %1252 = vmatpush.msrb.mxu2 %v542_v63  ;;  %1272 = vmatpush.msrb.mxu3 %v558_v0  ;;  %v1331_v61 = vld [vmem:[%s7161_s3 + $0x100] sm:$0xff]  ;;  %v1333_v63 = vld [vmem:[%s7161_s3 + $0x110] sm:$0xff] }
 0x101   :  { %1213 = vmatpush.msrb.mxu0 %v509_v1  ;;  %1233 = vmatpush.msrb.mxu1 %v525_v2  ;;  %v1335_v0 = vld [vmem:[%s7161_s3 + $0x120] sm:$0xff]  ;;  %v1316_v2 = vld [vmem:[%s7161_s3 + $0x88] sm:$0xff] }
 0x102   :  { %1253 = vmatpush.msrb.mxu2 %v541_v3  ;;  %1273 = vmatpush.msrb.mxu3 %v557_v4  ;;  %v1315_v1 = vld [vmem:[%s7161_s3 + $0x80] sm:$0xff]  ;;  %v1317_v3 = vld [vmem:[%s7161_s3 + $0x90] sm:$0xff] }
 0x103   :  { %1214 = vmatpush.msrb.mxu0 %v508_v5  ;;  %1234 = vmatpush.msrb.mxu1 %v524_v6  ;;  %v1319_v4 = vld [vmem:[%s7161_s3 + $0xa0] sm:$0xff]  ;;  %v1300_v6 = vld [vmem:[%s7161_s3 + $0x8] sm:$0xff] }
 0x104   :  { %1254 = vmatpush.msrb.mxu2 %v540_v7  ;;  %1274 = vmatpush.msrb.mxu3 %v556_v8  ;;  %v1299_v5 = vld [vmem:[%s7161_s3] sm:$0xff]  ;;  %v1301_v7 = vld [vmem:[%s7161_s3 + $0x10] sm:$0xff] }
 0x105   :  { %1215 = vmatpush.msrb.mxu0 %v507_v9  ;;  %1235 = vmatpush.msrb.mxu1 %v523_v10  ;;  %v1303_v8 = vld [vmem:[%s7161_s3 + $0x20] sm:$0xff]  ;;  %v1414_v9 = vld [vmem:[%s7161_s3 + $0x398] sm:$0xff]  ;;  %v1416_v10 = vld [vmem:[%s7161_s3 + $0x3a8] sm:$0xff] }
 0x106   :  { %1255 = vmatpush.msrb.mxu2 %v539_v11  ;;  %1275 = vmatpush.msrb.mxu3 %v555_v12  ;;  %v1417_v11 = vld [vmem:[%s7161_s3 + $0x3b0] sm:$0xff]  ;;  %v1419_v12 = vld [vmem:[%s7161_s3 + $0x3c0] sm:$0xff] }
 0x107   :  { %1216 = vmatpush.msrb.mxu0 %v506_v13  ;;  %1236 = vmatpush.msrb.mxu1 %v522_v14  ;;  %v1398_v13 = vld [vmem:[%s7161_s3 + $0x318] sm:$0xff]  ;;  %v1400_v14 = vld [vmem:[%s7161_s3 + $0x328] sm:$0xff] }
 0x108   :  { %1256 = vmatpush.msrb.mxu2 %v538_v15  ;;  %1276 = vmatpush.msrb.mxu3 %v554_v16  ;;  %v1401_v15 = vld [vmem:[%s7161_s3 + $0x330] sm:$0xff]  ;;  %v1403_v16 = vld [vmem:[%s7161_s3 + $0x340] sm:$0xff] }
 0x109   :  { %1217 = vmatpush.msrb.mxu0 %v505_v17  ;;  %1237 = vmatpush.msrb.mxu1 %v521_v18  ;;  %v1382_v17 = vld [vmem:[%s7161_s3 + $0x298] sm:$0xff]  ;;  %v1384_v18 = vld [vmem:[%s7161_s3 + $0x2a8] sm:$0xff] }
 0x10a   :  { %1257 = vmatpush.msrb.mxu2 %v537_v19  ;;  %1277 = vmatpush.msrb.mxu3 %v553_v20  ;;  %v1385_v19 = vld [vmem:[%s7161_s3 + $0x2b0] sm:$0xff]  ;;  %v1387_v20 = vld [vmem:[%s7161_s3 + $0x2c0] sm:$0xff] }
 0x10b   :  { %1218 = vmatpush.msrb.mxu0 %v504_v21  ;;  %1238 = vmatpush.msrb.mxu1 %v520_v22  ;;  %v1366_v21 = vld [vmem:[%s7161_s3 + $0x218] sm:$0xff]  ;;  %v1368_v22 = vld [vmem:[%s7161_s3 + $0x228] sm:$0xff] }
 0x10c   :  { %1258 = vmatpush.msrb.mxu2 %v536_v23  ;;  %1278 = vmatpush.msrb.mxu3 %v552_v24  ;;  %v1369_v23 = vld [vmem:[%s7161_s3 + $0x230] sm:$0xff]  ;;  %v1371_v24 = vld [vmem:[%s7161_s3 + $0x240] sm:$0xff] }
 0x10d   :  { %1219 = vmatpush.msrb.mxu0 %v503_v25  ;;  %1239 = vmatpush.msrb.mxu1 %v519_v26  ;;  %v1350_v25 = vld [vmem:[%s7161_s3 + $0x198] sm:$0xff]  ;;  %v1352_v26 = vld [vmem:[%s7161_s3 + $0x1a8] sm:$0xff] }
 0x10e   :  { %1259 = vmatpush.msrb.mxu2 %v535_v27  ;;  %1279 = vmatpush.msrb.mxu3 %v551_v28  ;;  %v1353_v27 = vld [vmem:[%s7161_s3 + $0x1b0] sm:$0xff]  ;;  %v1355_v28 = vld [vmem:[%s7161_s3 + $0x1c0] sm:$0xff] }
 0x10f   :  { %1220 = vmatpush.msrb.mxu0 %v502_v29  ;;  %1240 = vmatpush.msrb.mxu1 %v518_v31  ;;  %v1334_v29 = vld [vmem:[%s7161_s3 + $0x118] sm:$0xff]  ;;  %v1336_v31 = vld [vmem:[%s7161_s3 + $0x128] sm:$0xff] }
 0x110   :  { %1260 = vmatpush.msrb.mxu2 %v534_v32  ;;  %1280 = vmatpush.msrb.mxu3 %v550_v34  ;;  %v1337_v32 = vld [vmem:[%s7161_s3 + $0x130] sm:$0xff]  ;;  %v1339_v34 = vld [vmem:[%s7161_s3 + $0x140] sm:$0xff] }
 0x111   :  { %1221 = vmatpush.msrb.mxu0 %v501_v30  ;;  %1241 = vmatpush.msrb.mxu1 %v517_v35  ;;  %v1318_v30 = vld [vmem:[%s7161_s3 + $0x98] sm:$0xff]  ;;  %v1320_v35 = vld [vmem:[%s7161_s3 + $0xa8] sm:$0xff] }
 0x112   :  { %1261 = vmatpush.msrb.mxu2 %v533_v33  ;;  %1281 = vmatpush.msrb.mxu3 %v549_v36  ;;  %v1321_v33 = vld [vmem:[%s7161_s3 + $0xb0] sm:$0xff]  ;;  %v1323_v36 = vld [vmem:[%s7161_s3 + $0xc0] sm:$0xff] }
 0x113   :  { %1222 = vmatmul.f32.vlgmr.msrb.gmra.mxu0 %v610_v37  ;;  %1262 = vmatmul.f32.vlgmr.msrb.gmra.mxu2 %v612_v38  ;;  %v5103_v37 = vld [vmem:[%s7158_s0] sm:$0x3]  ;;  %v1302_v38 = vld [vmem:[%s7161_s3 + $0x18] sm:$0xff] }
 0x114   :  { %1475 = vmatpush.msra.mxu3 %v1411_v39  ;;  %1495 = vmatpush.msra.mxu1 %v1412_v40  ;;  %v1304_v39 = vld [vmem:[%s7161_s3 + $0x28] sm:$0xff]  ;;  %v1305_v40 = vld [vmem:[%s7161_s3 + $0x30] sm:$0xff] }
 0x115   :  { %1515 = vmatpush.msra.mxu2 %v1413_v41  ;;  %1555 = vmatpush.msra.mxu0 %v1415_v42  ;;  %v1307_v41 = vld [vmem:[%s7161_s3 + $0x40] sm:$0xff]  ;;  %v1418_v42 = vld [vmem:[%s7161_s3 + $0x3b8] sm:$0xff] }
 0x116   :  { %1242 = vmatmul.f32.vlgmr.msrb.gmra.mxu1 %v611_v43  ;;  %1282 = vmatmul.f32.vlgmr.msrb.gmra.mxu3 %v613_v44  ;;  %v1420_v43 = vld [vmem:[%s7161_s3 + $0x3c8] sm:$0xff]  ;;  %v1421_v44 = vld [vmem:[%s7161_s3 + $0x3d0] sm:$0xff] }
 0x117   :  { %1476 = vmatpush.msra.mxu3 %v1395_v45  ;;  %1496 = vmatpush.msra.mxu1 %v1396_v46  ;;  %v1423_v45 = vld [vmem:[%s7161_s3 + $0x3e0] sm:$0xff]  ;;  %v1402_v46 = vld [vmem:[%s7161_s3 + $0x338] sm:$0xff] }
 0x118   :  { %1516 = vmatpush.msra.mxu2 %v1397_v47  ;;  %1556 = vmatpush.msra.mxu0 %v1399_v48  ;;  %v1404_v47 = vld [vmem:[%s7161_s3 + $0x348] sm:$0xff]  ;;  %v1405_v48 = vld [vmem:[%s7161_s3 + $0x350] sm:$0xff] }
 0x119   :  { %1477 = vmatpush.msra.mxu3 %v1379_v49  ;;  %1497 = vmatpush.msra.mxu1 %v1380_v50  ;;  %v1407_v49 = vld [vmem:[%s7161_s3 + $0x360] sm:$0xff]  ;;  %v683_v50 = vpop.f32.mrf.mxu1 }
 0x11a   :  { %1517 = vmatpush.msra.mxu2 %v1381_v51  ;;  %1557 = vmatpush.msra.mxu0 %v1383_v52  ;;  %v1386_v51 = vld [vmem:[%s7161_s3 + $0x2b8] sm:$0xff]  ;;  %v1388_v52 = vld [vmem:[%s7161_s3 + $0x2c8] sm:$0xff] }
 0x11b   :  { %1478 = vmatpush.msra.mxu3 %v1363_v53  ;;  %1498 = vmatpush.msra.mxu1 %v1364_v54  ;;  %v1389_v53 = vld [vmem:[%s7161_s3 + $0x2d0] sm:$0xff]  ;;  %v1391_v54 = vld [vmem:[%s7161_s3 + $0x2e0] sm:$0xff] }
 0x11c   :  { %1518 = vmatpush.msra.mxu2 %v1365_v55  ;;  %1558 = vmatpush.msra.mxu0 %v1367_v56  ;;  %v663_v55 = vpop.f32.mrf.mxu0  ;;  %v1370_v56 = vld [vmem:[%s7161_s3 + $0x238] sm:$0xff] }
 0x11d   :  { %1479 = vmatpush.msra.mxu3 %v1347_v57  ;;  %1499 = vmatpush.msra.mxu1 %v1348_v58  ;;  %v1372_v57 = vld [vmem:[%s7161_s3 + $0x248] sm:$0xff]  ;;  %v684_v58 = vadd.f32 %v683_v50, %v663_v55  ;;  %v1935_v55 = vld [vmem:[%s7163_s5 + $0x3c0] sm:$0xff] }
 0x11e   :  { %1519 = vmatpush.msra.mxu2 %v1349_v59  ;;  %1559 = vmatpush.msra.mxu0 %v1351_v60  ;;  %v1373_v59 = vld [vmem:[%s7161_s3 + $0x250] sm:$0xff]  ;;  %v1375_v60 = vld [vmem:[%s7161_s3 + $0x260] sm:$0xff] }
 0x11f   :  { %1480 = vmatpush.msra.mxu3 %v1331_v61  ;;  %1500 = vmatpush.msra.mxu1 %v1332_v62  ;;  %v703_v61 = vpop.f32.mrf.mxu2  ;;  %v1354_v62 = vld [vmem:[%s7161_s3 + $0x1b8] sm:$0xff] }
 0x120   :  { %1520 = vmatpush.msra.mxu2 %v1333_v63  ;;  %1560 = vmatpush.msra.mxu0 %v1335_v0  ;;  %v1356_v63 = vld [vmem:[%s7161_s3 + $0x1c8] sm:$0xff]  ;;  %v1357_v0 = vld [vmem:[%s7161_s3 + $0x1d0] sm:$0xff] }
 0x121   :  { %1481 = vmatpush.msra.mxu3 %v1315_v1  ;;  %1501 = vmatpush.msra.mxu1 %v1316_v2  ;;  %v1359_v1 = vld [vmem:[%s7161_s3 + $0x1e0] sm:$0xff]  ;;  %v704_v2 = vadd.f32 %v703_v61, %v684_v58  ;;  %v1394_v61 = vld [vmem:[%s7161_s3 + $0x2f8] sm:$0xff] }
 0x122   :  { %1521 = vmatpush.msra.mxu2 %v1317_v3  ;;  %1561 = vmatpush.msra.mxu0 %v1319_v4  ;;  %v1338_v3 = vld [vmem:[%s7161_s3 + $0x138] sm:$0xff]  ;;  %v1340_v4 = vld [vmem:[%s7161_s3 + $0x148] sm:$0xff]  ;;  %v1927_v58 = vld [vmem:[%s7163_s5 + $0x380] sm:$0xff] }
 0x123   :  { %1482 = vmatpush.msra.mxu3 %v1299_v5  ;;  %1502 = vmatpush.msra.mxu1 %v1300_v6  ;;  %v723_v5 = vpop.f32.mrf.mxu3  ;;  %v1341_v6 = vld [vmem:[%s7161_s3 + $0x150] sm:$0xff] }
 0x124   :  { %1522 = vmatpush.msra.mxu2 %v1301_v7  ;;  %1562 = vmatpush.msra.mxu0 %v1303_v8  ;;  %v1343_v7 = vld [vmem:[%s7161_s3 + $0x160] sm:$0xff]  ;;  %v1322_v8 = vld [vmem:[%s7161_s3 + $0xb8] sm:$0xff] }
 0x125   :  { %1535 = vmatpush.msrb.mxu3 %v1414_v9  ;;  %1575 = vmatpush.msrb.mxu1 %v1416_v10  ;;  %v1324_v9 = vld [vmem:[%s7161_s3 + $0xc8] sm:$0xff]  ;;  %v1325_v10 = vld [vmem:[%s7161_s3 + $0xd0] sm:$0xff] }
 0x126   :  { %1595 = vmatpush.msrb.mxu2 %v1417_v11  ;;  %1635 = vmatpush.msrb.mxu0 %v1419_v12  ;;  %v1327_v11 = vld [vmem:[%s7161_s3 + $0xe0] sm:$0xff]  ;;  %v724_v12 = vadd.f32 %v723_v5, %v704_v2 }
 0x127   :  { %1536 = vmatpush.msrb.mxu3 %v1398_v13  ;;  %1576 = vmatpush.msrb.mxu1 %v1400_v14  ;;  %v743_v13 = vpop.f32.mrf.mxu0  ;;  %v1306_v14 = vld [vmem:[%s7161_s3 + $0x38] sm:$0xff] }
 0x128   :  { %1596 = vmatpush.msrb.mxu2 %v1401_v15  ;;  %1636 = vmatpush.msrb.mxu0 %v1403_v16  ;;  %v1308_v15 = vld [vmem:[%s7161_s3 + $0x48] sm:$0xff]  ;;  %v1309_v16 = vld [vmem:[%s7161_s3 + $0x50] sm:$0xff] }
 0x129   :  { %1537 = vmatpush.msrb.mxu3 %v1382_v17  ;;  %1577 = vmatpush.msrb.mxu1 %v1384_v18  ;;  %v1311_v17 = vld [vmem:[%s7161_s3 + $0x60] sm:$0xff]  ;;  %v744_v18 = vadd.f32 %v743_v13, %v724_v12 }
 0x12a   :  { %1597 = vmatpush.msrb.mxu2 %v1385_v19  ;;  %1637 = vmatpush.msrb.mxu0 %v1387_v20  ;;  %v1422_v19 = vld [vmem:[%s7161_s3 + $0x3d8] sm:$0xff]  ;;  %v1424_v20 = vld [vmem:[%s7161_s3 + $0x3e8] sm:$0xff] }
 0x12b   :  { %1538 = vmatpush.msrb.mxu3 %v1366_v21  ;;  %1578 = vmatpush.msrb.mxu1 %v1368_v22  ;;  %v763_v21 = vpop.f32.mrf.mxu1  ;;  %v1425_v22 = vld [vmem:[%s7161_s3 + $0x3f0] sm:$0xff] }
 0x12c   :  { %1598 = vmatpush.msrb.mxu2 %v1369_v23  ;;  %1638 = vmatpush.msrb.mxu0 %v1371_v24  ;;  %v1406_v23 = vld [vmem:[%s7161_s3 + $0x358] sm:$0xff]  ;;  %v1408_v24 = vld [vmem:[%s7161_s3 + $0x368] sm:$0xff] }
 0x12d   :  { %1539 = vmatpush.msrb.mxu3 %v1350_v25  ;;  %1579 = vmatpush.msrb.mxu1 %v1352_v26  ;;  %v1409_v25 = vld [vmem:[%s7161_s3 + $0x370] sm:$0xff]  ;;  %v764_v26 = vadd.f32 %v763_v21, %v744_v18 }
 0x12e   :  { %1599 = vmatpush.msrb.mxu2 %v1353_v27  ;;  %1639 = vmatpush.msrb.mxu0 %v1355_v28  ;;  %v1390_v27 = vld [vmem:[%s7161_s3 + $0x2d8] sm:$0xff]  ;;  %v1392_v28 = vld [vmem:[%s7161_s3 + $0x2e8] sm:$0xff] }
 0x12f   :  { %1540 = vmatpush.msrb.mxu3 %v1334_v29  ;;  %1580 = vmatpush.msrb.mxu1 %v1336_v31  ;;  %v783_v29 = vpop.f32.mrf.mxu2  ;;  %v1393_v31 = vld [vmem:[%s7161_s3 + $0x2f0] sm:$0xff] }
 0x130   :  { %1600 = vmatpush.msrb.mxu2 %v1337_v32  ;;  %1640 = vmatpush.msrb.mxu0 %v1339_v34  ;;  %v1374_v32 = vld [vmem:[%s7161_s3 + $0x258] sm:$0xff]  ;;  %v1376_v34 = vld [vmem:[%s7161_s3 + $0x268] sm:$0xff] }
 0x131   :  { %1541 = vmatpush.msrb.mxu3 %v1318_v30  ;;  %1581 = vmatpush.msrb.mxu1 %v1320_v35  ;;  %v1377_v30 = vld [vmem:[%s7161_s3 + $0x270] sm:$0xff]  ;;  %v784_v35 = vadd.f32 %v783_v29, %v764_v26  ;;  %v1879_v26 = vld [vmem:[%s7163_s5 + $0x200] sm:$0xff] }
 0x132   :  { %1601 = vmatpush.msrb.mxu2 %v1321_v33  ;;  %1641 = vmatpush.msrb.mxu0 %v1323_v36  ;;  %v1358_v33 = vld [vmem:[%s7161_s3 + $0x1d8] sm:$0xff]  ;;  %v803_v36 = vpop.f32.mrf.mxu3 }
 0x133   :  { %3187 = vmatmul.msk.f32.vlgmr.msra.gmra.mxu3 %vm1463_vm0, %v5103_v37  ;;  %3191 = vmatmul.msk.f32.vlgmr.msra.gmra.mxu0 %vm1463_vm0, %v5103_v37  ;;  %v843_v50 = vpop.f32.mrf.mxu1 }
 0x134   :  { %1542 = vmatpush.msrb.mxu3 %v1302_v38  ;;  %1582 = vmatpush.msrb.mxu1 %v1304_v39  ;;  %v1360_v38 = vld [vmem:[%s7161_s3 + $0x1e8] sm:$0xff]  ;;  %v1361_v39 = vld [vmem:[%s7161_s3 + $0x1f0] sm:$0xff] }
 0x135   :  { %1602 = vmatpush.msrb.mxu2 %v1305_v40  ;;  %1642 = vmatpush.msrb.mxu0 %v1307_v41  ;;  %v1342_v40 = vld [vmem:[%s7161_s3 + $0x158] sm:$0xff]  ;;  %v823_v41 = vpop.f32.mrf.mxu0 }
 0x136   :  { %3188 = vmatmul.msk.f32.vlgmr.msra.gmra.mxu1 %vm1463_vm0, %v5103_v37  ;;  %3189 = vmatmul.msk.f32.vlgmr.msra.gmra.mxu2 %vm1463_vm0, %v5103_v37 }
 0x137   :  { %1615 = vmatpush.msra.mxu3 %v1418_v42  ;;  %1655 = vmatpush.msra.mxu1 %v1420_v43  ;;  %v1344_v42 = vld [vmem:[%s7161_s3 + $0x168] sm:$0xff]  ;;  %v1345_v43 = vld [vmem:[%s7161_s3 + $0x170] sm:$0xff] }
 0x138   :  { %1675 = vmatpush.msra.mxu2 %v1421_v44  ;;  %1715 = vmatpush.msra.mxu0 %v1423_v45  ;;  %v804_v44 = vadd.f32 %v803_v36, %v784_v35  ;;  %v1326_v45 = vld [vmem:[%s7161_s3 + $0xd8] sm:$0xff]  ;;  %v2039_v36 = vld [vmem:[%s7163_s5 + $0x700] sm:$0xff] }
 0x139   :  { %1616 = vmatpush.msra.mxu3 %v1402_v46  ;;  %1656 = vmatpush.msra.mxu1 %v1404_v47  ;;  %v1328_v46 = vld [vmem:[%s7161_s3 + $0xe8] sm:$0xff]  ;;  %v1329_v47 = vld [vmem:[%s7161_s3 + $0xf0] sm:$0xff] }
 0x13a   :  { %1676 = vmatpush.msra.mxu2 %v1405_v48  ;;  %1716 = vmatpush.msra.mxu0 %v1407_v49  ;;  %v824_v48 = vadd.f32 %v823_v41, %v804_v44  ;;  %v1310_v49 = vld [vmem:[%s7161_s3 + $0x58] sm:$0xff]  ;;  %v1847_v41 = vld [vmem:[%s7163_s5 + $0x100] sm:$0xff] }
 0x13b   :  { %1617 = vmatpush.msra.mxu3 %v1386_v51  ;;  %1657 = vmatpush.msra.mxu1 %v1388_v52  ;;  %v1312_v51 = vld [vmem:[%s7161_s3 + $0x68] sm:$0xff]  ;;  %v1313_v52 = vld [vmem:[%s7161_s3 + $0x70] sm:$0xff]  ;;  %v923_v5 = vpop.f32.mrf.mxu1 }
 0x13c   :  { %1677 = vmatpush.msra.mxu2 %v1389_v53  ;;  %1717 = vmatpush.msra.mxu0 %v1391_v54  ;;  %v863_v53 = vpop.f32.mrf.mxu2  ;;  %v1426_v54 = vld [vmem:[%s7161_s3 + $0x3f8] sm:$0xff] }
 0x13d   :  { %1618 = vmatpush.msra.mxu3 %v1370_v56  ;;  %1658 = vmatpush.msra.mxu1 %v1372_v57  ;;  %v844_v56 = vadd.f32 %v843_v50, %v824_v48  ;;  %v1410_v57 = vld [vmem:[%s7161_s3 + $0x378] sm:$0xff]  ;;  %v2015_v50 = vld [vmem:[%s7163_s5 + $0x640] sm:$0xff] }
 0x13e   :  { %1678 = vmatpush.msra.mxu2 %v1373_v59  ;;  %1718 = vmatpush.msra.mxu0 %v1375_v60  ;;  %v883_v60 = vpop.f32.mrf.mxu3 }
 0x13f   :  { %3190 = vmatmul.msk.f32.vlgmr.msrb.gmra.mxu3 %vm1463_vm0, %v5103_v37  ;;  %3195 = vmatmul.msk.f32.vlgmr.msrb.gmra.mxu0 %vm1463_vm0, %v5103_v37  ;;  %v864_v59 = vadd.f32 %v863_v53, %v844_v56  ;;  %v2159_v53 = vld [vmem:[%s7163_s5 + $0xac0] sm:$0xff] }
 0x140   :  { %1619 = vmatpush.msra.mxu3 %v1354_v62  ;;  %1659 = vmatpush.msra.mxu1 %v1356_v63  ;;  %v1919_v62 = vld [vmem:[%s7163_s5 + $0x340] sm:$0xff]  ;;  %v903_v63 = vpop.f32.mrf.mxu0 }
 0x141   :  { %1679 = vmatpush.msra.mxu2 %v1357_v0  ;;  %1719 = vmatpush.msra.mxu0 %v1359_v1  ;;  %v1378_v0 = vld [vmem:[%s7161_s3 + $0x278] sm:$0xff]  ;;  %v1911_v1 = vld [vmem:[%s7163_s5 + $0x300] sm:$0xff]  ;;  %v884_v2 = vadd.f32 %v883_v60, %v864_v59 }
 0x142   :  { %1620 = vmatpush.msra.mxu3 %v1338_v3  ;;  %1660 = vmatpush.msra.mxu1 %v1340_v4  ;;  %v1362_v3 = vld [vmem:[%s7161_s3 + $0x1f8] sm:$0xff]  ;;  %v1815_v59 = vld [vmem:[%s7163_s5] sm:$0xff] }
 0x143   :  { %1680 = vmatpush.msra.mxu2 %v1341_v6  ;;  %1720 = vmatpush.msra.mxu0 %v1343_v7  ;;  %v904_v4 = vadd.f32 %v903_v63, %v884_v2  ;;  %v1346_v6 = vld [vmem:[%s7161_s3 + $0x178] sm:$0xff]  ;;  %v1999_v60 = vld [vmem:[%s7163_s5 + $0x5c0] sm:$0xff] }
 0x144   :  { %1621 = vmatpush.msra.mxu3 %v1322_v8  ;;  %1661 = vmatpush.msra.mxu1 %v1324_v9  ;;  %v943_v7 = vpop.f32.mrf.mxu2  ;;  %v1330_v8 = vld [vmem:[%s7161_s3 + $0xf8] sm:$0xff]  ;;  %v2319_v63 = vld [vmem:[%s7163_s5 + $0xfc0] sm:$0xff] }
 0x145   :  { %1681 = vmatpush.msra.mxu2 %v1325_v10  ;;  %1721 = vmatpush.msra.mxu0 %v1327_v11  ;;  %v924_v9 = vadd.f32 %v923_v5, %v904_v4  ;;  %v1314_v10 = vld [vmem:[%s7161_s3 + $0x78] sm:$0xff]  ;;  %v2135_v4 = vld [vmem:[%s7163_s5 + $0xa00] sm:$0xff] }
 0x146   :  { %3193 = vmatmul.msk.f32.vlgmr.msrb.gmra.mxu2 %vm1463_vm0, %v5103_v37  ;;  %3192 = vmatmul.msk.f32.vlgmr.msrb.gmra.mxu1 %vm1463_vm0, %v5103_v37  ;;  %v963_v12 = vpop.f32.mrf.mxu3  ;;  %v1983_v5 = vld [vmem:[%s7163_s5 + $0x540] sm:$0xff] }
 0x147   :  { %1622 = vmatpush.msra.mxu3 %v1306_v14  ;;  %1662 = vmatpush.msra.mxu1 %v1308_v15  ;;  %v944_v11 = vadd.f32 %v943_v7, %v924_v9  ;;  %v1920_v7 = vld [vmem:[%s7163_s5 + $0x348] sm:$0xff] }
 0x148   :  { %1682 = vmatpush.msra.mxu2 %v1309_v16  ;;  %1722 = vmatpush.msra.mxu0 %v1311_v17  ;;  %v983_v13 = vpop.f32.mrf.mxu0  ;;  %v1003_v16 = vpop.f32.mrf.mxu1 }
 0x149   :  { %3194 = vmatmul.msk.f32.vlgmr.msra.gmra.mxu3 %vm1463_vm0, %v5103_v37  ;;  %3199 = vmatmul.msk.f32.vlgmr.msra.gmra.mxu0 %vm1463_vm0, %v5103_v37  ;;  %v964_v14 = vadd.f32 %v963_v12, %v944_v11 }
 0x14a   :  { %1695 = vmatpush.msrb.mxu3 %v1422_v19  ;;  %1735 = vmatpush.msrb.mxu1 %v1424_v20  ;;  %v1903_v19 = vld [vmem:[%s7163_s5 + $0x2c0] sm:$0xff] }
 0x14b   :  { %1755 = vmatpush.msrb.mxu2 %v1425_v22  ;;  %2345 = vmatpush.msrb.mxu0 %v1935_v55  ;;  %v984_v15 = vadd.f32 %v983_v13, %v964_v14  ;;  %v1895_v22 = vld [vmem:[%s7163_s5 + $0x280] sm:$0xff] }
 0x14c   :  { %1696 = vmatpush.msrb.mxu3 %v1406_v23  ;;  %1736 = vmatpush.msrb.mxu1 %v1408_v24  ;;  %v1023_v17 = vpop.f32.mrf.mxu2  ;;  %v1887_v23 = vld [vmem:[%s7163_s5 + $0x240] sm:$0xff] }
 0x14d   :  { %1756 = vmatpush.msrb.mxu2 %v1409_v25  ;;  %2346 = vmatpush.msrb.mxu0 %v1927_v58  ;;  %v1004_v18 = vadd.f32 %v1003_v16, %v984_v15  ;;  %v2007_v55 = vld [vmem:[%s7163_s5 + $0x600] sm:$0xff]  ;;  %v1912_v15 = vld [vmem:[%s7163_s5 + $0x308] sm:$0xff] }
 0x14e   :  { %1697 = vmatpush.msrb.mxu3 %v1390_v27  ;;  %1737 = vmatpush.msrb.mxu1 %v1392_v28  ;;  %v1043_v21 = vpop.f32.mrf.mxu3  ;;  %v2063_v27 = vld [vmem:[%s7163_s5 + $0x7c0] sm:$0xff] }
 0x14f   :  { %1757 = vmatpush.msrb.mxu2 %v1393_v31  ;;  %3196 = vmatmul.msk.f32.vlgmr.msra.gmra.mxu1 %vm1463_vm0, %v5103_v37  ;;  %v1024_v20 = vadd.f32 %v1023_v17, %v1004_v18  ;;  %v1871_v31 = vld [vmem:[%s7163_s5 + $0x1c0] sm:$0xff] }
 0x150   :  { %1698 = vmatpush.msrb.mxu3 %v1374_v32  ;;  %1738 = vmatpush.msrb.mxu1 %v1376_v34  ;;  %v1063_v24 = vpop.f32.mrf.mxu0  ;;  %v1083_v29 = vpop.f32.mrf.mxu1  ;;  %v2055_v32 = vld [vmem:[%s7163_s5 + $0x780] sm:$0xff] }
 0x151   :  { %1758 = vmatpush.msrb.mxu2 %v1377_v30  ;;  %2347 = vmatpush.msrb.mxu0 %v1919_v62  ;;  %v1044_v25 = vadd.f32 %v1043_v21, %v1024_v20  ;;  %v1863_v34 = vld [vmem:[%s7163_s5 + $0x180] sm:$0xff]  ;;  %v1904_v20 = vld [vmem:[%s7163_s5 + $0x2c8] sm:$0xff] }
 0x152   :  { %3197 = vmatmul.msk.f32.vlgmr.msra.gmra.mxu2 %vm1463_vm0, %v5103_v37  ;;  %1699 = vmatpush.msrb.mxu3 %v1358_v33  ;;  %v2047_v30 = vld [vmem:[%s7163_s5 + $0x740] sm:$0xff] }
 0x153   :  { %1739 = vmatpush.msrb.mxu1 %v1360_v38  ;;  %1759 = vmatpush.msrb.mxu2 %v1361_v39  ;;  %v1064_v28 = vadd.f32 %v1063_v24, %v1044_v25  ;;  %v1855_v33 = vld [vmem:[%s7163_s5 + $0x140] sm:$0xff]  ;;  %v1896_v25 = vld [vmem:[%s7163_s5 + $0x288] sm:$0xff] }
 0x154   :  { %1700 = vmatpush.msrb.mxu3 %v1342_v40  ;;  %2348 = vmatpush.msrb.mxu0 %v1911_v1  ;;  %v1103_v35 = vpop.f32.mrf.mxu2  ;;  %v2191_v38 = vld [vmem:[%s7163_s5 + $0xbc0] sm:$0xff] }
 0x155   :  { %1740 = vmatpush.msrb.mxu1 %v1344_v42  ;;  %1760 = vmatpush.msrb.mxu2 %v1345_v43  ;;  %v1084_v39 = vadd.f32 %v1083_v29, %v1064_v28  ;;  %v2183_v40 = vld [vmem:[%s7163_s5 + $0xb80] sm:$0xff] }
 0x156   :  { %1701 = vmatpush.msrb.mxu3 %v1326_v45  ;;  %2349 = vmatpush.msrb.mxu0 %v1903_v19  ;;  %v2031_v42 = vld [vmem:[%s7163_s5 + $0x6c0] sm:$0xff]  ;;  %v1123_v44 = vpop.f32.mrf.mxu3 }
 0x157   :  { %1741 = vmatpush.msrb.mxu1 %v1328_v46  ;;  %1761 = vmatpush.msrb.mxu2 %v1329_v47  ;;  %v1104_v43 = vadd.f32 %v1103_v35, %v1084_v39  ;;  %v1839_v45 = vld [vmem:[%s7163_s5 + $0xc0] sm:$0xff] }
 0x158   :  { %1702 = vmatpush.msrb.mxu3 %v1310_v49  ;;  %2350 = vmatpush.msrb.mxu0 %v1895_v22  ;;  %v2023_v46 = vld [vmem:[%s7163_s5 + $0x680] sm:$0xff] }
 0x159   :  { %1742 = vmatpush.msrb.mxu1 %v1312_v51  ;;  %1762 = vmatpush.msrb.mxu2 %v1313_v52  ;;  %v2175_v47 = vld [vmem:[%s7163_s5 + $0xb40] sm:$0xff]  ;;  %v1124_v52 = vadd.f32 %v1123_v44, %v1104_v43  ;;  %v1872_v43 = vld [vmem:[%s7163_s5 + $0x1c8] sm:$0xff] }
 0x15a   :  { %3200 = vmatmul.msk.f32.vlgmr.msrb.gmra.mxu1 %vm1463_vm0, %v5103_v37  ;;  %3201 = vmatmul.msk.f32.vlgmr.msrb.gmra.mxu2 %vm1463_vm0, %v5103_v37  ;;  %v1831_v49 = vld [vmem:[%s7163_s5 + $0x80] sm:$0xff] }
 0x15b   :  { %1775 = vmatpush.msra.mxu3 %v1426_v54  ;;  %2351 = vmatpush.msrb.mxu0 %v1887_v23  ;;  %v2167_v51 = vld [vmem:[%s7163_s5 + $0xb00] sm:$0xff] }
 0x15c   :  { %3198 = vmatmul.msk.f32.vlgmr.msrb.gmra.mxu3 %vm1463_vm0, %v5103_v37  ;;  %2365 = vmatpush.msra.mxu1 %v2063_v27  ;;  %v1823_v54 = vld [vmem:[%s7163_s5 + $0x40] sm:$0xff] }
 0x15d   :  { %1776 = vmatpush.msra.mxu3 %v1410_v57  ;;  %2352 = vmatpush.msrb.mxu0 %v1879_v26  ;;  %v2151_v57 = vld [vmem:[%s7163_s5 + $0xa80] sm:$0xff] }
 0x15e   :  { %2366 = vmatpush.msra.mxu1 %v2055_v32  ;;  %2385 = vmatpush.msra.mxu2 %v2191_v38  ;;  %v2143_v62 = vld [vmem:[%s7163_s5 + $0xa40] sm:$0xff] }
 0x15f   :  { %1777 = vmatpush.msra.mxu3 %v1394_v61  ;;  %2353 = vmatpush.msrb.mxu0 %v1871_v31  ;;  %v1936_v61 = vld [vmem:[%s7163_s5 + $0x3c8] sm:$0xff]  ;;  %v1991_v1 = vld [vmem:[%s7163_s5 + $0x580] sm:$0xff] }
 0x160   :  { %2367 = vmatpush.msra.mxu1 %v2047_v30  ;;  %2386 = vmatpush.msra.mxu2 %v2183_v40  ;;  %v1975_v13 = vld [vmem:[%s7163_s5 + $0x500] sm:$0xff] }
 0x161   :  { %1778 = vmatpush.msra.mxu3 %v1378_v0  ;;  %2354 = vmatpush.msrb.mxu0 %v1863_v34  ;;  %v2127_v14 = vld [vmem:[%s7163_s5 + $0x9c0] sm:$0xff]  ;;  %v1888_v34 = vld [vmem:[%s7163_s5 + $0x248] sm:$0xff] }
 0x162   :  { %2368 = vmatpush.msra.mxu1 %v2039_v36  ;;  %2387 = vmatpush.msra.mxu2 %v2175_v47  ;;  %v2311_v16 = vld [vmem:[%s7163_s5 + $0xf80] sm:$0xff]  ;;  %v1864_v47 = vld [vmem:[%s7163_s5 + $0x188] sm:$0xff] }
 0x163   :  { %1779 = vmatpush.msra.mxu3 %v1362_v3  ;;  %2355 = vmatpush.msrb.mxu0 %v1855_v33  ;;  %v1928_v3 = vld [vmem:[%s7163_s5 + $0x388] sm:$0xff]  ;;  %v1967_v17 = vld [vmem:[%s7163_s5 + $0x4c0] sm:$0xff] }
 0x164   :  { %2369 = vmatpush.msra.mxu1 %v2031_v42  ;;  %2388 = vmatpush.msra.mxu2 %v2167_v51  ;;  %v2119_v18 = vld [vmem:[%s7163_s5 + $0x980] sm:$0xff]  ;;  %v1856_v51 = vld [vmem:[%s7163_s5 + $0x148] sm:$0xff] }
 0x165   :  { %1780 = vmatpush.msra.mxu3 %v1346_v6  ;;  %2356 = vmatpush.msrb.mxu0 %v1847_v41  ;;  %v2303_v21 = vld [vmem:[%s7163_s5 + $0xf40] sm:$0xff]  ;;  %v2064_v41 = vld [vmem:[%s7163_s5 + $0x7c8] sm:$0xff] }
 0x166   :  { %2370 = vmatpush.msra.mxu1 %v2023_v46  ;;  %2389 = vmatpush.msra.mxu2 %v2159_v53  ;;  %v1959_v22 = vld [vmem:[%s7163_s5 + $0x480] sm:$0xff]  ;;  %v2040_v53 = vld [vmem:[%s7163_s5 + $0x708] sm:$0xff] }
 0x167   :  { %1781 = vmatpush.msra.mxu3 %v1330_v8  ;;  %2357 = vmatpush.msrb.mxu0 %v1839_v45  ;;  %v2111_v24 = vld [vmem:[%s7163_s5 + $0x940] sm:$0xff]  ;;  %v2056_v45 = vld [vmem:[%s7163_s5 + $0x788] sm:$0xff] }
 0x168   :  { %2371 = vmatpush.msra.mxu1 %v2015_v50  ;;  %2390 = vmatpush.msra.mxu2 %v2151_v57  ;;  %v2295_v26 = vld [vmem:[%s7163_s5 + $0xf00] sm:$0xff]  ;;  %v2032_v57 = vld [vmem:[%s7163_s5 + $0x6c8] sm:$0xff] }
 0x169   :  { %1782 = vmatpush.msra.mxu3 %v1314_v10  ;;  %2358 = vmatpush.msrb.mxu0 %v1831_v49  ;;  %v1951_v31 = vld [vmem:[%s7163_s5 + $0x440] sm:$0xff]  ;;  %v2048_v49 = vld [vmem:[%s7163_s5 + $0x748] sm:$0xff] }
 0x16a   :  { %3202 = vmatmul.msk.f32.vlgmr.msra.gmra.mxu3 %vm1463_vm0, %v5103_v37  ;;  %2372 = vmatpush.msra.mxu1 %v2007_v55  ;;  %v2103_v32 = vld [vmem:[%s7163_s5 + $0x900] sm:$0xff]  ;;  %v1848_v55 = vld [vmem:[%s7163_s5 + $0x108] sm:$0xff] }
 0x16b   :  { %2359 = vmatpush.msrb.mxu0 %v1823_v54  ;;  %2405 = vmatpush.msrb.mxu3 %v2319_v63  ;;  %v2287_v35 = vld [vmem:[%s7163_s5 + $0xec0] sm:$0xff]  ;;  %v2192_v54 = vld [vmem:[%s7163_s5 + $0xbc8] sm:$0xff] }
 0x16c   :  { %2373 = vmatpush.msra.mxu1 %v1999_v60  ;;  %2391 = vmatpush.msra.mxu2 %v2143_v62  ;;  %v1943_v36 = vld [vmem:[%s7163_s5 + $0x400] sm:$0xff]  ;;  %v2176_v62 = vld [vmem:[%s7163_s5 + $0xb48] sm:$0xff] }
 0x16d   :  { %2360 = vmatpush.msrb.mxu0 %v1815_v59  ;;  %2406 = vmatpush.msrb.mxu3 %v2311_v16  ;;  %v2095_v38 = vld [vmem:[%s7163_s5 + $0x8c0] sm:$0xff]  ;;  %v1840_v59 = vld [vmem:[%s7163_s5 + $0xc8] sm:$0xff] }
 0x16e   :  { %v1143_v48 = vpop.f32.mrf.mxu0  ;;  %2374 = vmatpush.msra.mxu1 %v1991_v1  ;;  %2392 = vmatpush.msra.mxu2 %v2135_v4  ;;  %v2279_v40 = vld [vmem:[%s7163_s5 + $0xe80] sm:$0xff]  ;;  %v1832_v63 = vld [vmem:[%s7163_s5 + $0x88] sm:$0xff] }
 0x16f   :  { %v1144_v56 = vadd.f32 %v1143_v48, %v1124_v52  ;;  %2425 = vmatpush.msra.mxu0 %v1936_v61  ;;  %2407 = vmatpush.msrb.mxu3 %v2303_v21  ;;  %v2087_v42 = vld [vmem:[%s7163_s5 + $0x880] sm:$0xff]  ;;  %v2024_v61 = vld [vmem:[%s7163_s5 + $0x688] sm:$0xff] }
 0x170   :  { %2375 = vmatpush.msra.mxu1 %v1983_v5  ;;  %2393 = vmatpush.msra.mxu2 %v2127_v14  ;;  %v2271_v44 = vld [vmem:[%s7163_s5 + $0xe40] sm:$0xff]  ;;  %v2016_v1 = vld [vmem:[%s7163_s5 + $0x648] sm:$0xff] }
 0x171   :  { %v1163_v58 = vpop.f32.mrf.mxu1  ;;  %2426 = vmatpush.msra.mxu0 %v1928_v3  ;;  %2408 = vmatpush.msrb.mxu3 %v2295_v26  ;;  %v2079_v46 = vld [vmem:[%s7163_s5 + $0x840] sm:$0xff]  ;;  %v1824_v3 = vld [vmem:[%s7163_s5 + $0x48] sm:$0xff] }
 0x172   :  { %v1164_v2 = vadd.f32 %v1163_v58, %v1144_v56  ;;  %2376 = vmatpush.msra.mxu1 %v1975_v13  ;;  %2394 = vmatpush.msra.mxu2 %v2119_v18  ;;  %v2263_v48 = vld [vmem:[%s7163_s5 + $0xe00] sm:$0xff]  ;;  %v2184_v58 = vld [vmem:[%s7163_s5 + $0xb88] sm:$0xff] }
 0x173   :  { %2427 = vmatpush.msra.mxu0 %v1920_v7  ;;  %2409 = vmatpush.msrb.mxu3 %v2287_v35  ;;  %v2071_v50 = vld [vmem:[%s7163_s5 + $0x800] sm:$0xff]  ;;  %v2008_v5 = vld [vmem:[%s7163_s5 + $0x608] sm:$0xff] }
 0x174   :  { %v1183_v0 = vpop.f32.mrf.mxu2  ;;  %2377 = vmatpush.msra.mxu1 %v1967_v17  ;;  %2395 = vmatpush.msra.mxu2 %v2111_v24  ;;  %v2255_v52 = vld [vmem:[%s7163_s5 + $0xdc0] sm:$0xff]  ;;  %v1816_v7 = vld [vmem:[%s7163_s5 + $0x8] sm:$0xff] }
 0x175   :  { %v1184_v6 = vadd.f32 %v1183_v0, %v1164_v2  ;;  %2428 = vmatpush.msra.mxu0 %v1912_v15  ;;  %2410 = vmatpush.msrb.mxu3 %v2279_v40  ;;  %v2247_v56 = vld [vmem:[%s7163_s5 + $0xd80] sm:$0xff]  ;;  %v2168_v2 = vld [vmem:[%s7163_s5 + $0xb08] sm:$0xff] }
 0x176   :  { %2378 = vmatpush.msra.mxu1 %v1959_v22  ;;  %2396 = vmatpush.msra.mxu2 %v2103_v32  ;;  %v2239_v60 = vld [vmem:[%s7163_s5 + $0xd40] sm:$0xff]  ;;  %v1992_v13 = vld [vmem:[%s7163_s5 + $0x588] sm:$0xff] }
 0x177   :  { %v1203_v8 = vpop.f32.mrf.mxu3  ;;  %2429 = vmatpush.msra.mxu0 %v1904_v20  ;;  %2411 = vmatpush.msrb.mxu3 %v2271_v44  ;;  %v2231_v0 = vld [vmem:[%s7163_s5 + $0xd00] sm:$0xff]  ;;  %v2144_v14 = vld [vmem:[%s7163_s5 + $0xa48] sm:$0xff] }
 0x178   :  { %v1204_v9 = vadd.f32 %v1203_v8, %v1184_v6  ;;  %2379 = vmatpush.msra.mxu1 %v1951_v31  ;;  %2397 = vmatpush.msra.mxu2 %v2095_v38  ;;  %v2223_v4 = vld [vmem:[%s7163_s5 + $0xcc0] sm:$0xff]  ;;  %v2160_v6 = vld [vmem:[%s7163_s5 + $0xac8] sm:$0xff] }
 0x179   :  { %2430 = vmatpush.msra.mxu0 %v1896_v25  ;;  %2412 = vmatpush.msrb.mxu3 %v2263_v48  ;;  %v2215_v8 = vld [vmem:[%s7163_s5 + $0xc80] sm:$0xff]  ;;  %v1984_v16 = vld [vmem:[%s7163_s5 + $0x548] sm:$0xff] }
 0x17a   :  { %2380 = vmatpush.msra.mxu1 %v1943_v36  ;;  %2398 = vmatpush.msra.mxu2 %v2087_v42  ;;  %v2199_v15 = vld [vmem:[%s7163_s5 + $0xc00] sm:$0xff]  ;;  %v2136_v17 = vld [vmem:[%s7163_s5 + $0xa08] sm:$0xff] }
 0x17b   :  { %2431 = vmatpush.msra.mxu0 %v1888_v34  ;;  %2413 = vmatpush.msrb.mxu3 %v2255_v52  ;;  %v2320_v18 = vld [vmem:[%s7163_s5 + $0xfc8] sm:$0xff] }
 0x17c   :  { %2445 = vmatpush.msrb.mxu1 %v2064_v41  ;;  %2399 = vmatpush.msra.mxu2 %v2079_v46  ;;  %v2128_v20 = vld [vmem:[%s7163_s5 + $0x9c8] sm:$0xff] }
 0x17d   :  { %2414 = vmatpush.msrb.mxu3 %v2247_v56  ;;  %v2312_v21 = vld [vmem:[%s7163_s5 + $0xf88] sm:$0xff] }
 0x17e   :  { %2446 = vmatpush.msrb.mxu1 %v2056_v45  ;;  %2400 = vmatpush.msra.mxu2 %v2071_v50  ;;  %v2120_v24 = vld [vmem:[%s7163_s5 + $0x988] sm:$0xff] }
 0x17f   :  { %2415 = vmatpush.msrb.mxu3 %v2239_v60  ;;  %v2304_v25 = vld [vmem:[%s7163_s5 + $0xf48] sm:$0xff] }
 0x180   :  { %2447 = vmatpush.msrb.mxu1 %v2048_v49  ;;  %2465 = vmatpush.msrb.mxu2 %v2192_v54  ;;  %v1960_v26 = vld [vmem:[%s7163_s5 + $0x488] sm:$0xff] }
 0x181   :  { %2416 = vmatpush.msrb.mxu3 %v2231_v0  ;;  %v2296_v32 = vld [vmem:[%s7163_s5 + $0xf08] sm:$0xff] }
 0x182   :  { %2448 = vmatpush.msrb.mxu1 %v2040_v53  ;;  %2466 = vmatpush.msrb.mxu2 %v2184_v58  ;;  %v1952_v34 = vld [vmem:[%s7163_s5 + $0x448] sm:$0xff] }
 0x183   :  { %2417 = vmatpush.msrb.mxu3 %v2223_v4  ;;  %v2288_v35 = vld [vmem:[%s7163_s5 + $0xec8] sm:$0xff]  ;;  %v1937_v4 = vld [vmem:[%s7163_s5 + $0x3d0] sm:$0xff] }
 0x184   :  { %2449 = vmatpush.msrb.mxu1 %v2032_v57  ;;  %2467 = vmatpush.msrb.mxu2 %v2176_v62  ;;  %v2280_v41 = vld [vmem:[%s7163_s5 + $0xe88] sm:$0xff] }
 0x185   :  { %2418 = vmatpush.msrb.mxu3 %v2215_v8  ;;  %v2272_v44 = vld [vmem:[%s7163_s5 + $0xe48] sm:$0xff] }
 0x186   :  { %2450 = vmatpush.msrb.mxu1 %v2024_v61  ;;  %2468 = vmatpush.msrb.mxu2 %v2168_v2  ;;  %v2080_v50 = vld [vmem:[%s7163_s5 + $0x848] sm:$0xff] }
 0x187   :  { %v2072_v52 = vld [vmem:[%s7163_s5 + $0x808] sm:$0xff] }
 0x188   :  { %2451 = vmatpush.msrb.mxu1 %v2016_v1  ;;  %2469 = vmatpush.msrb.mxu2 %v2160_v6  ;;  %v2256_v54 = vld [vmem:[%s7163_s5 + $0xdc8] sm:$0xff]  ;;  %v1929_v6 = vld [vmem:[%s7163_s5 + $0x390] sm:$0xff] }
 0x189   :  { %v2240_v61 = vld [vmem:[%s7163_s5 + $0xd48] sm:$0xff] }
 0x18a   :  { %2452 = vmatpush.msrb.mxu1 %v2008_v5  ;;  %v2232_v1 = vld [vmem:[%s7163_s5 + $0xd08] sm:$0xff] }
 0x18b   :  { %v2224_v5 = vld [vmem:[%s7163_s5 + $0xcc8] sm:$0xff] }
 0x190   :  { %v1223_v10 = vpop.f32.mrf.mxu0 }
 0x191   :  { %v1224_v11 = vadd.f32 %v1223_v10, %v1204_v9  ;;  %v2000_v9 = vld [vmem:[%s7163_s5 + $0x5c8] sm:$0xff] }
 0x192   :  { %v2152_v10 = vld [vmem:[%s7163_s5 + $0xa88] sm:$0xff]  ;;  %2453 = vmatpush.msrb.mxu1 %v2000_v9 }
 0x193   :  { %v1243_v12 = vpop.f32.mrf.mxu1  ;;  %2470 = vmatpush.msrb.mxu2 %v2152_v10  ;;  %v2216_v10 = vld [vmem:[%s7163_s5 + $0xc88] sm:$0xff] }
 0x194   :  { %v1244_v19 = vadd.f32 %v1243_v12, %v1224_v11  ;;  %v2207_v12 = vld [vmem:[%s7163_s5 + $0xc40] sm:$0xff]  ;;  %2454 = vmatpush.msrb.mxu1 %v1992_v13  ;;  %v1913_v13 = vld [vmem:[%s7163_s5 + $0x310] sm:$0xff] }
 0x195   :  { %2419 = vmatpush.msrb.mxu3 %v2207_v12  ;;  %2471 = vmatpush.msrb.mxu2 %v2144_v14  ;;  %v1921_v12 = vld [vmem:[%s7163_s5 + $0x350] sm:$0xff]  ;;  %v2208_v14 = vld [vmem:[%s7163_s5 + $0xc48] sm:$0xff] }
 0x196   :  { %v1263_v23 = vpop.f32.mrf.mxu2  ;;  %2455 = vmatpush.msrb.mxu1 %v1984_v16 }
 0x197   :  { %v1264_v27 = vadd.f32 %v1263_v23, %v1244_v19  ;;  %2420 = vmatpush.msrb.mxu3 %v2199_v15  ;;  %2472 = vmatpush.msrb.mxu2 %v2136_v17  ;;  %v1976_v19 = vld [vmem:[%s7163_s5 + $0x508] sm:$0xff] }
 0x198   :  { %2456 = vmatpush.msrb.mxu1 %v1976_v19  ;;  %v1968_v23 = vld [vmem:[%s7163_s5 + $0x4c8] sm:$0xff] }
 0x199   :  { %v1283_v28 = vpop.f32.mrf.mxu3  ;;  %2485 = vmatpush.msra.mxu3 %v2320_v18  ;;  %2473 = vmatpush.msrb.mxu2 %v2128_v20  ;;  %v2200_v19 = vld [vmem:[%s7163_s5 + $0xc08] sm:$0xff] }
 0x19a   :  { %v1284_v29 = vadd.f32 %v1283_v28, %v1264_v27  ;;  %2457 = vmatpush.msrb.mxu1 %v1968_v23  ;;  %v2112_v27 = vld [vmem:[%s7163_s5 + $0x948] sm:$0xff]  ;;  %v5671_v28 = vld [vmem:[%s7162_s4] sm:$0xff]  ;;  %v1905_v23 = vld [vmem:[%s7163_s5 + $0x2d0] sm:$0xff] }
 0x19b   :  { %2486 = vmatpush.msra.mxu3 %v2312_v21  ;;  %2474 = vmatpush.msrb.mxu2 %v2120_v24  ;;  %v1431_v36 = vperm.slane %v5671_v28, 0  ;;  %v1436_v8 = vperm.slane %v5671_v28, 5  ;;  %v1433_v20 = vperm.slane %v5671_v28, 2  ;;  %v1437_v24 = vperm.slane %v5671_v28, 6 }
 0x19c   :  { %v1286_v30 = vsub.f32 %v5103_v37, %v1284_v29  ;;  %v1880_v37 = vld [vmem:[%s7163_s5 + $0x208] sm:$0xff]  ;;  %2458 = vmatpush.msrb.mxu1 %v1960_v26  ;;  %v1897_v26 = vld [vmem:[%s7163_s5 + $0x290] sm:$0xff] }
 0x19d   :  { %2432 = vmatpush.msra.mxu0 %v1880_v37  ;;  %2487 = vmatpush.msra.mxu3 %v2304_v25  ;;  %v5676_v29 = vld [vmem:[%s7162_s4 + $0x8] sm:$0xff] }
 0x19e   :  { %v1287_v33 = vmul.f32 %v1286_v30, %v1286_v30  ;;  %2475 = vmatpush.msrb.mxu2 %v2112_v27  ;;  %v2104_v30 = vld [vmem:[%s7163_s5 + $0x908] sm:$0xff]  ;;  %2459 = vmatpush.msrb.mxu1 %v1952_v34  ;;  %v1439_v38 = vperm.slane %v5676_v29, 0  ;;  %v1443_v49 = vperm.slane %v5676_v29, 4  ;;  %v1440_v9 = vperm.slane %v5676_v29, 1 }
 0x19f   :  { %2433 = vmatpush.msra.mxu0 %v1872_v43  ;;  %2488 = vmatpush.msra.mxu3 %v2296_v32  ;;  %v1944_v37 = vld [vmem:[%s7163_s5 + $0x408] sm:$0xff]  ;;  %v1444_v18 = vperm.slane %v5676_v29, 5 }
 0x1a0   :  { %v1289_v39 = vsel %vm1288_vm1, %v1287_v33, 0.0  ;;  %v1435_v33 = vperm.slane %v5671_v28, 4  ;;  %2476 = vmatpush.msrb.mxu2 %v2104_v30  ;;  %2460 = vmatpush.msrb.mxu1 %v1944_v37  ;;  %v2088_v43 = vld [vmem:[%s7163_s5 + $0x888] sm:$0xff]  ;;  %v1445_v37 = vperm.slane %v5676_v29, 6 }
 0x1a1   :  { %1290 = vadd.xlane.f32.xlu0 %v1289_v39  ;;  %2434 = vmatpush.msra.mxu0 %v1864_v47  ;;  %v2096_v39 = vld [vmem:[%s7163_s5 + $0x8c8] sm:$0xff] }
 0x1a2   :  { %2489 = vmatpush.msra.mxu3 %v2288_v35  ;;  %2477 = vmatpush.msrb.mxu2 %v2096_v39  ;;  %v1889_v35 = vld [vmem:[%s7163_s5 + $0x250] sm:$0xff] }
 0x1a3   :  { %2435 = vmatpush.msra.mxu0 %v1856_v51  ;;  %v2264_v51 = vld [vmem:[%s7163_s5 + $0xe08] sm:$0xff] }
 0x1a4   :  { %2490 = vmatpush.msra.mxu3 %v2280_v41  ;;  %2478 = vmatpush.msrb.mxu2 %v2088_v43 }
 0x1a5   :  { %2436 = vmatpush.msra.mxu0 %v1848_v55 }
 0x1a6   :  { %2491 = vmatpush.msra.mxu3 %v2272_v44  ;;  %2479 = vmatpush.msrb.mxu2 %v2080_v50  ;;  %v2065_v50 = vld [vmem:[%s7163_s5 + $0x7d0] sm:$0xff] }
 0x1a7   :  { %2437 = vmatpush.msra.mxu0 %v1840_v59  ;;  %v2248_v59 = vld [vmem:[%s7163_s5 + $0xd88] sm:$0xff] }
 0x1a8   :  { %2492 = vmatpush.msra.mxu3 %v2264_v51  ;;  %2480 = vmatpush.msrb.mxu2 %v2072_v52  ;;  %v1865_v51 = vld [vmem:[%s7163_s5 + $0x190] sm:$0xff] }
 0x1a9   :  { %2438 = vmatpush.msra.mxu0 %v1832_v63 }
 0x1aa   :  { %2493 = vmatpush.msra.mxu3 %v2256_v54  ;;  %v1857_v54 = vld [vmem:[%s7163_s5 + $0x150] sm:$0xff] }
 0x1ab   :  { %2439 = vmatpush.msra.mxu0 %v1824_v3 }
 0x1ac   :  { %2494 = vmatpush.msra.mxu3 %v2248_v59  ;;  %v1849_v59 = vld [vmem:[%s7163_s5 + $0x110] sm:$0xff] }
 0x1ad   :  { %2440 = vmatpush.msra.mxu0 %v1816_v7  ;;  %v1432_v7 = vperm.slane %v5671_v28, 1 }
 0x1ae   :  { %2495 = vmatpush.msra.mxu3 %v2240_v61  ;;  %v2041_v61 = vld [vmem:[%s7163_s5 + $0x710] sm:$0xff] }
 0x1b0   :  { %v1564_v11 = vpop.f32.mrf.mxu0  ;;  %2496 = vmatpush.msra.mxu3 %v2232_v1  ;;  %v1438_v1 = vperm.slane %v5671_v28, 7 }
 0x1b1   :  { %v1565_v45 = vadd.f32 %v1564_v11, %v1435_v33 }
 0x1b2   :  { %2497 = vmatpush.msra.mxu3 %v2224_v5  ;;  %v1833_v5 = vld [vmem:[%s7163_s5 + $0x90] sm:$0xff] }
 0x1b3   :  { %v5651_v22 = vpop.f32.mrf.mxu1  ;;  %v1791_v55 = vmax.f32 %v1565_v45, 0.0  ;;  %v1873_v45 = vld [vmem:[%s7163_s5 + $0x1d0] sm:$0xff] }
 0x1b4   :  { %2498 = vmatpush.msra.mxu3 %v2216_v10  ;;  %v1505_v15 = vadd.f32 %v5651_v22, %v1432_v7  ;;  %v1441_v22 = vperm.slane %v5676_v29, 2  ;;  %v2177_v7 = vld [vmem:[%s7163_s5 + $0xb50] sm:$0xff] }
 0x1b6   :  { %v1484_v40 = vpop.f32.mrf.mxu3  ;;  %2499 = vmatpush.msra.mxu3 %v2208_v14  ;;  %v1788_v27 = vmax.f32 %v1505_v15, 0.0  ;;  %v2169_v14 = vld [vmem:[%s7163_s5 + $0xb10] sm:$0xff] }
 0x1b7   :  { %v1485_v46 = vadd.f32 %v1484_v40, %v1431_v36  ;;  %v1881_v40 = vld [vmem:[%s7163_s5 + $0x210] sm:$0xff] }
 0x1b8   :  { %2500 = vmatpush.msra.mxu3 %v2200_v19  ;;  %v1817_v15 = vld [vmem:[%s7163_s5 + $0x10] sm:$0xff] }
 0x1b9   :  { %v5702_v42 = vpop.f32.mrf.mxu2  ;;  %v1787_v56 = vmax.f32 %v1485_v46, 0.0 }
 0x1ba   :  { %v1525_v30 = vadd.f32 %v5702_v42, %v1433_v20 }
 0x1bb   :  { %v1803_v62 = vmax.f32 %v1787_v56, %v1791_v55 }
 0x1bc   :  { %v1644_v31 = vpop.f32.mrf.mxu0  ;;  %v1789_v44 = vmax.f32 %v1525_v30, 0.0  ;;  %v1985_v30 = vld [vmem:[%s7163_s5 + $0x550] sm:$0xff] }
 0x1bd   :  { %v1645_v47 = vadd.f32 %v1644_v31, %v1439_v38 }
 0x1bf   :  { %v1795_v57 = vmax.f32 %v1645_v47, 0.0 }
 0x1c2   :  { %v5750_v11 = vpop.f32.mrf.mxu3 }
 0x1c3   :  { %v1584_v48 = vpop.f32.mrf.mxu1 }
 0x1c4   :  { %v1585_v16 = vadd.f32 %v1584_v48, %v1436_v8  ;;  %v1825_v8 = vld [vmem:[%s7163_s5 + $0x50] sm:$0xff] }
 0x1c6   :  { %v1724_v53 = vpop.f32.mrf.mxu0  ;;  %v1792_v31 = vmax.f32 %v1585_v16, 0.0 }
 0x1c7   :  { %v1725_v58 = vadd.f32 %v1724_v53, %v1443_v49  ;;  %v2057_v53 = vld [vmem:[%s7163_s5 + $0x790] sm:$0xff] }
 0x1c8   :  { %v1804_v41 = vmax.f32 %v1788_v27, %v1792_v31  ;;  %v2145_v27 = vld [vmem:[%s7163_s5 + $0xa50] sm:$0xff]  ;;  %v1930_v31 = vld [vmem:[%s7163_s5 + $0x398] sm:$0xff] }
 0x1c9   :  { %v1799_v60 = vmax.f32 %v1725_v58, 0.0  ;;  %v1604_v0 = vpop.f32.mrf.mxu2 }
 0x1ca   :  { %v1605_v33 = vadd.f32 %v1604_v0, %v1437_v24  ;;  %v1434_v0 = vperm.slane %v5671_v28, 3  ;;  %v2025_v28 = vld [vmem:[%s7163_s5 + $0x690] sm:$0xff]  ;;  %v1938_v24 = vld [vmem:[%s7163_s5 + $0x3d8] sm:$0xff] }
 0x1cb   :  { %v1807_v63 = vmax.f32 %v1795_v57, %v1799_v60  ;;  %v2049_v57 = vld [vmem:[%s7163_s5 + $0x750] sm:$0xff] }
 0x1cc   :  { %v1664_v3 = vpop.f32.mrf.mxu1  ;;  %v1624_v39 = vpop.f32.mrf.mxu3  ;;  %v1793_v46 = vmax.f32 %v1605_v33, 0.0  ;;  %v1922_v33 = vld [vmem:[%s7163_s5 + $0x358] sm:$0xff] }
 0x1cd   :  { %v5732_v2 = vmax.f32 %v1803_v62, %v1807_v63  ;;  %v1665_v17 = vadd.f32 %v1664_v3, %v1440_v9  ;;  %v2193_v62 = vld [vmem:[%s7163_s5 + $0xbd0] sm:$0xff]  ;;  %v1545_v9 = vadd.f32 %v5750_v11, %v1434_v0  ;;  %v1625_v10 = vadd.f32 %v1624_v39, %v1438_v1  ;;  %v2058_v0 = vld [vmem:[%s7163_s5 + $0x798] sm:$0xff] }
 0x1ce   :  { %v1805_v55 = vmax.f32 %v1789_v44, %v1793_v46  ;;  %v1841_v63 = vld [vmem:[%s7163_s5 + $0xd0] sm:$0xff] }
 0x1cf   :  { %2361 = vmatmul.f32.vlgmr.msrb.gmra.mxu0 %v5732_v2  ;;  %v1796_v32 = vmax.f32 %v1665_v17, 0.0  ;;  %v2033_v3 = vld [vmem:[%s7163_s5 + $0x6d0] sm:$0xff]  ;;  %v1794_v19 = vmax.f32 %v1625_v10, 0.0  ;;  %v1850_v10 = vld [vmem:[%s7163_s5 + $0x118] sm:$0xff] }
 0x1d0   :  { %2505 = vmatpush.msrb.mxu0 %v1937_v4  ;;  %v2185_v4 = vld [vmem:[%s7163_s5 + $0xb90] sm:$0xff] }
 0x1d1   :  { %v2161_v11 = vld [vmem:[%s7163_s5 + $0xad0] sm:$0xff] }
 0x1d2   :  { %2506 = vmatpush.msrb.mxu0 %v1929_v6  ;;  %v1442_v6 = vperm.slane %v5676_v29, 3  ;;  %v2129_v39 = vld [vmem:[%s7163_s5 + $0x9d0] sm:$0xff] }
 0x1d3   :  { %v2121_v44 = vld [vmem:[%s7163_s5 + $0x990] sm:$0xff] }
 0x1d4   :  { %2507 = vmatpush.msrb.mxu0 %v1921_v12  ;;  %v1446_v12 = vperm.slane %v5676_v29, 7  ;;  %v2009_v29 = vld [vmem:[%s7163_s5 + $0x610] sm:$0xff] }
 0x1d5   :  { %v1684_v21 = vpop.f32.mrf.mxu2  ;;  %v1961_v46 = vld [vmem:[%s7163_s5 + $0x490] sm:$0xff] }
 0x1d6   :  { %2508 = vmatpush.msrb.mxu0 %v1913_v13  ;;  %v1685_v36 = vadd.f32 %v1684_v21, %v1441_v22  ;;  %v2017_v13 = vld [vmem:[%s7163_s5 + $0x650] sm:$0xff] }
 0x1d7   :  { %v1744_v25 = vpop.f32.mrf.mxu1  ;;  %2441 = vmatmul.f32.vlgmr.msra.gmra.mxu0 %v5732_v2  ;;  %v2001_v21 = vld [vmem:[%s7163_s5 + $0x5d0] sm:$0xff] }
 0x1d8   :  { %v1745_v34 = vadd.f32 %v1744_v25, %v1444_v18  ;;  %2509 = vmatpush.msrb.mxu0 %v1905_v23  ;;  %v1797_v47 = vmax.f32 %v1685_v36, 0.0  ;;  %v1790_v18 = vmax.f32 %v1545_v9, 0.0  ;;  %v2153_v23 = vld [vmem:[%s7163_s5 + $0xa90] sm:$0xff]  ;;  %v2194_v9 = vld [vmem:[%s7163_s5 + $0xbd8] sm:$0xff] }
 0x1d9   :  { %v2081_v1 = vld [vmem:[%s7163_s5 + $0x850] sm:$0xff] }
 0x1da   :  { %v1800_v38 = vmax.f32 %v1745_v34, 0.0  ;;  %2510 = vmatpush.msrb.mxu0 %v1897_v26  ;;  %v1993_v26 = vld [vmem:[%s7163_s5 + $0x590] sm:$0xff] }
 0x1dc   :  { %v1808_v43 = vmax.f32 %v1796_v32, %v1800_v38  ;;  %2511 = vmatpush.msrb.mxu0 %v1889_v35  ;;  %v1806_v32 = vmax.f32 %v1790_v18, %v1794_v19  ;;  %v2137_v35 = vld [vmem:[%s7163_s5 + $0xa10] sm:$0xff]  ;;  %v2018_v19 = vld [vmem:[%s7163_s5 + $0x658] sm:$0xff] }
 0x1dd   :  { %v1764_v42 = vpop.f32.mrf.mxu2  ;;  %v2321_v38 = vld [vmem:[%s7163_s5 + $0xfd0] sm:$0xff] }
 0x1de   :  { %v5787_v48 = vmax.f32 %v1804_v41, %v1808_v43  ;;  %v1765_v49 = vadd.f32 %v1764_v42, %v1445_v37  ;;  %2512 = vmatpush.msrb.mxu0 %v1881_v40  ;;  %v1977_v37 = vld [vmem:[%s7163_s5 + $0x510] sm:$0xff]  ;;  %v1914_v40 = vld [vmem:[%s7163_s5 + $0x318] sm:$0xff] }
 0x1df   :  { %v1704_v58 = vpop.f32.mrf.mxu3  ;;  %v2313_v41 = vld [vmem:[%s7163_s5 + $0xf90] sm:$0xff]  ;;  %v1906_v42 = vld [vmem:[%s7163_s5 + $0x2d8] sm:$0xff] }
 0x1e0   :  { %v1801_v52 = vmax.f32 %v1765_v49, 0.0  ;;  %2381 = vmatmul.f32.vlgmr.msra.gmra.mxu1 %v5787_v48  ;;  %2513 = vmatpush.msrb.mxu0 %v1873_v45  ;;  %v1705_v16 = vadd.f32 %v1704_v58, %v1442_v6  ;;  %v1969_v43 = vld [vmem:[%s7163_s5 + $0x4d0] sm:$0xff]  ;;  %v1898_v49 = vld [vmem:[%s7163_s5 + $0x298] sm:$0xff] }
 0x1e1   :  { %2525 = vmatpush.msra.mxu1 %v2065_v50  ;;  %v2305_v45 = vld [vmem:[%s7163_s5 + $0xf50] sm:$0xff] }
 0x1e2   :  { %v1809_v56 = vmax.f32 %v1797_v47, %v1801_v52  ;;  %2514 = vmatpush.msrb.mxu0 %v1865_v51  ;;  %v1798_v22 = vmax.f32 %v1705_v16, 0.0  ;;  %v2113_v47 = vld [vmem:[%s7163_s5 + $0x950] sm:$0xff] }
 0x1e3   :  { %2526 = vmatpush.msra.mxu1 %v2057_v53  ;;  %v2297_v50 = vld [vmem:[%s7163_s5 + $0xf10] sm:$0xff]  ;;  %v1890_v53 = vld [vmem:[%s7163_s5 + $0x258] sm:$0xff] }
 0x1e4   :  { %v5808_v60 = vmax.f32 %v1805_v55, %v1809_v56  ;;  %2515 = vmatpush.msrb.mxu0 %v1857_v54  ;;  %v1953_v51 = vld [vmem:[%s7163_s5 + $0x450] sm:$0xff] }
 0x1e5   :  { %2527 = vmatpush.msra.mxu1 %v2049_v57  ;;  %v2105_v52 = vld [vmem:[%s7163_s5 + $0x910] sm:$0xff]  ;;  %v1882_v57 = vld [vmem:[%s7163_s5 + $0x218] sm:$0xff] }
 0x1e6   :  { %2401 = vmatmul.f32.vlgmr.msra.gmra.mxu2 %v5808_v60  ;;  %2516 = vmatpush.msrb.mxu0 %v1849_v59  ;;  %v1945_v54 = vld [vmem:[%s7163_s5 + $0x410] sm:$0xff]  ;;  %v2066_v59 = vld [vmem:[%s7163_s5 + $0x7d8] sm:$0xff] }
 0x1e7   :  { %2528 = vmatpush.msra.mxu1 %v2041_v61  ;;  %2545 = vmatpush.msra.mxu2 %v2193_v62  ;;  %v2289_v55 = vld [vmem:[%s7163_s5 + $0xed0] sm:$0xff]  ;;  %v1874_v62 = vld [vmem:[%s7163_s5 + $0x1d8] sm:$0xff] }
 0x1e8   :  { %2461 = vmatmul.f32.vlgmr.msrb.gmra.mxu1 %v5787_v48  ;;  %2517 = vmatpush.msrb.mxu0 %v1841_v63  ;;  %v2097_v56 = vld [vmem:[%s7163_s5 + $0x8d0] sm:$0xff] }
 0x1e9   :  { %2529 = vmatpush.msra.mxu1 %v2033_v3  ;;  %2546 = vmatpush.msra.mxu2 %v2185_v4  ;;  %v2281_v58 = vld [vmem:[%s7163_s5 + $0xe90] sm:$0xff]  ;;  %v1866_v3 = vld [vmem:[%s7163_s5 + $0x198] sm:$0xff] }
 0x1ea   :  { %2518 = vmatpush.msrb.mxu0 %v1833_v5  ;;  %v2089_v61 = vld [vmem:[%s7163_s5 + $0x890] sm:$0xff]  ;;  %v2050_v5 = vld [vmem:[%s7163_s5 + $0x758] sm:$0xff] }
 0x1eb   :  { %2530 = vmatpush.msra.mxu1 %v2025_v28  ;;  %2547 = vmatpush.msra.mxu2 %v2177_v7  ;;  %v2273_v63 = vld [vmem:[%s7163_s5 + $0xe50] sm:$0xff]  ;;  %v1858_v28 = vld [vmem:[%s7163_s5 + $0x158] sm:$0xff] }
 0x1ec   :  { %2519 = vmatpush.msrb.mxu0 %v1825_v8  ;;  %v2265_v4 = vld [vmem:[%s7163_s5 + $0xe10] sm:$0xff]  ;;  %v2042_v8 = vld [vmem:[%s7163_s5 + $0x718] sm:$0xff] }
 0x1ed   :  { %v1784_v17 = vpop.f32.mrf.mxu3  ;;  %2531 = vmatpush.msra.mxu1 %v2017_v13  ;;  %2548 = vmatpush.msra.mxu2 %v2169_v14  ;;  %v2073_v6 = vld [vmem:[%s7163_s5 + $0x810] sm:$0xff]  ;;  %v2034_v13 = vld [vmem:[%s7163_s5 + $0x6d8] sm:$0xff] }
 0x1ee   :  { %v1785_v20 = vadd.f32 %v1784_v17, %v1446_v12  ;;  %2481 = vmatmul.f32.vlgmr.msrb.gmra.mxu2 %v5808_v60  ;;  %2520 = vmatpush.msrb.mxu0 %v1817_v15  ;;  %v2257_v7 = vld [vmem:[%s7163_s5 + $0xdd0] sm:$0xff]  ;;  %v2186_v14 = vld [vmem:[%s7163_s5 + $0xb98] sm:$0xff] }
 0x1ef   :  { %2532 = vmatpush.msra.mxu1 %v2009_v29  ;;  %2549 = vmatpush.msra.mxu2 %v2161_v11  ;;  %v2249_v12 = vld [vmem:[%s7163_s5 + $0xd90] sm:$0xff]  ;;  %v1842_v15 = vld [vmem:[%s7163_s5 + $0xd8] sm:$0xff] }
 0x1f0   :  { %v1802_v25 = vmax.f32 %v1785_v20, 0.0  ;;  %2521 = vmatmul.f32.vlgmr.msrb.gmra.mxu0 %v5732_v2  ;;  %v2241_v16 = vld [vmem:[%s7163_s5 + $0xd50] sm:$0xff]  ;;  %v2026_v29 = vld [vmem:[%s7163_s5 + $0x698] sm:$0xff] }
 0x1f1   :  { %2533 = vmatpush.msra.mxu1 %v2001_v21  ;;  %2550 = vmatpush.msra.mxu2 %v2153_v23  ;;  %v2178_v11 = vld [vmem:[%s7163_s5 + $0xb58] sm:$0xff]  ;;  %v2233_v18 = vld [vmem:[%s7163_s5 + $0xd10] sm:$0xff] }
 0x1f2   :  { %v1810_v34 = vmax.f32 %v1798_v22, %v1802_v25  ;;  %2585 = vmatpush.msra.mxu0 %v1938_v24  ;;  %v1834_v17 = vld [vmem:[%s7163_s5 + $0x98] sm:$0xff]  ;;  %v2225_v23 = vld [vmem:[%s7163_s5 + $0xcd0] sm:$0xff] }
 0x1f3   :  { %2534 = vmatpush.msra.mxu1 %v1993_v26  ;;  %2551 = vmatpush.msra.mxu2 %v2145_v27  ;;  %v2170_v20 = vld [vmem:[%s7163_s5 + $0xb18] sm:$0xff]  ;;  %v2217_v26 = vld [vmem:[%s7163_s5 + $0xc90] sm:$0xff] }
 0x1f4   :  { %v5888_v36 = vmax.f32 %v1806_v32, %v1810_v34  ;;  %2586 = vmatpush.msra.mxu0 %v1930_v31  ;;  %v1826_v21 = vld [vmem:[%s7163_s5 + $0x58] sm:$0xff]  ;;  %v1939_v32 = vld [vmem:[%s7163_s5 + $0x3e0] sm:$0xff]  ;;  %v2209_v34 = vld [vmem:[%s7163_s5 + $0xc50] sm:$0xff] }
 0x1f5   :  { %2535 = vmatpush.msra.mxu1 %v1985_v30  ;;  %2552 = vmatpush.msra.mxu2 %v2137_v35  ;;  %v2010_v24 = vld [vmem:[%s7163_s5 + $0x618] sm:$0xff] }
 0x1f6   :  { %2587 = vmatpush.msra.mxu0 %v1922_v33  ;;  %2421 = vmatmul.f32.vlgmr.msrb.gmra.mxu3 %v5888_v36  ;;  %v2162_v22 = vld [vmem:[%s7163_s5 + $0xad8] sm:$0xff]  ;;  %v1931_v33 = vld [vmem:[%s7163_s5 + $0x3a0] sm:$0xff] }
 0x1f7   :  { %2565 = vmatpush.msrb.mxu3 %v2321_v38  ;;  %2536 = vmatpush.msra.mxu1 %v1977_v37  ;;  %v1818_v25 = vld [vmem:[%s7163_s5 + $0x18] sm:$0xff]  ;;  %v2201_v38 = vld [vmem:[%s7163_s5 + $0xc10] sm:$0xff] }
 0x1f8   :  { %2553 = vmatpush.msra.mxu2 %v2129_v39  ;;  %2588 = vmatpush.msra.mxu0 %v1914_v40  ;;  %v2002_v27 = vld [vmem:[%s7163_s5 + $0x5d8] sm:$0xff] }
 0x1f9   :  { %2566 = vmatpush.msrb.mxu3 %v2313_v41  ;;  %2537 = vmatpush.msra.mxu1 %v1969_v43  ;;  %v2154_v31 = vld [vmem:[%s7163_s5 + $0xa98] sm:$0xff]  ;;  %v1923_v41 = vld [vmem:[%s7163_s5 + $0x360] sm:$0xff] }
 0x1fa   :  { %2554 = vmatpush.msra.mxu2 %v2121_v44  ;;  %2589 = vmatpush.msra.mxu0 %v1906_v42  ;;  %v1994_v30 = vld [vmem:[%s7163_s5 + $0x598] sm:$0xff] }
 0x1fb   :  { %2567 = vmatpush.msrb.mxu3 %v2305_v45  ;;  %2538 = vmatpush.msra.mxu1 %v1961_v46  ;;  %v2146_v35 = vld [vmem:[%s7163_s5 + $0xa58] sm:$0xff] }
 0x1fc   :  { %2555 = vmatpush.msra.mxu2 %v2113_v47  ;;  %2590 = vmatpush.msra.mxu0 %v1898_v49  ;;  %v1986_v37 = vld [vmem:[%s7163_s5 + $0x558] sm:$0xff]  ;;  %v1915_v47 = vld [vmem:[%s7163_s5 + $0x320] sm:$0xff] }
 0x1fd   :  { %2568 = vmatpush.msrb.mxu3 %v2297_v50  ;;  %2539 = vmatpush.msra.mxu1 %v1953_v51  ;;  %v2138_v40 = vld [vmem:[%s7163_s5 + $0xa18] sm:$0xff] }
 0x1fe   :  { %2556 = vmatpush.msra.mxu2 %v2105_v52  ;;  %2591 = vmatpush.msra.mxu0 %v1890_v53  ;;  %v1978_v44 = vld [vmem:[%s7163_s5 + $0x518] sm:$0xff]  ;;  %v1907_v53 = vld [vmem:[%s7163_s5 + $0x2e0] sm:$0xff] }
 0x1ff   :  { %2501 = vmatmul.f32.vlgmr.msra.gmra.mxu3 %v5888_v36  ;;  %2540 = vmatpush.msra.mxu1 %v1945_v54  ;;  %v2322_v42 = vld [vmem:[%s7163_s5 + $0xfd8] sm:$0xff] }
 0x200   :  { %2569 = vmatpush.msrb.mxu3 %v2289_v55  ;;  %2557 = vmatpush.msra.mxu2 %v2097_v56  ;;  %v2130_v45 = vld [vmem:[%s7163_s5 + $0x9d8] sm:$0xff] }
 0x201   :  { %2592 = vmatpush.msra.mxu0 %v1882_v57  ;;  %2541 = vmatmul.f32.vlgmr.msra.gmra.mxu1 %v5787_v48  ;;  %v1970_v49 = vld [vmem:[%s7163_s5 + $0x4d8] sm:$0xff] }
 0x202   :  { %2570 = vmatpush.msrb.mxu3 %v2281_v58  ;;  %2605 = vmatpush.msrb.mxu1 %v2066_v59  ;;  %v2314_v50 = vld [vmem:[%s7163_s5 + $0xf98] sm:$0xff]  ;;  %v1899_v58 = vld [vmem:[%s7163_s5 + $0x2a0] sm:$0xff] }
 0x203   :  { %2558 = vmatpush.msra.mxu2 %v2089_v61  ;;  %2593 = vmatpush.msra.mxu0 %v1874_v62  ;;  %v2122_v51 = vld [vmem:[%s7163_s5 + $0x998] sm:$0xff] }
 0x204   :  { %2571 = vmatpush.msrb.mxu3 %v2273_v63  ;;  %2606 = vmatpush.msrb.mxu1 %v2058_v0  ;;  %v1962_v54 = vld [vmem:[%s7163_s5 + $0x498] sm:$0xff]  ;;  %v1891_v0 = vld [vmem:[%s7163_s5 + $0x260] sm:$0xff] }
 0x205   :  { %2559 = vmatpush.msra.mxu2 %v2081_v1  ;;  %2594 = vmatpush.msra.mxu0 %v1866_v3  ;;  %v2306_v55 = vld [vmem:[%s7163_s5 + $0xf58] sm:$0xff] }
 0x206   :  { %2572 = vmatpush.msrb.mxu3 %v2265_v4  ;;  %2607 = vmatpush.msrb.mxu1 %v2050_v5  ;;  %v2114_v56 = vld [vmem:[%s7163_s5 + $0x958] sm:$0xff] }
 0x207   :  { %2560 = vmatpush.msra.mxu2 %v2073_v6  ;;  %2595 = vmatpush.msra.mxu0 %v1858_v28  ;;  %v1954_v59 = vld [vmem:[%s7163_s5 + $0x458] sm:$0xff]  ;;  %v1883_v6 = vld [vmem:[%s7163_s5 + $0x220] sm:$0xff] }
 0x208   :  { %2561 = vmatmul.f32.vlgmr.msra.gmra.mxu2 %v5808_v60  ;;  %2573 = vmatpush.msrb.mxu3 %v2257_v7  ;;  %v2298_v61 = vld [vmem:[%s7163_s5 + $0xf18] sm:$0xff]  ;;  %v2067_v7 = vld [vmem:[%s7163_s5 + $0x7e0] sm:$0xff] }
 0x209   :  { %2608 = vmatpush.msrb.mxu1 %v2042_v8  ;;  %2625 = vmatpush.msrb.mxu2 %v2194_v9  ;;  %v2106_v62 = vld [vmem:[%s7163_s5 + $0x918] sm:$0xff]  ;;  %v1875_v9 = vld [vmem:[%s7163_s5 + $0x1e0] sm:$0xff] }
 0x20a   :  { %2596 = vmatpush.msra.mxu0 %v1850_v10  ;;  %2574 = vmatpush.msrb.mxu3 %v2249_v12  ;;  %v1946_v1 = vld [vmem:[%s7163_s5 + $0x418] sm:$0xff]  ;;  %v2059_v12 = vld [vmem:[%s7163_s5 + $0x7a0] sm:$0xff] }
 0x20b   :  { %2609 = vmatpush.msrb.mxu1 %v2034_v13  ;;  %2626 = vmatpush.msrb.mxu2 %v2186_v14  ;;  %v2290_v3 = vld [vmem:[%s7163_s5 + $0xed8] sm:$0xff]  ;;  %v1867_v14 = vld [vmem:[%s7163_s5 + $0x1a0] sm:$0xff] }
 0x20c   :  { %2597 = vmatpush.msra.mxu0 %v1842_v15  ;;  %2575 = vmatpush.msrb.mxu3 %v2241_v16  ;;  %v2098_v4 = vld [vmem:[%s7163_s5 + $0x8d8] sm:$0xff]  ;;  %v2051_v16 = vld [vmem:[%s7163_s5 + $0x760] sm:$0xff] }
 0x20d   :  { %2610 = vmatpush.msrb.mxu1 %v2026_v29  ;;  %2627 = vmatpush.msrb.mxu2 %v2178_v11  ;;  %v2282_v28 = vld [vmem:[%s7163_s5 + $0xe98] sm:$0xff]  ;;  %v1859_v11 = vld [vmem:[%s7163_s5 + $0x160] sm:$0xff] }
 0x20e   :  { %2598 = vmatpush.msra.mxu0 %v1834_v17  ;;  %2576 = vmatpush.msrb.mxu3 %v2233_v18  ;;  %v2090_v8 = vld [vmem:[%s7163_s5 + $0x898] sm:$0xff]  ;;  %v2043_v18 = vld [vmem:[%s7163_s5 + $0x720] sm:$0xff] }
 0x20f   :  { %2611 = vmatpush.msrb.mxu1 %v2018_v19  ;;  %2628 = vmatpush.msrb.mxu2 %v2170_v20  ;;  %v2274_v10 = vld [vmem:[%s7163_s5 + $0xe58] sm:$0xff]  ;;  %v2195_v19 = vld [vmem:[%s7163_s5 + $0xbe0] sm:$0xff] }
 0x210   :  { %2599 = vmatpush.msra.mxu0 %v1826_v21  ;;  %2577 = vmatpush.msrb.mxu3 %v2225_v23  ;;  %v2082_v13 = vld [vmem:[%s7163_s5 + $0x858] sm:$0xff]  ;;  %v1851_v20 = vld [vmem:[%s7163_s5 + $0x120] sm:$0xff] }
 0x211   :  { %2612 = vmatpush.msrb.mxu1 %v2010_v24  ;;  %2629 = vmatpush.msrb.mxu2 %v2162_v22  ;;  %v2266_v15 = vld [vmem:[%s7163_s5 + $0xe18] sm:$0xff]  ;;  %v2035_v23 = vld [vmem:[%s7163_s5 + $0x6e0] sm:$0xff] }
 0x212   :  { %2600 = vmatpush.msra.mxu0 %v1818_v25  ;;  %2578 = vmatpush.msrb.mxu3 %v2217_v26  ;;  %v2074_v29 = vld [vmem:[%s7163_s5 + $0x818] sm:$0xff]  ;;  %v2187_v24 = vld [vmem:[%s7163_s5 + $0xba0] sm:$0xff] }
 0x213   :  { %2601 = vmatmul.f32.vlgmr.msra.gmra.mxu0 %v5732_v2  ;;  %2613 = vmatpush.msrb.mxu1 %v2002_v27  ;;  %v2258_v17 = vld [vmem:[%s7163_s5 + $0xdd8] sm:$0xff]  ;;  %v1843_v22 = vld [vmem:[%s7163_s5 + $0xe0] sm:$0xff] }
 0x214   :  { %2630 = vmatpush.msrb.mxu2 %v2154_v31  ;;  %2665 = vmatpush.msrb.mxu0 %v1939_v32  ;;  %v1291_v39 = vpop.xlane.xlu0 %1290  ;;  %v2250_v21 = vld [vmem:[%s7163_s5 + $0xd98] sm:$0xff]  ;;  %v2027_v26 = vld [vmem:[%s7163_s5 + $0x6a0] sm:$0xff] }
 0x215   :  { %2579 = vmatpush.msrb.mxu3 %v2209_v34  ;;  %2614 = vmatpush.msrb.mxu1 %v1994_v30  ;;  %v1292_v43 = vrot.slane %v1291_v39, 4  ;;  %v2242_v25 = vld [vmem:[%s7163_s5 + $0xd58] sm:$0xff]  ;;  %v2179_v27 = vld [vmem:[%s7163_s5 + $0xb60] sm:$0xff] }
 0x216   :  { %2631 = vmatpush.msrb.mxu2 %v2146_v35  ;;  %2666 = vmatpush.msrb.mxu0 %v1931_v33  ;;  %v1835_v31 = vld [vmem:[%s7163_s5 + $0xa0] sm:$0xff]  ;;  %v2234_v32 = vld [vmem:[%s7163_s5 + $0xd18] sm:$0xff] }
 0x217   :  { %2580 = vmatpush.msrb.mxu3 %v2201_v38  ;;  %2615 = vmatpush.msrb.mxu1 %v1986_v37  ;;  %v1293_v46 = vadd.f32 %v1292_v43, %v1291_v39  ;;  %v2019_v34 = vld [vmem:[%s7163_s5 + $0x660] sm:$0xff]  ;;  %v2226_v33 = vld [vmem:[%s7163_s5 + $0xcd8] sm:$0xff] }
 0x218   :  { %2632 = vmatpush.msrb.mxu2 %v2138_v40  ;;  %2667 = vmatpush.msrb.mxu0 %v1923_v41  ;;  %v2171_v30 = vld [vmem:[%s7163_s5 + $0xb20] sm:$0xff]  ;;  %v2218_v40 = vld [vmem:[%s7163_s5 + $0xc98] sm:$0xff] }
 0x219   :  { %2581 = vmatmul.f32.vlgmr.msrb.gmra.mxu3 %v5888_v36  ;;  %2616 = vmatpush.msrb.mxu1 %v1978_v44  ;;  %v1294_v52 = vrot.slane %v1293_v46, 2  ;;  %v1827_v35 = vld [vmem:[%s7163_s5 + $0x60] sm:$0xff]  ;;  %v1940_v44 = vld [vmem:[%s7163_s5 + $0x3e8] sm:$0xff] }
 0x21a   :  { %2645 = vmatpush.msra.mxu3 %v2322_v42  ;;  %2633 = vmatpush.msrb.mxu2 %v2130_v45  ;;  %v2011_v38 = vld [vmem:[%s7163_s5 + $0x620] sm:$0xff]  ;;  %v2210_v42 = vld [vmem:[%s7163_s5 + $0xc58] sm:$0xff] }
 0x21b   :  { %2668 = vmatpush.msrb.mxu0 %v1915_v47  ;;  %2617 = vmatpush.msrb.mxu1 %v1970_v49  ;;  %v1295_v57 = vadd.f32 %v1294_v52, %v1293_v46  ;;  %v2163_v37 = vld [vmem:[%s7163_s5 + $0xae0] sm:$0xff]  ;;  %v1932_v47 = vld [vmem:[%s7163_s5 + $0x3a8] sm:$0xff]  ;;  %v2202_v49 = vld [vmem:[%s7163_s5 + $0xc18] sm:$0xff] }
 0x21c   :  { %2646 = vmatpush.msra.mxu3 %v2314_v50  ;;  %2634 = vmatpush.msrb.mxu2 %v2122_v51  ;;  %v1819_v39 = vld [vmem:[%s7163_s5 + $0x20] sm:$0xff]  ;;  %v1924_v52 = vld [vmem:[%s7163_s5 + $0x368] sm:$0xff] }
 0x21d   :  { %2669 = vmatpush.msrb.mxu0 %v1907_v53  ;;  %2618 = vmatpush.msrb.mxu1 %v1962_v54  ;;  %v1296_v63 = vrot.slane %v1295_v57, 1  ;;  %v2003_v41 = vld [vmem:[%s7163_s5 + $0x5e0] sm:$0xff] }
 0x21e   :  { %2647 = vmatpush.msra.mxu3 %v2306_v55  ;;  %2635 = vmatpush.msrb.mxu2 %v2114_v56  ;;  %v2155_v43 = vld [vmem:[%s7163_s5 + $0xaa0] sm:$0xff]  ;;  %v1916_v56 = vld [vmem:[%s7163_s5 + $0x328] sm:$0xff] }
 0x21f   :  { %2670 = vmatpush.msrb.mxu0 %v1899_v58  ;;  %2619 = vmatpush.msrb.mxu1 %v1954_v59  ;;  %v1297_v5 = vadd.f32 %v1296_v63, %v1295_v57  ;;  %v1995_v45 = vld [vmem:[%s7163_s5 + $0x5a0] sm:$0xff] }
 0x220   :  { %2648 = vmatpush.msra.mxu3 %v2298_v61  ;;  %2636 = vmatpush.msrb.mxu2 %v2106_v62  ;;  %v2147_v46 = vld [vmem:[%s7163_s5 + $0xa60] sm:$0xff]  ;;  %v1908_v61 = vld [vmem:[%s7163_s5 + $0x2e8] sm:$0xff] }
 0x221   :  { %2671 = vmatpush.msrb.mxu0 %v1891_v0  ;;  %2620 = vmatpush.msrb.mxu1 %v1946_v1  ;;  %3205 = vpush %v1297_v5  ;;  %v1987_v50 = vld [vmem:[%s7163_s5 + $0x560] sm:$0xff]  ;;  %v1900_v1 = vld [vmem:[%s7163_s5 + $0x2a8] sm:$0xff] }
 0x222   :  { %2649 = vmatpush.msra.mxu3 %v2290_v3  ;;  %2637 = vmatpush.msrb.mxu2 %v2098_v4  ;;  %v2139_v51 = vld [vmem:[%s7163_s5 + $0xa20] sm:$0xff] }
 0x223   :  { %2672 = vmatpush.msrb.mxu0 %v1883_v6  ;;  %2621 = vmatmul.f32.vlgmr.msrb.gmra.mxu1 %v5787_v48  ;;  %v1979_v53 = vld [vmem:[%s7163_s5 + $0x520] sm:$0xff]  ;;  %v1892_v6 = vld [vmem:[%s7163_s5 + $0x268] sm:$0xff] }
 0x224   :  { %2650 = vmatpush.msra.mxu3 %v2282_v28  ;;  %2685 = vmatpush.msra.mxu1 %v2067_v7  ;;  %v2323_v54 = vld [vmem:[%s7163_s5 + $0xfe0] sm:$0xff] }
 0x225   :  { %2638 = vmatpush.msrb.mxu2 %v2090_v8  ;;  %2673 = vmatpush.msrb.mxu0 %v1875_v9  ;;  %v2131_v55 = vld [vmem:[%s7163_s5 + $0x9e0] sm:$0xff]  ;;  %v1884_v9 = vld [vmem:[%s7163_s5 + $0x228] sm:$0xff] }
 0x226   :  { %2651 = vmatpush.msra.mxu3 %v2274_v10  ;;  %2686 = vmatpush.msra.mxu1 %v2059_v12  ;;  %v1971_v57 = vld [vmem:[%s7163_s5 + $0x4e0] sm:$0xff]  ;;  %v2068_v12 = vld [vmem:[%s7163_s5 + $0x7e8] sm:$0xff] }
 0x227   :  { %2639 = vmatpush.msrb.mxu2 %v2082_v13  ;;  %2674 = vmatpush.msrb.mxu0 %v1867_v14  ;;  %v2315_v58 = vld [vmem:[%s7163_s5 + $0xfa0] sm:$0xff]  ;;  %v1876_v14 = vld [vmem:[%s7163_s5 + $0x1e8] sm:$0xff] }
 0x228   :  { %2652 = vmatpush.msra.mxu3 %v2266_v15  ;;  %2687 = vmatpush.msra.mxu1 %v2051_v16  ;;  %v2123_v59 = vld [vmem:[%s7163_s5 + $0x9a0] sm:$0xff]  ;;  %v2060_v16 = vld [vmem:[%s7163_s5 + $0x7a8] sm:$0xff] }
 0x229   :  { %2640 = vmatpush.msrb.mxu2 %v2074_v29  ;;  %2675 = vmatpush.msrb.mxu0 %v1859_v11  ;;  %v1963_v62 = vld [vmem:[%s7163_s5 + $0x4a0] sm:$0xff]  ;;  %v1868_v11 = vld [vmem:[%s7163_s5 + $0x1a8] sm:$0xff] }
 0x22a   :  { %2641 = vmatmul.f32.vlgmr.msrb.gmra.mxu2 %v5808_v60  ;;  %2653 = vmatpush.msra.mxu3 %v2258_v17  ;;  %v2307_v63 = vld [vmem:[%s7163_s5 + $0xf60] sm:$0xff] }
 0x22b   :  { %2688 = vmatpush.msra.mxu1 %v2043_v18  ;;  %2705 = vmatpush.msra.mxu2 %v2195_v19  ;;  %v2115_v0 = vld [vmem:[%s7163_s5 + $0x960] sm:$0xff]  ;;  %v2052_v18 = vld [vmem:[%s7163_s5 + $0x768] sm:$0xff] }
 0x22c   :  { %2676 = vmatpush.msrb.mxu0 %v1851_v20  ;;  %2654 = vmatpush.msra.mxu3 %v2250_v21  ;;  %v1955_v3 = vld [vmem:[%s7163_s5 + $0x460] sm:$0xff]  ;;  %v1860_v20 = vld [vmem:[%s7163_s5 + $0x168] sm:$0xff] }
 0x22d   :  { %2689 = vmatpush.msra.mxu1 %v2035_v23  ;;  %2706 = vmatpush.msra.mxu2 %v2187_v24  ;;  %v2299_v4 = vld [vmem:[%s7163_s5 + $0xf20] sm:$0xff]  ;;  %v2044_v23 = vld [vmem:[%s7163_s5 + $0x728] sm:$0xff] }
 0x22e   :  { %2677 = vmatpush.msrb.mxu0 %v1843_v22  ;;  %2655 = vmatpush.msra.mxu3 %v2242_v25  ;;  %v2107_v5 = vld [vmem:[%s7163_s5 + $0x920] sm:$0xff]  ;;  %v2196_v24 = vld [vmem:[%s7163_s5 + $0xbe8] sm:$0xff] }
 0x22f   :  { %2690 = vmatpush.msra.mxu1 %v2027_v26  ;;  %2707 = vmatpush.msra.mxu2 %v2179_v27  ;;  %v1947_v28 = vld [vmem:[%s7163_s5 + $0x420] sm:$0xff]  ;;  %v1852_v22 = vld [vmem:[%s7163_s5 + $0x128] sm:$0xff] }
 0x230   :  { %2678 = vmatpush.msrb.mxu0 %v1835_v31  ;;  %2656 = vmatpush.msra.mxu3 %v2234_v32  ;;  %v2291_v7 = vld [vmem:[%s7163_s5 + $0xee0] sm:$0xff]  ;;  %v2036_v26 = vld [vmem:[%s7163_s5 + $0x6e8] sm:$0xff] }
 0x231   :  { %2691 = vmatpush.msra.mxu1 %v2019_v34  ;;  %2708 = vmatpush.msra.mxu2 %v2171_v30  ;;  %v2099_v8 = vld [vmem:[%s7163_s5 + $0x8e0] sm:$0xff]  ;;  %v2188_v27 = vld [vmem:[%s7163_s5 + $0xba8] sm:$0xff] }
 0x232   :  { %2679 = vmatpush.msrb.mxu0 %v1827_v35  ;;  %2657 = vmatpush.msra.mxu3 %v2226_v33  ;;  %v2283_v10 = vld [vmem:[%s7163_s5 + $0xea0] sm:$0xff]  ;;  %v1844_v31 = vld [vmem:[%s7163_s5 + $0xe8] sm:$0xff] }
 0x233   :  { %2692 = vmatpush.msra.mxu1 %v2011_v38  ;;  %2709 = vmatpush.msra.mxu2 %v2163_v37  ;;  %v2091_v13 = vld [vmem:[%s7163_s5 + $0x8a0] sm:$0xff]  ;;  %v2028_v34 = vld [vmem:[%s7163_s5 + $0x6a8] sm:$0xff] }
 0x234   :  { %2680 = vmatpush.msrb.mxu0 %v1819_v39  ;;  %2658 = vmatpush.msra.mxu3 %v2218_v40  ;;  %v2275_v15 = vld [vmem:[%s7163_s5 + $0xe60] sm:$0xff]  ;;  %v2180_v30 = vld [vmem:[%s7163_s5 + $0xb68] sm:$0xff] }
 0x235   :  { %2681 = vmatmul.f32.vlgmr.msrb.gmra.mxu0 %v5732_v2  ;;  %2693 = vmatpush.msra.mxu1 %v2003_v41  ;;  %v2083_v29 = vld [vmem:[%s7163_s5 + $0x860] sm:$0xff]  ;;  %v1836_v35 = vld [vmem:[%s7163_s5 + $0xa8] sm:$0xff] }
 0x236   :  { %2710 = vmatpush.msra.mxu2 %v2155_v43  ;;  %2745 = vmatpush.msra.mxu0 %v1940_v44  ;;  %v2267_v17 = vld [vmem:[%s7163_s5 + $0xe20] sm:$0xff]  ;;  %v2020_v38 = vld [vmem:[%s7163_s5 + $0x668] sm:$0xff] }
 0x237   :  { %2659 = vmatpush.msra.mxu3 %v2210_v42  ;;  %2694 = vmatpush.msra.mxu1 %v1995_v45  ;;  %v2075_v19 = vld [vmem:[%s7163_s5 + $0x820] sm:$0xff]  ;;  %v2172_v37 = vld [vmem:[%s7163_s5 + $0xb28] sm:$0xff] }
 0x238   :  { %2711 = vmatpush.msra.mxu2 %v2147_v46  ;;  %2746 = vmatpush.msra.mxu0 %v1932_v47  ;;  %v2259_v21 = vld [vmem:[%s7163_s5 + $0xde0] sm:$0xff]  ;;  %v1828_v39 = vld [vmem:[%s7163_s5 + $0x68] sm:$0xff]  ;;  %v1941_v47 = vld [vmem:[%s7163_s5 + $0x3f0] sm:$0xff] }
 0x239   :  { %2660 = vmatpush.msra.mxu3 %v2202_v49  ;;  %2695 = vmatpush.msra.mxu1 %v1987_v50  ;;  %v2251_v25 = vld [vmem:[%s7163_s5 + $0xda0] sm:$0xff]  ;;  %v2012_v41 = vld [vmem:[%s7163_s5 + $0x628] sm:$0xff] }
 0x23a   :  { %2712 = vmatpush.msra.mxu2 %v2139_v51  ;;  %2747 = vmatpush.msra.mxu0 %v1924_v52  ;;  %v2243_v32 = vld [vmem:[%s7163_s5 + $0xd60] sm:$0xff]  ;;  %v2164_v43 = vld [vmem:[%s7163_s5 + $0xae8] sm:$0xff] }
 0x23b   :  { %2661 = vmatmul.f32.vlgmr.msra.gmra.mxu3 %v5888_v36  ;;  %2696 = vmatpush.msra.mxu1 %v1979_v53  ;;  %v2235_v33 = vld [vmem:[%s7163_s5 + $0xd20] sm:$0xff]  ;;  %v1820_v44 = vld [vmem:[%s7163_s5 + $0x28] sm:$0xff]  ;;  %v1933_v53 = vld [vmem:[%s7163_s5 + $0x3b0] sm:$0xff] }
 0x23c   :  { %2725 = vmatpush.msrb.mxu3 %v2323_v54  ;;  %2713 = vmatpush.msra.mxu2 %v2131_v55  ;;  %v2227_v40 = vld [vmem:[%s7163_s5 + $0xce0] sm:$0xff]  ;;  %v2004_v45 = vld [vmem:[%s7163_s5 + $0x5e8] sm:$0xff] }
 0x23d   :  { %2748 = vmatpush.msra.mxu0 %v1916_v56  ;;  %2697 = vmatpush.msra.mxu1 %v1971_v57  ;;  %v2219_v42 = vld [vmem:[%s7163_s5 + $0xca0] sm:$0xff]  ;;  %v2156_v46 = vld [vmem:[%s7163_s5 + $0xaa8] sm:$0xff]  ;;  %v1925_v57 = vld [vmem:[%s7163_s5 + $0x370] sm:$0xff] }
 0x23e   :  { %2726 = vmatpush.msrb.mxu3 %v2315_v58  ;;  %2714 = vmatpush.msra.mxu2 %v2123_v59  ;;  %v2211_v49 = vld [vmem:[%s7163_s5 + $0xc60] sm:$0xff]  ;;  %v1996_v50 = vld [vmem:[%s7163_s5 + $0x5a8] sm:$0xff] }
 0x23f   :  { %2749 = vmatpush.msra.mxu0 %v1908_v61  ;;  %2698 = vmatpush.msra.mxu1 %v1963_v62  ;;  %v2148_v52 = vld [vmem:[%s7163_s5 + $0xa68] sm:$0xff]  ;;  %v2203_v54 = vld [vmem:[%s7163_s5 + $0xc20] sm:$0xff]  ;;  %v1917_v62 = vld [vmem:[%s7163_s5 + $0x330] sm:$0xff] }
 0x240   :  { %2727 = vmatpush.msrb.mxu3 %v2307_v63  ;;  %2715 = vmatpush.msra.mxu2 %v2115_v0  ;;  %v1988_v55 = vld [vmem:[%s7163_s5 + $0x568] sm:$0xff] }
 0x241   :  { %2750 = vmatpush.msra.mxu0 %v1900_v1  ;;  %2699 = vmatpush.msra.mxu1 %v1955_v3  ;;  %v2140_v56 = vld [vmem:[%s7163_s5 + $0xa28] sm:$0xff] }
 0x242   :  { %2728 = vmatpush.msrb.mxu3 %v2299_v4  ;;  %2716 = vmatpush.msra.mxu2 %v2107_v5  ;;  %v1980_v58 = vld [vmem:[%s7163_s5 + $0x528] sm:$0xff]  ;;  %v1909_v4 = vld [vmem:[%s7163_s5 + $0x2f0] sm:$0xff] }
 0x243   :  { %2751 = vmatpush.msra.mxu0 %v1892_v6  ;;  %2700 = vmatpush.msra.mxu1 %v1947_v28  ;;  %v2324_v59 = vld [vmem:[%s7163_s5 + $0xfe8] sm:$0xff]  ;;  %v6514_v6 = vld [vmem:[%s7164_s6] sm:$0xff] }
 0x244   :  { %2729 = vmatpush.msrb.mxu3 %v2291_v7  ;;  %2717 = vmatpush.msra.mxu2 %v2099_v8  ;;  %v2132_v61 = vld [vmem:[%s7163_s5 + $0x9e8] sm:$0xff]  ;;  %v2330_v8 = vperm.slane %v6514_v6, 1 }
 0x245   :  { %2752 = vmatpush.msra.mxu0 %v1884_v9  ;;  %2701 = vmatmul.f32.vlgmr.msra.gmra.mxu1 %v5787_v48  ;;  %v1972_v63 = vld [vmem:[%s7163_s5 + $0x4e8] sm:$0xff]  ;;  %v1901_v9 = vld [vmem:[%s7163_s5 + $0x2b0] sm:$0xff] }
 0x246   :  { %2730 = vmatpush.msrb.mxu3 %v2283_v10  ;;  %2765 = vmatpush.msrb.mxu1 %v2068_v12  ;;  %v2316_v0 = vld [vmem:[%s7163_s5 + $0xfa8] sm:$0xff] }
 0x247   :  { %2718 = vmatpush.msra.mxu2 %v2091_v13  ;;  %2753 = vmatpush.msra.mxu0 %v1876_v14  ;;  %v2124_v1 = vld [vmem:[%s7163_s5 + $0x9a8] sm:$0xff] }
 0x248   :  { %2731 = vmatpush.msrb.mxu3 %v2275_v15  ;;  %2766 = vmatpush.msrb.mxu1 %v2060_v16  ;;  %v1964_v5 = vld [vmem:[%s7163_s5 + $0x4a8] sm:$0xff]  ;;  %v1893_v15 = vld [vmem:[%s7163_s5 + $0x270] sm:$0xff] }
 0x249   :  { %2719 = vmatpush.msra.mxu2 %v2083_v29  ;;  %2754 = vmatpush.msra.mxu0 %v1868_v11  ;;  %v2308_v28 = vld [vmem:[%s7163_s5 + $0xf68] sm:$0xff] }
 0x24a   :  { %2732 = vmatpush.msrb.mxu3 %v2267_v17  ;;  %2767 = vmatpush.msrb.mxu1 %v2052_v18  ;;  %v2116_v7 = vld [vmem:[%s7163_s5 + $0x968] sm:$0xff]  ;;  %v1885_v18 = vld [vmem:[%s7163_s5 + $0x230] sm:$0xff] }
 0x24b   :  { %2720 = vmatpush.msra.mxu2 %v2075_v19  ;;  %2755 = vmatpush.msra.mxu0 %v1860_v20  ;;  %v1956_v10 = vld [vmem:[%s7163_s5 + $0x468] sm:$0xff]  ;;  %v2069_v20 = vld [vmem:[%s7163_s5 + $0x7f0] sm:$0xff] }
 0x24c   :  { %2721 = vmatmul.f32.vlgmr.msra.gmra.mxu2 %v5808_v60  ;;  %2733 = vmatpush.msrb.mxu3 %v2259_v21  ;;  %v6461_v51 = vpop.f32.mrf.mxu0  ;;  %v2300_v13 = vld [vmem:[%s7163_s5 + $0xf28] sm:$0xff] }
 0x24d   :  { %2768 = vmatpush.msrb.mxu1 %v2044_v23  ;;  %2785 = vmatpush.msrb.mxu2 %v2196_v24  ;;  %v2108_v14 = vld [vmem:[%s7163_s5 + $0x928] sm:$0xff]  ;;  %v1877_v24 = vld [vmem:[%s7163_s5 + $0x1f0] sm:$0xff] }
 0x24e   :  { %2756 = vmatpush.msra.mxu0 %v1852_v22  ;;  %2734 = vmatpush.msrb.mxu3 %v2251_v25  ;;  %v1948_v16 = vld [vmem:[%s7163_s5 + $0x428] sm:$0xff] }
 0x24f   :  { %2769 = vmatpush.msrb.mxu1 %v2036_v26  ;;  %2786 = vmatpush.msrb.mxu2 %v2188_v27  ;;  %v2292_v29 = vld [vmem:[%s7163_s5 + $0xee8] sm:$0xff]  ;;  %v2061_v26 = vld [vmem:[%s7163_s5 + $0x7b0] sm:$0xff] }
 0x250   :  { %2757 = vmatpush.msra.mxu0 %v1844_v31  ;;  %2735 = vmatpush.msrb.mxu3 %v2243_v32  ;;  %v2100_v11 = vld [vmem:[%s7163_s5 + $0x8e8] sm:$0xff]  ;;  %v1869_v31 = vld [vmem:[%s7163_s5 + $0x1b0] sm:$0xff] }
 0x251   :  { %2770 = vmatpush.msrb.mxu1 %v2028_v34  ;;  %2787 = vmatpush.msrb.mxu2 %v2180_v30  ;;  %v2284_v19 = vld [vmem:[%s7163_s5 + $0xea8] sm:$0xff]  ;;  %v2053_v34 = vld [vmem:[%s7163_s5 + $0x770] sm:$0xff] }
 0x252   :  { %2758 = vmatpush.msra.mxu0 %v1836_v35  ;;  %2736 = vmatpush.msrb.mxu3 %v2235_v33  ;;  %v2092_v23 = vld [vmem:[%s7163_s5 + $0x8a8] sm:$0xff]  ;;  %v1861_v33 = vld [vmem:[%s7163_s5 + $0x170] sm:$0xff] }
 0x253   :  { %2771 = vmatpush.msrb.mxu1 %v2020_v38  ;;  %2788 = vmatpush.msrb.mxu2 %v2172_v37  ;;  %v2276_v25 = vld [vmem:[%s7163_s5 + $0xe68] sm:$0xff]  ;;  %v2045_v37 = vld [vmem:[%s7163_s5 + $0x730] sm:$0xff] }
 0x254   :  { %2759 = vmatpush.msra.mxu0 %v1828_v39  ;;  %2737 = vmatpush.msrb.mxu3 %v2227_v40  ;;  %v2442_v12 = vpop.f32.mrf.mxu0  ;;  %v2084_v27 = vld [vmem:[%s7163_s5 + $0x868] sm:$0xff]  ;;  %v2197_v39 = vld [vmem:[%s7163_s5 + $0xbf0] sm:$0xff] }
 0x255   :  { %2772 = vmatpush.msrb.mxu1 %v2012_v41  ;;  %2789 = vmatpush.msrb.mxu2 %v2164_v43  ;;  %v2443_v17 = vadd.f32 %v2442_v12, %v2330_v8  ;;  %v2268_v32 = vld [vmem:[%s7163_s5 + $0xe28] sm:$0xff]  ;;  %v1853_v40 = vld [vmem:[%s7163_s5 + $0x130] sm:$0xff] }
 0x256   :  { %2760 = vmatpush.msra.mxu0 %v1820_v44  ;;  %2738 = vmatpush.msrb.mxu3 %v2219_v42  ;;  %v2076_v35 = vld [vmem:[%s7163_s5 + $0x828] sm:$0xff]  ;;  %v2037_v43 = vld [vmem:[%s7163_s5 + $0x6f0] sm:$0xff] }
 0x257   :  { %2761 = vmatmul.f32.vlgmr.msra.gmra.mxu0 %v5732_v2  ;;  %2773 = vmatpush.msrb.mxu1 %v2004_v45  ;;  %v2260_v38 = vld [vmem:[%s7163_s5 + $0xde8] sm:$0xff]  ;;  %v2189_v44 = vld [vmem:[%s7163_s5 + $0xbb0] sm:$0xff] }
 0x258   :  { %2790 = vmatpush.msrb.mxu2 %v2156_v46  ;;  %2825 = vmatpush.msrb.mxu0 %v1941_v47  ;;  %v2252_v41 = vld [vmem:[%s7163_s5 + $0xda8] sm:$0xff]  ;;  %v1845_v42 = vld [vmem:[%s7163_s5 + $0xf0] sm:$0xff] }
 0x259   :  { %2739 = vmatpush.msrb.mxu3 %v2211_v49  ;;  %2774 = vmatpush.msrb.mxu1 %v1996_v50  ;;  %v2244_v45 = vld [vmem:[%s7163_s5 + $0xd68] sm:$0xff]  ;;  %v2029_v46 = vld [vmem:[%s7163_s5 + $0x6b0] sm:$0xff] }
 0x25a   :  { %2791 = vmatpush.msrb.mxu2 %v2148_v52  ;;  %2826 = vmatpush.msrb.mxu0 %v1933_v53  ;;  %v2181_v47 = vld [vmem:[%s7163_s5 + $0xb70] sm:$0xff]  ;;  %v2236_v50 = vld [vmem:[%s7163_s5 + $0xd28] sm:$0xff] }
 0x25b   :  { %2740 = vmatpush.msrb.mxu3 %v2203_v54  ;;  %2775 = vmatpush.msrb.mxu1 %v1988_v55  ;;  %v1837_v49 = vld [vmem:[%s7163_s5 + $0xb0] sm:$0xff] }
 0x25c   :  { %2792 = vmatpush.msrb.mxu2 %v2140_v56  ;;  %2827 = vmatpush.msrb.mxu0 %v1925_v57  ;;  %v2021_v53 = vld [vmem:[%s7163_s5 + $0x670] sm:$0xff]  ;;  %v2228_v57 = vld [vmem:[%s7163_s5 + $0xce8] sm:$0xff] }
 0x25d   :  { %2741 = vmatmul.f32.vlgmr.msrb.gmra.mxu3 %v5888_v36  ;;  %2776 = vmatpush.msrb.mxu1 %v1980_v58  ;;  %v6503_v3 = vpop.f32.mrf.mxu1  ;;  %v2173_v54 = vld [vmem:[%s7163_s5 + $0xb30] sm:$0xff] }
 0x25e   :  { %2805 = vmatpush.msra.mxu3 %v2324_v59  ;;  %2793 = vmatpush.msrb.mxu2 %v2132_v61  ;;  %v1829_v56 = vld [vmem:[%s7163_s5 + $0x70] sm:$0xff] }
 0x25f   :  { %2828 = vmatpush.msrb.mxu0 %v1917_v62  ;;  %2777 = vmatpush.msrb.mxu1 %v1972_v63  ;;  %v2013_v58 = vld [vmem:[%s7163_s5 + $0x630] sm:$0xff]  ;;  %v2220_v62 = vld [vmem:[%s7163_s5 + $0xca8] sm:$0xff] }
 0x260   :  { %2806 = vmatpush.msra.mxu3 %v2316_v0  ;;  %2794 = vmatpush.msrb.mxu2 %v2124_v1  ;;  %v2165_v59 = vld [vmem:[%s7163_s5 + $0xaf0] sm:$0xff]  ;;  %v1942_v1 = vld [vmem:[%s7163_s5 + $0x3f8] sm:$0xff] }
 0x261   :  { %2829 = vmatpush.msrb.mxu0 %v1909_v4  ;;  %2778 = vmatpush.msrb.mxu1 %v1964_v5  ;;  %v1821_v61 = vld [vmem:[%s7163_s5 + $0x30] sm:$0xff]  ;;  %v2212_v4 = vld [vmem:[%s7163_s5 + $0xc68] sm:$0xff] }
 0x262   :  { %2807 = vmatpush.msra.mxu3 %v2308_v28  ;;  %2795 = vmatpush.msrb.mxu2 %v2116_v7  ;;  %v2005_v63 = vld [vmem:[%s7163_s5 + $0x5f0] sm:$0xff]  ;;  %v1934_v7 = vld [vmem:[%s7163_s5 + $0x3b8] sm:$0xff] }
 0x263   :  { %2830 = vmatpush.msrb.mxu0 %v1901_v9  ;;  %2779 = vmatpush.msrb.mxu1 %v1956_v10  ;;  %v2157_v0 = vld [vmem:[%s7163_s5 + $0xab0] sm:$0xff]  ;;  %v2204_v9 = vld [vmem:[%s7163_s5 + $0xc28] sm:$0xff] }
 0x264   :  { %2808 = vmatpush.msra.mxu3 %v2300_v13  ;;  %2796 = vmatpush.msrb.mxu2 %v2108_v14  ;;  %v1997_v5 = vld [vmem:[%s7163_s5 + $0x5b0] sm:$0xff]  ;;  %v1926_v13 = vld [vmem:[%s7163_s5 + $0x378] sm:$0xff] }
 0x265   :  { %2831 = vmatpush.msrb.mxu0 %v1893_v15  ;;  %2780 = vmatpush.msrb.mxu1 %v1948_v16  ;;  %v2462_v21 = vpop.f32.mrf.mxu1  ;;  %v2149_v28 = vld [vmem:[%s7163_s5 + $0xa70] sm:$0xff] }
 0x266   :  { %2809 = vmatpush.msra.mxu3 %v2292_v29  ;;  %2797 = vmatpush.msrb.mxu2 %v2100_v11  ;;  %v2463_v22 = vadd.f32 %v2462_v21, %v2443_v17  ;;  %v1989_v10 = vld [vmem:[%s7163_s5 + $0x570] sm:$0xff]  ;;  %v1918_v29 = vld [vmem:[%s7163_s5 + $0x338] sm:$0xff] }
 0x267   :  { %2832 = vmatpush.msrb.mxu0 %v1885_v18  ;;  %2781 = vmatmul.f32.vlgmr.msrb.gmra.mxu1 %v5787_v48  ;;  %v2141_v12 = vld [vmem:[%s7163_s5 + $0xa30] sm:$0xff] }
 0x268   :  { %2810 = vmatpush.msra.mxu3 %v2284_v19  ;;  %2845 = vmatpush.msra.mxu1 %v2069_v20  ;;  %v1981_v14 = vld [vmem:[%s7163_s5 + $0x530] sm:$0xff]  ;;  %v1910_v19 = vld [vmem:[%s7163_s5 + $0x2f8] sm:$0xff] }
 0x269   :  { %2798 = vmatpush.msrb.mxu2 %v2092_v23  ;;  %2833 = vmatpush.msrb.mxu0 %v1877_v24  ;;  %v6581_v30 = vpop.f32.mrf.mxu2  ;;  %v2325_v15 = vld [vmem:[%s7163_s5 + $0xff0] sm:$0xff]  ;;  %v1902_v24 = vld [vmem:[%s7163_s5 + $0x2b8] sm:$0xff] }
 0x26a   :  { %2811 = vmatpush.msra.mxu3 %v2276_v25  ;;  %2846 = vmatpush.msra.mxu1 %v2061_v26  ;;  %v2133_v16 = vld [vmem:[%s7163_s5 + $0x9f0] sm:$0xff] }
 0x26b   :  { %2799 = vmatpush.msrb.mxu2 %v2084_v27  ;;  %2834 = vmatpush.msrb.mxu0 %v1869_v31  ;;  %v1973_v11 = vld [vmem:[%s7163_s5 + $0x4f0] sm:$0xff] }
 0x26c   :  { %2812 = vmatpush.msra.mxu3 %v2268_v32  ;;  %2847 = vmatpush.msra.mxu1 %v2053_v34  ;;  %v2317_v17 = vld [vmem:[%s7163_s5 + $0xfb0] sm:$0xff]  ;;  %v1894_v32 = vld [vmem:[%s7163_s5 + $0x278] sm:$0xff] }
 0x26d   :  { %2800 = vmatpush.msrb.mxu2 %v2076_v35  ;;  %2835 = vmatpush.msrb.mxu0 %v1861_v33  ;;  %v2125_v18 = vld [vmem:[%s7163_s5 + $0x9b0] sm:$0xff] }
 0x26e   :  { %2801 = vmatmul.f32.vlgmr.msrb.gmra.mxu2 %v5808_v60  ;;  %2813 = vmatpush.msra.mxu3 %v2260_v38  ;;  %v1965_v20 = vld [vmem:[%s7163_s5 + $0x4b0] sm:$0xff]  ;;  %v1886_v38 = vld [vmem:[%s7163_s5 + $0x238] sm:$0xff] }
 0x26f   :  { %2848 = vmatpush.msra.mxu1 %v2045_v37  ;;  %2865 = vmatpush.msra.mxu2 %v2197_v39  ;;  %v2309_v21 = vld [vmem:[%s7163_s5 + $0xf70] sm:$0xff]  ;;  %v2070_v39 = vld [vmem:[%s7163_s5 + $0x7f8] sm:$0xff] }
 0x270   :  { %2836 = vmatpush.msrb.mxu0 %v1853_v40  ;;  %2814 = vmatpush.msra.mxu3 %v2252_v41  ;;  %v2117_v23 = vld [vmem:[%s7163_s5 + $0x970] sm:$0xff]  ;;  %v1878_v41 = vld [vmem:[%s7163_s5 + $0x1f8] sm:$0xff] }
 0x271   :  { %2849 = vmatpush.msra.mxu1 %v2037_v43  ;;  %2866 = vmatpush.msra.mxu2 %v2189_v44  ;;  %v2482_v52 = vpop.f32.mrf.mxu2  ;;  %v2301_v26 = vld [vmem:[%s7163_s5 + $0xf30] sm:$0xff]  ;;  %v2062_v44 = vld [vmem:[%s7163_s5 + $0x7b8] sm:$0xff] }
 0x272   :  { %2837 = vmatpush.msrb.mxu0 %v1845_v42  ;;  %2815 = vmatpush.msra.mxu3 %v2244_v45  ;;  %v6635_v55 = vadd.f32 %v2482_v52, %v2463_v22  ;;  %v1957_v22 = vld [vmem:[%s7163_s5 + $0x470] sm:$0xff]  ;;  %v1870_v45 = vld [vmem:[%s7163_s5 + $0x1b8] sm:$0xff] }
 0x273   :  { %2850 = vmatpush.msra.mxu1 %v2029_v46  ;;  %2867 = vmatpush.msra.mxu2 %v2181_v47  ;;  %v2109_v27 = vld [vmem:[%s7163_s5 + $0x930] sm:$0xff]  ;;  %v2054_v47 = vld [vmem:[%s7163_s5 + $0x778] sm:$0xff] }
 0x274   :  { %2838 = vmatpush.msrb.mxu0 %v1837_v49  ;;  %2816 = vmatpush.msra.mxu3 %v2236_v50  ;;  %v1949_v34 = vld [vmem:[%s7163_s5 + $0x430] sm:$0xff]  ;;  %v1862_v50 = vld [vmem:[%s7163_s5 + $0x178] sm:$0xff] }
 0x275   :  { %2851 = vmatpush.msra.mxu1 %v2021_v53  ;;  %2868 = vmatpush.msra.mxu2 %v2173_v54  ;;  %v2293_v35 = vld [vmem:[%s7163_s5 + $0xef0] sm:$0xff]  ;;  %v2046_v53 = vld [vmem:[%s7163_s5 + $0x738] sm:$0xff] }
 0x276   :  { %2839 = vmatpush.msrb.mxu0 %v1829_v56  ;;  %2817 = vmatpush.msra.mxu3 %v2228_v57  ;;  %v2101_v33 = vld [vmem:[%s7163_s5 + $0x8f0] sm:$0xff]  ;;  %v2198_v54 = vld [vmem:[%s7163_s5 + $0xbf8] sm:$0xff] }
 0x277   :  { %2852 = vmatpush.msra.mxu1 %v2013_v58  ;;  %2869 = vmatpush.msra.mxu2 %v2165_v59  ;;  %v2285_v37 = vld [vmem:[%s7163_s5 + $0xeb0] sm:$0xff]  ;;  %v2038_v57 = vld [vmem:[%s7163_s5 + $0x6f8] sm:$0xff] }
 0x278   :  { %2840 = vmatpush.msrb.mxu0 %v1821_v61  ;;  %2818 = vmatpush.msra.mxu3 %v2220_v62  ;;  %v2093_v40 = vld [vmem:[%s7163_s5 + $0x8b0] sm:$0xff]  ;;  %v2190_v58 = vld [vmem:[%s7163_s5 + $0xbb8] sm:$0xff] }
 0x279   :  { %2841 = vmatmul.f32.vlgmr.msrb.gmra.mxu0 %v5732_v2  ;;  %2853 = vmatpush.msra.mxu1 %v2005_v63  ;;  %v6677_v8 = vpop.f32.mrf.mxu3  ;;  %v2277_v43 = vld [vmem:[%s7163_s5 + $0xe70] sm:$0xff]  ;;  %v1846_v59 = vld [vmem:[%s7163_s5 + $0xf8] sm:$0xff] }
 0x27a   :  { %2870 = vmatpush.msra.mxu2 %v2157_v0  ;;  %2905 = vmatpush.msra.mxu0 %v1942_v1  ;;  %v2085_v42 = vld [vmem:[%s7163_s5 + $0x870] sm:$0xff]  ;;  %v2030_v62 = vld [vmem:[%s7163_s5 + $0x6b8] sm:$0xff] }
 0x27b   :  { %2819 = vmatpush.msra.mxu3 %v2212_v4  ;;  %2854 = vmatpush.msra.mxu1 %v1997_v5  ;;  %v2269_v46 = vld [vmem:[%s7163_s5 + $0xe30] sm:$0xff]  ;;  %v2182_v63 = vld [vmem:[%s7163_s5 + $0xb78] sm:$0xff] }
 0x27c   :  { %2871 = vmatpush.msra.mxu2 %v2149_v28  ;;  %2906 = vmatpush.msra.mxu0 %v1934_v7  ;;  %v2077_v49 = vld [vmem:[%s7163_s5 + $0x830] sm:$0xff]  ;;  %v1838_v0 = vld [vmem:[%s7163_s5 + $0xb8] sm:$0xff] }
 0x27d   :  { %2820 = vmatpush.msra.mxu3 %v2204_v9  ;;  %2855 = vmatpush.msra.mxu1 %v1989_v10  ;;  %v2261_v52 = vld [vmem:[%s7163_s5 + $0xdf0] sm:$0xff]  ;;  %v2022_v4 = vld [vmem:[%s7163_s5 + $0x678] sm:$0xff] }
 0x27e   :  { %2872 = vmatpush.msra.mxu2 %v2141_v12  ;;  %2907 = vmatpush.msra.mxu0 %v1926_v13  ;;  %v2253_v56 = vld [vmem:[%s7163_s5 + $0xdb0] sm:$0xff]  ;;  %v2174_v5 = vld [vmem:[%s7163_s5 + $0xb38] sm:$0xff] }
 0x27f   :  { %2821 = vmatmul.f32.vlgmr.msra.gmra.mxu3 %v5888_v36  ;;  %2856 = vmatpush.msra.mxu1 %v1981_v14  ;;  %v2245_v61 = vld [vmem:[%s7163_s5 + $0xd70] sm:$0xff]  ;;  %v1830_v28 = vld [vmem:[%s7163_s5 + $0x78] sm:$0xff] }
 0x280   :  { %2885 = vmatpush.msrb.mxu3 %v2325_v15  ;;  %2873 = vmatpush.msra.mxu2 %v2133_v16  ;;  %v2237_v1 = vld [vmem:[%s7163_s5 + $0xd30] sm:$0xff]  ;;  %v2014_v9 = vld [vmem:[%s7163_s5 + $0x638] sm:$0xff] }
 0x281   :  { %2908 = vmatpush.msra.mxu0 %v1918_v29  ;;  %2857 = vmatpush.msra.mxu1 %v1973_v11  ;;  %v2229_v7 = vld [vmem:[%s7163_s5 + $0xcf0] sm:$0xff]  ;;  %v2166_v10 = vld [vmem:[%s7163_s5 + $0xaf8] sm:$0xff] }
 0x282   :  { %2886 = vmatpush.msrb.mxu3 %v2317_v17  ;;  %2874 = vmatpush.msra.mxu2 %v2125_v18  ;;  %v2502_v25 = vpop.f32.mrf.mxu3  ;;  %v1822_v12 = vld [vmem:[%s7163_s5 + $0x38] sm:$0xff]  ;;  %v2221_v13 = vld [vmem:[%s7163_s5 + $0xcb0] sm:$0xff] }
 0x283   :  { %2909 = vmatpush.msra.mxu0 %v1910_v19  ;;  %2858 = vmatpush.msra.mxu1 %v1965_v20  ;;  %v6738_v31 = vadd.f32 %v2502_v25, %v6635_v55  ;;  %v1854_v55 = vld [vmem:[%s7163_s5 + $0x138] sm:$0xff]  ;;  %v2213_v16 = vld [vmem:[%s7163_s5 + $0xc70] sm:$0xff] }
 0x284   :  { %2887 = vmatpush.msrb.mxu3 %v2309_v21  ;;  %2875 = vmatpush.msra.mxu2 %v2117_v23  ;;  %v2006_v14 = vld [vmem:[%s7163_s5 + $0x5f8] sm:$0xff]  ;;  %v2205_v17 = vld [vmem:[%s7163_s5 + $0xc30] sm:$0xff] }
 0x285   :  { %2910 = vmatpush.msra.mxu0 %v1902_v24  ;;  %2859 = vmatpush.msra.mxu1 %v1957_v22  ;;  %v2158_v15 = vld [vmem:[%s7163_s5 + $0xab8] sm:$0xff] }
 0x286   :  { %2888 = vmatpush.msrb.mxu3 %v2301_v26  ;;  %2876 = vmatpush.msra.mxu2 %v2109_v27  ;;  %v1998_v29 = vld [vmem:[%s7163_s5 + $0x5b8] sm:$0xff] }
 0x287   :  { %2911 = vmatpush.msra.mxu0 %v1894_v32  ;;  %2860 = vmatpush.msra.mxu1 %v1949_v34  ;;  %v2150_v11 = vld [vmem:[%s7163_s5 + $0xa78] sm:$0xff] }
 0x288   :  { %2889 = vmatpush.msrb.mxu3 %v2293_v35  ;;  %2877 = vmatpush.msra.mxu2 %v2101_v33  ;;  %v1990_v18 = vld [vmem:[%s7163_s5 + $0x578] sm:$0xff] }
 0x289   :  { %2912 = vmatpush.msra.mxu0 %v1886_v38  ;;  %2861 = vmatmul.f32.vlgmr.msra.gmra.mxu1 %v5787_v48  ;;  %v2326_v19 = vld [vmem:[%s7163_s5 + $0xff8] sm:$0xff] }
 0x28a   :  { %2890 = vmatpush.msrb.mxu3 %v2285_v37  ;;  %2925 = vmatpush.msrb.mxu1 %v2070_v39  ;;  %v1982_v20 = vld [vmem:[%s7163_s5 + $0x538] sm:$0xff] }
 0x28b   :  { %2878 = vmatpush.msra.mxu2 %v2093_v40  ;;  %2913 = vmatpush.msra.mxu0 %v1878_v41  ;;  %v2134_v21 = vld [vmem:[%s7163_s5 + $0x9f8] sm:$0xff] }
 0x28c   :  { %2891 = vmatpush.msrb.mxu3 %v2277_v43  ;;  %2926 = vmatpush.msrb.mxu1 %v2062_v44  ;;  %v2318_v23 = vld [vmem:[%s7163_s5 + $0xfb8] sm:$0xff] }
 0x28d   :  { %2879 = vmatpush.msra.mxu2 %v2085_v42  ;;  %2914 = vmatpush.msra.mxu0 %v1870_v45  ;;  %v1974_v24 = vld [vmem:[%s7163_s5 + $0x4f8] sm:$0xff] }
 0x28e   :  { %2892 = vmatpush.msrb.mxu3 %v2269_v46  ;;  %2927 = vmatpush.msrb.mxu1 %v2054_v47  ;;  %v2126_v22 = vld [vmem:[%s7163_s5 + $0x9b8] sm:$0xff] }
 0x28f   :  { %2880 = vmatpush.msra.mxu2 %v2077_v49  ;;  %2915 = vmatpush.msra.mxu0 %v1862_v50  ;;  %v2310_v25 = vld [vmem:[%s7163_s5 + $0xf78] sm:$0xff] }
 0x290   :  { %2881 = vmatmul.f32.vlgmr.msra.gmra.mxu2 %v5808_v60  ;;  %2893 = vmatpush.msrb.mxu3 %v2261_v52  ;;  %v1966_v26 = vld [vmem:[%s7163_s5 + $0x4b8] sm:$0xff] }
 0x291   :  { %2928 = vmatpush.msrb.mxu1 %v2046_v53  ;;  %2945 = vmatpush.msrb.mxu2 %v2198_v54  ;;  %v2118_v27 = vld [vmem:[%s7163_s5 + $0x978] sm:$0xff]  ;;  %v3013_v54 = vld [vmem:[%s7165_s7 + $0x70] sm:$0xff] }
 0x292   :  { %2916 = vmatpush.msra.mxu0 %v1854_v55  ;;  %2894 = vmatpush.msrb.mxu3 %v2253_v56  ;;  %v2302_v32 = vld [vmem:[%s7163_s5 + $0xf38] sm:$0xff]  ;;  %v3012_v55 = vld [vmem:[%s7165_s7 + $0x68] sm:$0xff]  ;;  %v3011_v56 = vld [vmem:[%s7165_s7 + $0x60] sm:$0xff] }
 0x293   :  { %2929 = vmatpush.msrb.mxu1 %v2038_v57  ;;  %2946 = vmatpush.msrb.mxu2 %v2190_v58  ;;  %v1958_v34 = vld [vmem:[%s7163_s5 + $0x478] sm:$0xff]  ;;  %v3009_v57 = vld [vmem:[%s7165_s7 + $0x50] sm:$0xff]  ;;  %v3008_v58 = vld [vmem:[%s7165_s7 + $0x48] sm:$0xff] }
 0x294   :  { %2917 = vmatpush.msra.mxu0 %v1846_v59  ;;  %2895 = vmatpush.msrb.mxu3 %v2245_v61  ;;  %v2110_v35 = vld [vmem:[%s7163_s5 + $0x938] sm:$0xff]  ;;  %v3007_v59 = vld [vmem:[%s7165_s7 + $0x40] sm:$0xff]  ;;  %v2522_v61 = vpop.f32.mrf.mxu0 }
 0x295   :  { %2930 = vmatpush.msrb.mxu1 %v2030_v62  ;;  %2947 = vmatpush.msrb.mxu2 %v2182_v63  ;;  %v2294_v33 = vld [vmem:[%s7163_s5 + $0xef8] sm:$0xff]  ;;  %v2542_v63 = vpop.f32.mrf.mxu1 }
 0x296   :  { %2918 = vmatpush.msra.mxu0 %v1838_v0  ;;  %2896 = vmatpush.msrb.mxu3 %v2237_v1  ;;  %v1950_v38 = vld [vmem:[%s7163_s5 + $0x438] sm:$0xff]  ;;  %v3005_v0 = vld [vmem:[%s7165_s7 + $0x30] sm:$0xff]  ;;  %v2562_v1 = vpop.f32.mrf.mxu2 }
 0x297   :  { %2931 = vmatpush.msrb.mxu1 %v2022_v4  ;;  %2948 = vmatpush.msrb.mxu2 %v2174_v5  ;;  %v2102_v37 = vld [vmem:[%s7163_s5 + $0x8f8] sm:$0xff]  ;;  %v3004_v4 = vld [vmem:[%s7165_s7 + $0x28] sm:$0xff] }
 0x298   :  { %2919 = vmatpush.msra.mxu0 %v1830_v28  ;;  %2897 = vmatpush.msrb.mxu3 %v2229_v7  ;;  %v2286_v39 = vld [vmem:[%s7163_s5 + $0xeb8] sm:$0xff]  ;;  %v3003_v7 = vld [vmem:[%s7165_s7 + $0x20] sm:$0xff] }
 0x299   :  { %2932 = vmatpush.msrb.mxu1 %v2014_v9  ;;  %2949 = vmatpush.msrb.mxu2 %v2166_v10  ;;  %v2094_v40 = vld [vmem:[%s7163_s5 + $0x8b8] sm:$0xff] }
 0x29a   :  { %2920 = vmatpush.msra.mxu0 %v1822_v12  ;;  %2898 = vmatpush.msrb.mxu3 %v2221_v13  ;;  %v2278_v41 = vld [vmem:[%s7163_s5 + $0xe78] sm:$0xff]  ;;  %v3001_v13 = vld [vmem:[%s7165_s7 + $0x10] sm:$0xff] }
 0x29b   :  { %2921 = vmatmul.f32.vlgmr.msra.gmra.mxu0 %v5732_v2  ;;  %2933 = vmatpush.msrb.mxu1 %v2006_v14  ;;  %v2142_v2 = vld [vmem:[%s7163_s5 + $0xa38] sm:$0xff]  ;;  %v3000_v14 = vld [vmem:[%s7165_s7 + $0x8] sm:$0xff] }
 0x29c   :  { %2950 = vmatpush.msrb.mxu2 %v2158_v15  ;;  %2899 = vmatpush.msrb.mxu3 %v2213_v16  ;;  %v2086_v43 = vld [vmem:[%s7163_s5 + $0x878] sm:$0xff]  ;;  %v7005_v5 = vpop.f32.mrf.mxu0  ;;  %v2582_v28 = vpop.f32.mrf.mxu3  ;;  %v2999_v15 = vld [vmem:[%s7165_s7] sm:$0xff] }
 0x29d   :  { %2934 = vmatpush.msrb.mxu1 %v1998_v29  ;;  %v2270_v44 = vld [vmem:[%s7163_s5 + $0xe38] sm:$0xff] }
 0x29e   :  { %2951 = vmatpush.msrb.mxu2 %v2150_v11  ;;  %2900 = vmatpush.msrb.mxu3 %v2205_v17  ;;  %v2078_v42 = vld [vmem:[%s7163_s5 + $0x838] sm:$0xff]  ;;  %v3029_v17 = vld [vmem:[%s7165_s7 + $0xf0] sm:$0xff] }
 0x29f   :  { %2935 = vmatpush.msrb.mxu1 %v1990_v18  ;;  %2901 = vmatmul.f32.vlgmr.msrb.gmra.mxu3 %v5888_v36  ;;  %v2254_v45 = vld [vmem:[%s7163_s5 + $0xdb8] sm:$0xff] }
 0x2a0   :  { %2952 = vmatpush.msrb.mxu2 %v2142_v2  ;;  %2965 = vmatpush.msra.mxu3 %v2326_v19  ;;  %v2246_v46 = vld [vmem:[%s7163_s5 + $0xd78] sm:$0xff]  ;;  %v7010_v9 = vpop.f32.mrf.mxu1  ;;  %v3028_v2 = vld [vmem:[%s7165_s7 + $0xe8] sm:$0xff] }
 0x2a1   :  { %2936 = vmatpush.msrb.mxu1 %v1982_v20  ;;  %v2238_v47 = vld [vmem:[%s7163_s5 + $0xd38] sm:$0xff]  ;;  %v3027_v20 = vld [vmem:[%s7165_s7 + $0xe0] sm:$0xff] }
 0x2a2   :  { %2953 = vmatpush.msrb.mxu2 %v2134_v21  ;;  %2966 = vmatpush.msra.mxu3 %v2318_v23  ;;  %v2230_v49 = vld [vmem:[%s7163_s5 + $0xcf8] sm:$0xff] }
 0x2a3   :  { %2937 = vmatpush.msrb.mxu1 %v1974_v24  ;;  %v2214_v50 = vld [vmem:[%s7163_s5 + $0xc78] sm:$0xff] }
 0x2a4   :  { %2954 = vmatpush.msrb.mxu2 %v2126_v22  ;;  %2967 = vmatpush.msra.mxu3 %v2310_v25  ;;  %v2206_v52 = vld [vmem:[%s7163_s5 + $0xc38] sm:$0xff]  ;;  %v2331_v25 = vperm.slane %v6514_v6, 2 }
 0x2a5   :  { %2938 = vmatpush.msrb.mxu1 %v1966_v26  ;;  %v3014_v53 = vld [vmem:[%s7165_s7 + $0x78] sm:$0xff]  ;;  %v3025_v26 = vld [vmem:[%s7165_s7 + $0xd0] sm:$0xff] }
 0x2a6   :  { %2955 = vmatpush.msrb.mxu2 %v2118_v27  ;;  %2968 = vmatpush.msra.mxu3 %v2302_v32  ;;  %v3006_v62 = vld [vmem:[%s7165_s7 + $0x38] sm:$0xff]  ;;  %v3024_v32 = vld [vmem:[%s7165_s7 + $0xc8] sm:$0xff] }
 0x2a7   :  { %2939 = vmatpush.msrb.mxu1 %v1958_v34  ;;  %3035 = vmatpush.msrb.mxu0 %v3014_v53  ;;  %v3002_v10 = vld [vmem:[%s7165_s7 + $0x18] sm:$0xff]  ;;  %v2329_v34 = vperm.slane %v6514_v6, 0 }
 0x2a8   :  { %2956 = vmatpush.msrb.mxu2 %v2110_v35  ;;  %2969 = vmatpush.msra.mxu3 %v2294_v33  ;;  %v3030_v11 = vld [vmem:[%s7165_s7 + $0xf8] sm:$0xff]  ;;  %v2333_v35 = vperm.slane %v6514_v6, 4  ;;  %v3023_v33 = vld [vmem:[%s7165_s7 + $0xc0] sm:$0xff] }
 0x2a9   :  { %2940 = vmatpush.msrb.mxu1 %v1950_v38  ;;  %3036 = vmatpush.msrb.mxu0 %v3013_v54  ;;  %v3026_v22 = vld [vmem:[%s7165_s7 + $0xd8] sm:$0xff]  ;;  %v2523_v38 = vadd.f32 %v2522_v61, %v2331_v25 }
 0x2aa   :  { %2957 = vmatpush.msrb.mxu2 %v2102_v37  ;;  %2941 = vmatmul.f32.vlgmr.msrb.gmra.mxu1 %v5787_v48  ;;  %v2262_v48 = vld [vmem:[%s7163_s5 + $0xdf8] sm:$0xff]  ;;  %v2335_v37 = vperm.slane %v6514_v6, 6 }
 0x2ab   :  { %2970 = vmatpush.msra.mxu3 %v2286_v39  ;;  %3037 = vmatpush.msrb.mxu0 %v3012_v55 }
 0x2ac   :  { %2958 = vmatpush.msrb.mxu2 %v2094_v40  ;;  %3055 = vmatpush.msra.mxu1 %v3030_v11 }
 0x2ad   :  { %2971 = vmatpush.msra.mxu3 %v2278_v41  ;;  %3038 = vmatpush.msrb.mxu0 %v3011_v56  ;;  %v7015_v12 = vpop.f32.mrf.mxu2  ;;  %v3022_v41 = vld [vmem:[%s7165_s7 + $0xb8] sm:$0xff] }
 0x2ae   :  { %2959 = vmatpush.msrb.mxu2 %v2086_v43  ;;  %3056 = vmatpush.msra.mxu1 %v3029_v17  ;;  %v2363_v43 = vadd.f32 %v6461_v51, %v2329_v34 }
 0x2af   :  { %2972 = vmatpush.msra.mxu3 %v2270_v44  ;;  %v2543_v44 = vadd.f32 %v2542_v63, %v2523_v38 }
 0x2b0   :  { %2960 = vmatpush.msrb.mxu2 %v2078_v42  ;;  %3057 = vmatpush.msra.mxu1 %v3028_v2 }
 0x2b1   :  { %2961 = vmatmul.f32.vlgmr.msrb.gmra.mxu2 %v5808_v60  ;;  %2973 = vmatpush.msra.mxu3 %v2262_v48  ;;  %v2222_v60 = vld [vmem:[%s7163_s5 + $0xcb8] sm:$0xff] }
 0x2b2   :  { %v2682_v16 = vpop.f32.mrf.mxu0  ;;  %3058 = vmatpush.msra.mxu1 %v3027_v20 }
 0x2b3   :  { %2974 = vmatpush.msra.mxu3 %v2254_v45  ;;  %v2683_v42 = vadd.f32 %v2682_v16, %v2333_v35  ;;  %v3021_v45 = vld [vmem:[%s7165_s7 + $0xb0] sm:$0xff]  ;;  %v2336_v16 = vperm.slane %v6514_v6, 7 }
 0x2b4   :  { %3059 = vmatpush.msra.mxu1 %v3026_v22 }
 0x2b5   :  { %2975 = vmatpush.msra.mxu3 %v2246_v46  ;;  %v2383_v46 = vadd.f32 %v6503_v3, %v2363_v43  ;;  %v3085_v43 = vld [vmem:[%s7167_s9 + $0x48] sm:$0xff] }
 0x2b6   :  { %3060 = vmatpush.msra.mxu1 %v3025_v26 }
 0x2b7   :  { %2976 = vmatpush.msra.mxu3 %v2238_v47  ;;  %v2563_v47 = vadd.f32 %v2562_v1, %v2543_v44  ;;  %v2403_v51 = vadd.f32 %v6581_v30, %v2383_v46  ;;  %v3018_v30 = vld [vmem:[%s7165_s7 + $0x98] sm:$0xff]  ;;  %v3084_v44 = vld [vmem:[%s7167_s9 + $0x40] sm:$0xff] }
 0x2b8   :  { %3061 = vmatpush.msra.mxu1 %v3024_v32  ;;  %v3080_v46 = vld [vmem:[%s7167_s9 + $0x20] sm:$0xff] }
 0x2b9   :  { %2977 = vmatpush.msra.mxu3 %v2230_v49  ;;  %v2583_v53 = vadd.f32 %v2582_v28, %v2563_v47  ;;  %v2423_v56 = vadd.f32 %v6677_v8, %v2403_v51  ;;  %v3017_v8 = vld [vmem:[%s7165_s7 + $0x90] sm:$0xff]  ;;  %v3016_v28 = vld [vmem:[%s7165_s7 + $0x88] sm:$0xff]  ;;  %v3079_v47 = vld [vmem:[%s7167_s9 + $0x18] sm:$0xff] }
 0x2ba   :  { %3062 = vmatpush.msra.mxu1 %v3023_v33 }
 0x2bb   :  { %2978 = vmatpush.msra.mxu3 %v2222_v60 }
 0x2bc   :  { %3063 = vmatpush.msra.mxu1 %v3022_v41  ;;  %v3086_v41 = vld [vmem:[%s7167_s9 + $0x50] sm:$0xff] }
 0x2bd   :  { %2979 = vmatpush.msra.mxu3 %v2214_v50 }
 0x2be   :  { %v7026_v29 = vpop.f32.mrf.mxu3  ;;  %3064 = vmatpush.msra.mxu1 %v3021_v45  ;;  %v3081_v45 = vld [vmem:[%s7167_s9 + $0x28] sm:$0xff] }
 0x2bf   :  { %2980 = vmatpush.msra.mxu3 %v2206_v52  ;;  %v3020_v52 = vld [vmem:[%s7165_s7 + $0xa8] sm:$0xff] }
 0x2c0   :  { %2981 = vmatmul.f32.vlgmr.msra.gmra.mxu3 %v5888_v36  ;;  %v3010_v36 = vld [vmem:[%s7165_s7 + $0x58] sm:$0xff]  ;;  %3065 = vmatpush.msra.mxu1 %v3020_v52  ;;  %v3211_v52 = vld [vmem:[%s7166_s8] ss:$0 sm:$0xff] }
 0x2c1   :  { %3039 = vmatpush.msrb.mxu0 %v3010_v36 }
 0x2c2   :  { %v2702_v18 = vpop.f32.mrf.mxu1 }
 0x2c3   :  { %3040 = vmatpush.msrb.mxu0 %v3009_v57  ;;  %v2703_v49 = vadd.f32 %v2702_v18, %v2683_v42  ;;  %v3083_v42 = vld [vmem:[%s7167_s9 + $0x38] sm:$0xff] }
 0x2c5   :  { %3041 = vmatpush.msrb.mxu0 %v3008_v58  ;;  %v3019_v58 = vld [vmem:[%s7165_s7 + $0xa0] sm:$0xff] }
 0x2c6   :  { %3066 = vmatpush.msra.mxu1 %v3019_v58 }
 0x2c7   :  { %3042 = vmatpush.msrb.mxu0 %v3007_v59  ;;  %v2987_v59 = vmax.f32 %v2583_v53, 0.0 }
 0x2c8   :  { %3067 = vmatpush.msra.mxu1 %v3018_v30 }
 0x2c9   :  { %3043 = vmatpush.msrb.mxu0 %v3006_v62  ;;  %v2985_v62 = vmax.f32 %v2423_v56, 0.0 }
 0x2ca   :  { %3068 = vmatpush.msra.mxu1 %v3017_v8 }
 0x2cb   :  { %3044 = vmatpush.msrb.mxu0 %v3005_v0  ;;  %v2993_v1 = vmax.f32 %v2985_v62, %v2987_v59 }
 0x2cc   :  { %3069 = vmatpush.msra.mxu1 %v3016_v28 }
 0x2cd   :  { %3045 = vmatpush.msrb.mxu0 %v3004_v4 }
 0x2cf   :  { %3046 = vmatpush.msrb.mxu0 %v3003_v7  ;;  %v2722_v19 = vpop.f32.mrf.mxu2 }
 0x2d0   :  { %v2723_v54 = vadd.f32 %v2722_v19, %v2703_v49  ;;  %v3078_v49 = vld [vmem:[%s7167_s9 + $0x10] sm:$0xff] }
 0x2d1   :  { %3047 = vmatpush.msrb.mxu0 %v3002_v10  ;;  %v3015_v10 = vld [vmem:[%s7165_s7 + $0x80] sm:$0xff] }
 0x2d2   :  { %3070 = vmatpush.msra.mxu1 %v3015_v10 }
 0x2d3   :  { %3048 = vmatpush.msrb.mxu0 %v3001_v13  ;;  %v2332_v13 = vperm.slane %v6514_v6, 3 }
 0x2d4   :  { %v7040_v21 = vpop.f32.mrf.mxu0 }
 0x2d5   :  { %3049 = vmatpush.msrb.mxu0 %v3000_v14  ;;  %v2334_v14 = vperm.slane %v6514_v6, 5 }
 0x2d7   :  { %3050 = vmatpush.msrb.mxu0 %v2999_v15  ;;  %v2603_v15 = vadd.f32 %v7005_v5, %v2332_v13  ;;  %v2763_v18 = vadd.f32 %v7040_v21, %v2334_v14 }
 0x2d9   :  { %v2623_v17 = vadd.f32 %v7010_v9, %v2603_v15  ;;  %v2986_v9 = vmax.f32 %v6738_v31, 0.0  ;;  %v3088_v31 = vld [vmem:[%s7167_s9 + $0x60] sm:$0xff] }
 0x2db   :  { %v2643_v19 = vadd.f32 %v7015_v12, %v2623_v17 }
 0x2dd   :  { %v2663_v25 = vadd.f32 %v7026_v29, %v2643_v19  ;;  %v3091_v29 = vld [vmem:[%s7167_s9 + $0x78] sm:$0xff] }
 0x2de   :  { %3096 = vmatpush.msra.mxu2 %v3091_v29 }
 0x2df   :  { %v2988_v35 = vmax.f32 %v2663_v25, 0.0 }
 0x2e0   :  { %v2742_v23 = vpop.f32.mrf.mxu3 }
 0x2e1   :  { %v2743_v36 = vadd.f32 %v2742_v23, %v2723_v54 }
 0x2e3   :  { %v2989_v63 = vmax.f32 %v2743_v36, 0.0  ;;  %v3212_v36 = vld [vmem:[#allocation2] ss:$0 sm:$0xff] }
 0x2e4   :  { %v7042_v24 = vpop.f32.mrf.mxu1 }
 0x2e5   :  { %v2783_v20 = vadd.f32 %v7042_v24, %v2763_v18  ;;  %v3090_v24 = vld [vmem:[%s7167_s9 + $0x70] sm:$0xff] }
 0x2e6   :  { %3097 = vmatpush.msra.mxu2 %v3090_v24 }
 0x2f1   :  { %v7051_v27 = vpop.f32.mrf.mxu2 }
 0x2f2   :  { %v2803_v26 = vadd.f32 %v7051_v27, %v2783_v20  ;;  %v3089_v27 = vld [vmem:[%s7167_s9 + $0x68] sm:$0xff] }
 0x2f3   :  { %3098 = vmatpush.msra.mxu2 %v3089_v27 }
 0x2f5   :  { %3099 = vmatpush.msra.mxu2 %v3088_v31 }
 0x2f6   :  { %v2842_v39 = vpop.f32.mrf.mxu0 }
 0x2f7   :  { %v2843_v60 = vadd.f32 %v2842_v39, %v2335_v37  ;;  %v2994_v37 = vmax.f32 %v2986_v9, %v2988_v35  ;;  %v3245_v35 = vmov 0.0  }
 0x302   :  { %v2822_v40 = vpop.f32.mrf.mxu3 }
 0x303   :  { %v2823_v5 = vadd.f32 %v2822_v40, %v2803_v26  ;;  %v3087_v40 = vld [vmem:[%s7167_s9 + $0x58] sm:$0xff] }
 0x304   :  { %3100 = vmatpush.msra.mxu2 %v3087_v40 }
 0x305   :  { %v2990_v21 = vmax.f32 %v2823_v5, 0.0  ;;  %v3152_v5 = vlaneseq }
 0x306   :  { %v2862_v48 = vpop.f32.mrf.mxu1  ;;  %3101 = vmatpush.msra.mxu2 %v3086_v41 }
 0x307   :  { %v2863_v55 = vadd.f32 %v2862_v48, %v2843_v60  ;;  %v3082_v48 = vld [vmem:[%s7167_s9 + $0x30] sm:$0xff]  ;;  %v3077_v60 = vld [vmem:[%s7167_s9 + $0x8] sm:$0xff] }
 0x308   :  { %3102 = vmatpush.msra.mxu2 %v3085_v43 }
 0x30a   :  { %3103 = vmatpush.msra.mxu2 %v3084_v44 }
 0x30c   :  { %3104 = vmatpush.msra.mxu2 %v3083_v42 }
 0x30e   :  { %3105 = vmatpush.msra.mxu2 %v3082_v48 }
 0x310   :  { %3106 = vmatpush.msra.mxu2 %v3081_v45 }
 0x312   :  { %3107 = vmatpush.msra.mxu2 %v3080_v46 }
 0x313   :  { %v2882_v50 = vpop.f32.mrf.mxu2 }
 0x314   :  { %v2883_v57 = vadd.f32 %v2882_v50, %v2863_v55  ;;  %3108 = vmatpush.msra.mxu2 %v3079_v47  ;;  %v3076_v50 = vld [vmem:[%s7167_s9] sm:$0xff] }
 0x316   :  { %3109 = vmatpush.msra.mxu2 %v3078_v49 }
 0x318   :  { %v2922_v11 = vpop.f32.mrf.mxu0  ;;  %3110 = vmatpush.msra.mxu2 %v3077_v60 }
 0x319   :  { %v2923_v23 = vadd.f32 %v2922_v11, %v2336_v16  ;;  %v3139_v11 = vld [vmem:[%s7160_s2] sm:$0x3]  ;;  %s3206_s2 = spop %3205 }
 0x31a   :  { %3111 = vmatpush.msra.mxu2 %v3076_v50  ;;  %v3165_v9 = vstv %s3206_s2 }
 0x322   :  { %v2902_v3 = vpop.f32.mrf.mxu3 }
 0x323   :  { %v2903_v61 = vadd.f32 %v2902_v3, %v2883_v57 }
 0x325   :  { %v2991_v0 = vmax.f32 %v2903_v61, 0.0 }
 0x327   :  { %v2995_v4 = vmax.f32 %v2989_v63, %v2991_v0  ;;  %v2942_v2 = vpop.f32.mrf.mxu1 }
 0x328   :  { %v2943_v32 = vadd.f32 %v2942_v2, %v2923_v23 }
 0x329   :  { %v2997_v7 = vmax.f32 %v2993_v1, %v2995_v4 }
 0x32b   :  { %3051 = vmatmul.f32.vlgmr.msrb.gmra.mxu0 %v2997_v7 }
 0x334   :  { %v2962_v22 = vpop.f32.mrf.mxu2 }
 0x335   :  { %v2963_v34 = vadd.f32 %v2962_v22, %v2943_v32 }
 0x343   :  { %v2982_v6 = vpop.f32.mrf.mxu3 }
 0x344   :  { %v2983_v33 = vadd.f32 %v2982_v6, %v2963_v34  ;;  %v3153_v34 = vshrl.u32 %v3152_v5, 7  ;;  %v3155_v6 = vand.u32 127, %v3152_v5 }
 0x346   :  { %v2992_v38 = vmax.f32 %v2983_v33, 0.0  ;;  %vm3156_vm7 = vcmp.eq.s32.totalorder %v3153_v34, 0  ;;  %vm3157_vm8 = vcmp.eq.s32.totalorder %v3155_v6, 0  ;;  %vm3161_vm9 = vcmp.eq.s32.totalorder %v3155_v6, 1 }
 0x347   :  { %vm3158_vm10 = vmand %vm3156_vm7, %vm3157_vm8 }
 0x348   :  { %v2996_v12 = vmax.f32 %v2990_v21, %v2992_v38  ;;  %vm3162_vm11 = vmand %vm3156_vm7, %vm3161_vm9  ;;  %v3203_v33 = vsel %vm3158_vm10, 1.0, %v3245_v35 }
 0x349   :  { %v3204_v21 = vsel %vm3162_vm11, 1.0, %v3245_v35 }
 0x34a   :  { %v2998_v39 = vmax.f32 %v2994_v37, %v2996_v12  ;;  %v3166_v37 = vmul.f32 %v3203_v33, %v3165_v9 }
 0x34c   :  { %3071 = vmatmul.f32.vlgmr.msra.gmra.mxu1 %v2998_v39 }
 0x3a8   :  { %v3052_v51 = vpop.f32.mrf.mxu0 }
 0x3a9   :  { %v3053_v53 = vadd.f32 %v3211_v52, %v3052_v51 }
 0x3c9   :  { %v3072_v54 = vpop.f32.mrf.mxu1 }
 0x3ca   :  { %v3073_v55 = vadd.f32 %v3072_v54, %v3053_v53 }
 0x3cc   :  { %v3075_v56 = vmax.f32 %v3073_v55, 0.0 }
 0x3ce   :  { %3112 = vmatmul.f32.vlgmr.msra.gmra.mxu2 %v3075_v56 }
 0x451   :  { %v3113_v57 = vpop.f32.mrf.mxu2 }
 0x452   :  { %v3114_v3 = vadd.f32 %v3212_v36, %v3113_v57 }
 0x454   :  { %v3116_v58 = vsub.f32 0.0, %v3114_v3 }
 0x456   :  { %v3117_v59 = vmul.f32 1.442695, %v3116_v58 }
 0x458   :  { %3213 = vpow2.f32 %v3117_v59 }
 0x45e   :  { %v3214_v61 = vpop.eup %3213 }
 0x45f   :  { %v3119_v30 = vadd.f32 1.0, %v3214_v61 }
 0x461   :  { %3215 = vrcp.f32 %v3119_v30  ;;  %v3131_v8 = vand.u32 2147483648, %v3119_v30  ;;  %v3129_v4 = vand.u32 2147483647, %v3119_v30  ;;  %vm3125_vm3 = vweird.f32 %v3119_v30 }
 0x463   :  { %v3132_v7 = vor.u32 1.1754944e-38, %v3131_v8  ;;  %vm3130_vm5 = vcmp.eq.f32.partialorder %v3129_v4, 8.507059e+37 }
 0x467   :  { %v3216_v62 = vpop.eup %3215 }
 0x468   :  { %v3121_v63 = vmul.f32 %v3216_v62, %v3119_v30  ;;  %vm3126_vm2 = vweird.f32 %v3216_v62 }
 0x469   :  { %vm3127_vm4 = vmor %vm3125_vm3, %vm3126_vm2 }
 0x46a   :  { %v3122_v0 = vsub.f32 1.0, %v3121_v63 }
 0x46c   :  { %v3123_v1 = vmul.f32 %v3216_v62, %v3122_v0 }
 0x46e   :  { %v3124_v28 = vadd.f32 %v3216_v62, %v3123_v1 }
 0x470   :  { %v3128_v10 = vsel %vm3127_vm4, %v3216_v62, %v3124_v28 }
 0x471   :  { %v3133_v13 = vsel %vm3130_vm5, %v3132_v7, %v3128_v10 }
 0x472   :  { %3217 = vlog2.f32 %v3133_v13 }
 0x478   :  { %v3218_v14 = vpop.eup %3217 }
 0x479   :  { %v3136_v15 = vmul.f32 0.6931472, %v3218_v14 }
 0x47b   :  { %v3137_v16 = vmax.f32 %v3136_v15, -100.0 }
 0x47d   :  { %v3138_v17 = vsub.f32 0.0, %v3137_v16 }
 0x47f   :  { %v3140_v18 = vmul.f32 %v3139_v11, %v3138_v17 }
 0x481   :  { %v3142_v2 = vsel %vm3141_vm6, %v3140_v18, 0.0 }
 0x482   :  { %3143 = vadd.xlane.f32.xlu0 %v3142_v2 }
 0x4f5   :  { %v3144_v19 = vpop.xlane.xlu0 %3143 }
 0x4f6   :  { %v3145_v20 = vrot.slane %v3144_v19, 4 }
 0x4f8   :  { %v3146_v23 = vadd.f32 %v3145_v20, %v3144_v19 }
 0x4fa   :  { %v3147_v22 = vrot.slane %v3146_v23, 2 }
 0x4fc   :  { %v3148_v25 = vadd.f32 %v3147_v22, %v3146_v23 }
 0x4fe   :  { %v3149_v26 = vrot.slane %v3148_v25, 1 }
 0x500   :  { %v3150_v32 = vadd.f32 %v3149_v26, %v3148_v25 }
 0x502   :  { %3207 = vpush %v3150_v32 }
 0x533   :  { %s3208_s1 = spop %3207 }
 0x534   :  { %v3167_v38 = vstv %s3208_s1 }
 0x535   :  { %v3168_v12 = vmul.f32 %v3204_v21, %v3167_v38 }
 0x537   :  { %v3169_v39 = vadd.f32 %v3168_v12, %v3166_v37 }
 0x539   :  { %3170 = vst [vmem:[#allocation3] sm:$0xff] %v3169_v39 }
 0x53a   :  { %3181 = dma.vmem_to_hbm [thread:$0]  %s3177_s20, 128, %s3179_s23, [#allocation4]  }
 0x53b   :  { %3243 = dma.done.wait [#allocation4], 128  }
 0x53c   :  { %3244 = vsyncadd [#allocation4], 4294967168 }
 0x53d   :  { %3186 = vsyncpa [#allocation4], 1 }

</bundles_post_ra>
